<compile_context>
chip_gen: v5e
topology: v5e:2x2
jax: 0.10.0
libtpu: 0.0.40
codegen_flags: <defaults>
</compile_context>

<pallas_src>
import functools
import math

import jax
import jax.numpy as jnp
from jax.experimental import pallas as pl
from jax.experimental.pallas import tpu as pltpu


def _sigmoid(t):
    return 1.0 / (1.0 + jnp.exp(-t))


def _gated_gt_kernel(
    x_ref, adj_ref, we_ref, be_ref,
    wqkv_ref, bqkv_ref, wo_ref, bo_ref,
    g1_ref, bt1_ref, w1_ref, b1_ref, w2_ref, b2_ref, g2_ref, bt2_ref,
    wa_ref, ba_ref, wx_ref, bx_ref, wh1_ref, bh1_ref,
    wsa_ref, bsa_ref, wln_ref, bln_ref, wp_ref, bp_ref,
    o_ref,
    attn_scr,
    *, B, L, H, n_head, num_gnn_layers, num_sa_layers):
    N = B * L
    hd = H // n_head
    scale = 1.0 / math.sqrt(hd)
    eps = 1e-5

    def layernorm(v, gamma, beta):
        mu = jnp.mean(v, axis=-1, keepdims=True)
        d = v - mu
        var = jnp.mean(d * d, axis=-1, keepdims=True)
        return d * jax.lax.rsqrt(var + eps) * gamma + beta

    # emb_encode (dropout_encode == identity in eval mode).
    x = jnp.dot(x_ref[...], we_ref[...],
                preferred_element_type=jnp.float32) + be_ref[...]        # (N, H)

    adj = adj_ref[...]                                                    # (H, H), pre-embedded

    li = 0
    for _g in range(num_gnn_layers):
        # ---- TransformerEncoder stack (torch's seq-first transpose == batched
        # attention over the L axis, batched over B).
        for _s in range(num_sa_layers):
            wqkv = wqkv_ref[li]                                           # (H, 3H)
            qkv = jnp.dot(x, wqkv, preferred_element_type=jnp.float32) + bqkv_ref[li]
            q = qkv[:, 0:H] * scale
            k = qkv[:, H:2 * H]
            v = qkv[:, 2 * H:3 * H]
            wo = wo_ref[li]                                               # (H, H)
            bo = bo_ref[li]                                               # (1, H)

            # Per-batch / per-head attention (B and n_head tiny, unrolled).
            # Heads fold straight into the out-projection: no lane concat.
            for b in range(B):
                acc = jnp.zeros((L, H), jnp.float32)
                for h in range(n_head):
                    rows = slice(b * L, (b + 1) * L)
                    cols = slice(h * hd, (h + 1) * hd)
                    qh = q[rows, cols]                                    # (L, hd)
                    kh = k[rows, cols]
                    vh = v[rows, cols]
                    s = jax.lax.dot_general(
                        qh, kh, (((1,), (1,)), ((), ())),
                        preferred_element_type=jnp.float32)               # (L, L)
                    m = jnp.max(s, axis=-1, keepdims=True)
                    e = jnp.exp(s - m)
                    prob = e * pl.reciprocal(
                        jnp.sum(e, axis=-1, keepdims=True), approx=True)
                    ctx = jnp.dot(prob, vh, preferred_element_type=jnp.float32)
                    acc = acc + jnp.dot(ctx, wo[cols, :],
                                        preferred_element_type=jnp.float32)
                attn_scr[pl.ds(b * L, L), :] = acc + bo

            src = x + attn_scr[...]                                       # residual (dropout1 = id)
            src = layernorm(src, g1_ref[li], bt1_ref[li])
            ff = jnp.maximum(
                jnp.dot(src, w1_ref[li], preferred_element_type=jnp.float32)
                + b1_ref[li], 0.0)
            ff = jnp.dot(ff, w2_ref[li], preferred_element_type=jnp.float32) + b2_ref[li]
            x = layernorm(src + ff, g2_ref[li], bt2_ref[li])
            li += 1

        # ---- gatedGNN (GRU-style gating; z0|r0|h0 and z1|r1 fused matmuls).
        a = jnp.dot(x, adj, preferred_element_type=jnp.float32)           # (N, H)
        ga = jnp.dot(a, wa_ref[...], preferred_element_type=jnp.float32) + ba_ref[...]
        gx = jnp.dot(x, wx_ref[...], preferred_element_type=jnp.float32) + bx_ref[...]
        z = _sigmoid(ga[:, 0:H] + gx[:, 0:H])
        r = _sigmoid(ga[:, H:2 * H] + gx[:, H:2 * H])
        hh = jnp.maximum(
            ga[:, 2 * H:3 * H]
            + jnp.dot(r * x, wh1_ref[...], preferred_element_type=jnp.float32)
            + bh1_ref[...], 0.0)
        x = hh * z + x * (1.0 - z)

    # ---- readout head.
    sa = _sigmoid(jnp.dot(x, wsa_ref[...], preferred_element_type=jnp.float32)
                  + bsa_ref[...])                                         # (N, 1)
    xl = jnp.maximum(jnp.dot(x, wln_ref[...], preferred_element_type=jnp.float32)
                     + bln_ref[...], 0.0)
    xg = jnp.clip(sa * xl, -100000.0, 100000.0)
    # TODO(synk): final dropout is identity (eval mode); no in-kernel RNG dropout.
    o_ref[...] = (jnp.dot(xg, wp_ref[...], preferred_element_type=jnp.float32)
                  + bp_ref[...]).astype(o_ref.dtype)


def gated_gt_pallas(inputs, adj, p, *, n_head, num_gnn_layers, num_sa_layers):
    """inputs: (B, L, F) float32; adj: (F, F) float32; p: torch-layout params."""
    B, L, F = inputs.shape
    H = p["we"].shape[0]
    C = p["wp"].shape[0]
    n_tl = num_gnn_layers * num_sa_layers
    N = B * L

    # torch.no_grad() adjacency embedding (graph constant): emb(emb(adj).T).
    adj1 = adj @ p["we"].T + p["be"]                 # (F, H)
    adj_hh = adj1.T @ p["we"].T + p["be"]            # (H, H)

    # Pre-transpose Linear weights (kernel computes x @ W + b) and fuse groups
    # that share an input: Q|K|V, z0|r0|h0 (on `a`), z1|r1 (on `x`).
    x2d = inputs.reshape(N, F)
    we_t = p["we"].T
    be2 = p["be"].reshape(1, H)
    wqkv_t = jnp.transpose(p["wqkv"], (0, 2, 1))     # (n_tl, H, 3H)
    bqkv2 = p["bqkv"].reshape(n_tl, 1, 3 * H)
    wo_t = jnp.transpose(p["wo"], (0, 2, 1))
    bo2 = p["bo"].reshape(n_tl, 1, H)
    g1 = p["g1"].reshape(n_tl, 1, H)
    bt1 = p["bt1"].reshape(n_tl, 1, H)
    w1_t = jnp.transpose(p["w1"], (0, 2, 1))
    b1_2 = p["b1"].reshape(n_tl, 1, H)
    w2_t = jnp.transpose(p["w2"], (0, 2, 1))
    b2_2 = p["b2"].reshape(n_tl, 1, H)
    g2 = p["g2"].reshape(n_tl, 1, H)
    bt2 = p["bt2"].reshape(n_tl, 1, H)
    wa = jnp.concatenate([p["wz0"].T, p["wr0"].T, p["wh0"].T], axis=1)   # (H, 3H)
    ba = jnp.concatenate([p["bz0"], p["br0"], p["bh0"]]).reshape(1, 3 * H)
    wx = jnp.concatenate([p["wz1"].T, p["wr1"].T], axis=1)               # (H, 2H)
    bx = jnp.concatenate([p["bz1"], p["br1"]]).reshape(1, 2 * H)
    wh1_t = p["wh1"].T
    bh1_2 = p["bh1"].reshape(1, H)
    wsa_t = p["wsa"].T                                # (H, 1)
    bsa2 = p["bsa"].reshape(1, 1)
    wln_t = p["wln"].T
    bln2 = p["bln"].reshape(1, H)
    wp_t = p["wp"].T                                  # (H, C)
    bp2 = p["bp"].reshape(1, C)

    operands = (x2d, adj_hh, we_t, be2,
                wqkv_t, bqkv2, wo_t, bo2,
                g1, bt1, w1_t, b1_2, w2_t, b2_2, g2, bt2,
                wa, ba, wx, bx, wh1_t, bh1_2,
                wsa_t, bsa2, wln_t, bln2, wp_t, bp2)

    def _const_map(ndim):
        return lambda i, _nd=ndim: (0,) * _nd

    in_specs = [pl.BlockSpec(op.shape, _const_map(op.ndim)) for op in operands]

    kernel = functools.partial(
        _gated_gt_kernel, B=B, L=L, H=H, n_head=n_head,
        num_gnn_layers=num_gnn_layers, num_sa_layers=num_sa_layers)

    out2d = pl.pallas_call(
        kernel,
        out_shape=jax.ShapeDtypeStruct((N, C), jnp.float32),
        grid_spec=pltpu.PrefetchScalarGridSpec(
            num_scalar_prefetch=0,
            grid=(1,),                      # single step: everything fits in VMEM
            in_specs=in_specs,
            out_specs=pl.BlockSpec((N, C), lambda i: (0, 0)),
            scratch_shapes=[pltpu.VMEM((N, H), jnp.float32)]),
        compiler_params=pltpu.CompilerParams(
            dimension_semantics=("arbitrary",)),
    )(*operands)
    return out2d.reshape(B, L, C)


# ----------------------------- parameters --------------------------------- #
def make_params(key, F, H, C, n_tl):
    def dense(k, out_dim, in_dim):
        kw, kb = jax.random.split(k)
        bound = 1.0 / math.sqrt(in_dim)
        w = jax.random.uniform(kw, (out_dim, in_dim), jnp.float32, -bound, bound)
        b = jax.random.uniform(kb, (out_dim,), jnp.float32, -bound, bound)
        return w, b

    keys = iter(jax.random.split(key, 64))
    p = {}
    p["we"], p["be"] = dense(next(keys), H, F)

    def stack(fn):
        ws, bs = zip(*[fn(next(keys)) for _ in range(n_tl)])
        return jnp.stack(ws), jnp.stack(bs)

    p["wqkv"], p["bqkv"] = stack(lambda k: dense(k, 3 * H, H))
    p["wo"], p["bo"] = stack(lambda k: dense(k, H, H))
    p["w1"], p["b1"] = stack(lambda k: dense(k, H, H))
    p["w2"], p["b2"] = stack(lambda k: dense(k, H, H))
    p["g1"] = jnp.ones((n_tl, H), jnp.float32)
    p["bt1"] = jnp.zeros((n_tl, H), jnp.float32)
    p["g2"] = jnp.ones((n_tl, H), jnp.float32)
    p["bt2"] = jnp.zeros((n_tl, H), jnp.float32)
    for name in ("z0", "z1", "r0", "r1", "h0", "h1"):
        p["w" + name], p["b" + name] = dense(next(keys), H, H)
    p["wsa"], p["bsa"] = dense(next(keys), 1, H)
    p["wln"], p["bln"] = dense(next(keys), H, H)
    p["wp"], p["bp"] = dense(next(keys), C, H)
    return p


# ------------------------- pure-JAX reference ------------------------------ #
def gated_gt_ref(inputs, adj, p, *, n_head, num_gnn_layers, num_sa_layers):
    def layernorm(v, g, b, eps=1e-5):
        mu = jnp.mean(v, -1, keepdims=True)
        var = jnp.mean((v - mu) ** 2, -1, keepdims=True)
        return (v - mu) / jnp.sqrt(var + eps) * g + b

    B, L, F = inputs.shape
    H = p["we"].shape[0]
    hd = H // n_head

    x = inputs @ p["we"].T + p["be"]
    adj1 = adj @ p["we"].T + p["be"]
    adj_hh = adj1.T @ p["we"].T + p["be"]

    li = 0
    for _ in range(num_gnn_layers):
        for _ in range(num_sa_layers):
            qkv = x @ p["wqkv"][li].T + p["bqkv"][li]
            q, k, v = jnp.split(qkv, 3, axis=-1)
            q = q.reshape(B, L, n_head, hd).transpose(0, 2, 1, 3)
            k = k.reshape(B, L, n_head, hd).transpose(0, 2, 1, 3)
            v = v.reshape(B, L, n_head, hd).transpose(0, 2, 1, 3)
            att = jnp.einsum("bhld,bhmd->bhlm", q, k) / math.sqrt(hd)
            att = jax.nn.softmax(att, axis=-1)
            y = jnp.einsum("bhlm,bhmd->bhld", att, v)
            y = y.transpose(0, 2, 1, 3).reshape(B, L, H)
            a = y @ p["wo"][li].T + p["bo"][li]
            x = layernorm(x + a, p["g1"][li], p["bt1"][li])
            ff = jnp.maximum(x @ p["w1"][li].T + p["b1"][li], 0.0) @ p["w2"][li].T + p["b2"][li]
            x = layernorm(x + ff, p["g2"][li], p["bt2"][li])
            li += 1
        a = (x.reshape(B * L, H) @ adj_hh).reshape(B, L, H)
        z = jax.nn.sigmoid(a @ p["wz0"].T + p["bz0"] + x @ p["wz1"].T + p["bz1"])
        r = jax.nn.sigmoid(a @ p["wr0"].T + p["br0"] + x @ p["wr1"].T + p["br1"])
        h = jnp.maximum(a @ p["wh0"].T + p["bh0"] + (r * x) @ p["wh1"].T + p["bh1"], 0.0)
        x = h * z + x * (1.0 - z)

    sa = jax.nn.sigmoid(x @ p["wsa"].T + p["bsa"])
    xl = jnp.maximum(x @ p["wln"].T + p["bln"], 0.0)
    xg = jnp.clip(sa * xl, -100000.0, 100000.0)
    return xg @ p["wp"].T + p["bp"]


if __name__ == "__main__":
    # Module config: feature_dim_size=16, hidden_size=32, num_classes=4,
    # num_self_att_layers=1, num_GNN_layers=2, nhead=4 (dropouts -> identity).
    B, L, F, H, C = 2, 8, 16, 32, 4
    NHEAD, N_GNN, N_SA = 4, 2, 1

    key = jax.random.PRNGKey(0)
    kx, ka, kp = jax.random.split(key, 3)
    inputs = jax.random.normal(kx, (B, L, F), dtype=jnp.float32)
    adj = jax.random.uniform(ka, (F, F), dtype=jnp.float32)
    params = make_params(kp, F, H, C, N_GNN * N_SA)

    out = gated_gt_pallas(inputs, adj, params,
                          n_head=NHEAD, num_gnn_layers=N_GNN, num_sa_layers=N_SA)
    out = jax.block_until_ready(out)

    ref = gated_gt_ref(inputs, adj, params,
                       n_head=NHEAD, num_gnn_layers=N_GNN, num_sa_layers=N_SA)
    assert out.shape == (B, L, C)
    # Tolerance covers the EUP approximate-reciprocal softmax normalization.
    assert jnp.allclose(out, ref, atol=2e-2, rtol=2e-2), "mismatch vs pure-JAX reference"

    print("KERNEL_OK")
</pallas_src>

<mosaic_0001>
module attributes {stable_mosaic.version = 11 : i64} {
  func.func @_gated_gt_kernel(%arg0: i32, %arg1: memref<16x16xf32, #tpu.memory_space<vmem>>, %arg2: memref<32x32xf32, #tpu.memory_space<vmem>>, %arg3: memref<16x32xf32, #tpu.memory_space<vmem>>, %arg4: memref<1x32xf32, #tpu.memory_space<vmem>>, %arg5: memref<2x32x96xf32, #tpu.memory_space<vmem>>, %arg6: memref<2x1x96xf32, #tpu.memory_space<vmem>>, %arg7: memref<2x32x32xf32, #tpu.memory_space<vmem>>, %arg8: memref<2x1x32xf32, #tpu.memory_space<vmem>>, %arg9: memref<2x1x32xf32, #tpu.memory_space<vmem>>, %arg10: memref<2x1x32xf32, #tpu.memory_space<vmem>>, %arg11: memref<2x32x32xf32, #tpu.memory_space<vmem>>, %arg12: memref<2x1x32xf32, #tpu.memory_space<vmem>>, %arg13: memref<2x32x32xf32, #tpu.memory_space<vmem>>, %arg14: memref<2x1x32xf32, #tpu.memory_space<vmem>>, %arg15: memref<2x1x32xf32, #tpu.memory_space<vmem>>, %arg16: memref<2x1x32xf32, #tpu.memory_space<vmem>>, %arg17: memref<32x96xf32, #tpu.memory_space<vmem>>, %arg18: memref<1x96xf32, #tpu.memory_space<vmem>>, %arg19: memref<32x64xf32, #tpu.memory_space<vmem>>, %arg20: memref<1x64xf32, #tpu.memory_space<vmem>>, %arg21: memref<32x32xf32, #tpu.memory_space<vmem>>, %arg22: memref<1x32xf32, #tpu.memory_space<vmem>>, %arg23: memref<32x1xf32, #tpu.memory_space<vmem>>, %arg24: memref<1x1xf32, #tpu.memory_space<vmem>>, %arg25: memref<32x32xf32, #tpu.memory_space<vmem>>, %arg26: memref<1x32xf32, #tpu.memory_space<vmem>>, %arg27: memref<32x4xf32, #tpu.memory_space<vmem>>, %arg28: memref<1x4xf32, #tpu.memory_space<vmem>>, %arg29: memref<16x4xf32, #tpu.memory_space<vmem>>, %arg30: memref<16x32xf32, #tpu.memory_space<vmem>>) attributes {dimension_semantics = [#tpu.dimension_semantics<arbitrary>], iteration_bounds = array<i64: 1>, scalar_prefetch = 0 : i64, scratch_operands = 1 : i64, tpu.core_type = #tpu.core_type<tc>, window_params = [{pipeline_mode = #tpu.pipeline_mode<synchronous>, transform_indices = @transform_0, window_bounds = array<i64: 16, 16>}, {pipeline_mode = #tpu.pipeline_mode<synchronous>, transform_indices = @transform_1, window_bounds = array<i64: 32, 32>}, {pipeline_mode = #tpu.pipeline_mode<synchronous>, transform_indices = @transform_2, window_bounds = array<i64: 16, 32>}, {pipeline_mode = #tpu.pipeline_mode<synchronous>, transform_indices = @transform_3, window_bounds = array<i64: 1, 32>}, {pipeline_mode = #tpu.pipeline_mode<synchronous>, transform_indices = @transform_4, window_bounds = array<i64: 2, 32, 96>}, {pipeline_mode = #tpu.pipeline_mode<synchronous>, transform_indices = @transform_5, window_bounds = array<i64: 2, 1, 96>}, {pipeline_mode = #tpu.pipeline_mode<synchronous>, transform_indices = @transform_6, window_bounds = array<i64: 2, 32, 32>}, {pipeline_mode = #tpu.pipeline_mode<synchronous>, transform_indices = @transform_7, window_bounds = array<i64: 2, 1, 32>}, {pipeline_mode = #tpu.pipeline_mode<synchronous>, transform_indices = @transform_8, window_bounds = array<i64: 2, 1, 32>}, {pipeline_mode = #tpu.pipeline_mode<synchronous>, transform_indices = @transform_9, window_bounds = array<i64: 2, 1, 32>}, {pipeline_mode = #tpu.pipeline_mode<synchronous>, transform_indices = @transform_10, window_bounds = array<i64: 2, 32, 32>}, {pipeline_mode = #tpu.pipeline_mode<synchronous>, transform_indices = @transform_11, window_bounds = array<i64: 2, 1, 32>}, {pipeline_mode = #tpu.pipeline_mode<synchronous>, transform_indices = @transform_12, window_bounds = array<i64: 2, 32, 32>}, {pipeline_mode = #tpu.pipeline_mode<synchronous>, transform_indices = @transform_13, window_bounds = array<i64: 2, 1, 32>}, {pipeline_mode = #tpu.pipeline_mode<synchronous>, transform_indices = @transform_14, window_bounds = array<i64: 2, 1, 32>}, {pipeline_mode = #tpu.pipeline_mode<synchronous>, transform_indices = @transform_15, window_bounds = array<i64: 2, 1, 32>}, {pipeline_mode = #tpu.pipeline_mode<synchronous>, transform_indices = @transform_16, window_bounds = array<i64: 32, 96>}, {pipeline_mode = #tpu.pipeline_mode<synchronous>, transform_indices = @transform_17, window_bounds = array<i64: 1, 96>}, {pipeline_mode = #tpu.pipeline_mode<synchronous>, transform_indices = @transform_18, window_bounds = array<i64: 32, 64>}, {pipeline_mode = #tpu.pipeline_mode<synchronous>, transform_indices = @transform_19, window_bounds = array<i64: 1, 64>}, {pipeline_mode = #tpu.pipeline_mode<synchronous>, transform_indices = @transform_20, window_bounds = array<i64: 32, 32>}, {pipeline_mode = #tpu.pipeline_mode<synchronous>, transform_indices = @transform_21, window_bounds = array<i64: 1, 32>}, {pipeline_mode = #tpu.pipeline_mode<synchronous>, transform_indices = @transform_22, window_bounds = array<i64: 32, 1>}, {pipeline_mode = #tpu.pipeline_mode<synchronous>, transform_indices = @transform_23, window_bounds = array<i64: 1, 1>}, {pipeline_mode = #tpu.pipeline_mode<synchronous>, transform_indices = @transform_24, window_bounds = array<i64: 32, 32>}, {pipeline_mode = #tpu.pipeline_mode<synchronous>, transform_indices = @transform_25, window_bounds = array<i64: 1, 32>}, {pipeline_mode = #tpu.pipeline_mode<synchronous>, transform_indices = @transform_26, window_bounds = array<i64: 32, 4>}, {pipeline_mode = #tpu.pipeline_mode<synchronous>, transform_indices = @transform_27, window_bounds = array<i64: 1, 4>}, {pipeline_mode = #tpu.pipeline_mode<synchronous>, transform_indices = @transform_28, window_bounds = array<i64: 16, 4>}]} {
    %c0 = arith.constant 0 : index
    %c0_0 = arith.constant 0 : index
    %0 = vector.load %arg1[%c0, %c0_0] : memref<16x16xf32, #tpu.memory_space<vmem>>, vector<16x16xf32>
    %c0_1 = arith.constant 0 : index
    %c0_2 = arith.constant 0 : index
    %1 = vector.load %arg3[%c0_1, %c0_2] : memref<16x32xf32, #tpu.memory_space<vmem>>, vector<16x32xf32>
    %cst = arith.constant dense<0.000000e+00> : vector<16x32xf32>
    %2 = tpu.matmul %0, %1, %cst {dimension_numbers = #tpu.dot_dimension_numbers<[1], [0], [0], [1], [0, 0, 1, 1], [], []>} : vector<16x16xf32>, vector<16x32xf32>, vector<16x32xf32> -> vector<16x32xf32>
    %c0_3 = arith.constant 0 : index
    %c0_4 = arith.constant 0 : index
    %3 = vector.load %arg4[%c0_3, %c0_4] : memref<1x32xf32, #tpu.memory_space<vmem>>, vector<1x32xf32>
    %4 = vector.broadcast %3 : vector<1x32xf32> to vector<16x32xf32>
    %5 = arith.addf %2, %4 : vector<16x32xf32>
    %c0_5 = arith.constant 0 : index
    %c0_6 = arith.constant 0 : index
    %6 = vector.load %arg2[%c0_5, %c0_6] : memref<32x32xf32, #tpu.memory_space<vmem>>, vector<32x32xf32>
    %c0_7 = arith.constant 0 : index
    %c0_8 = arith.constant 0 : index
    %c0_9 = arith.constant 0 : index
    %7 = vector.load %arg5[%c0_7, %c0_8, %c0_9] : memref<2x32x96xf32, #tpu.memory_space<vmem>>, vector<1x32x96xf32>
    %8 = vector.shape_cast %7 : vector<1x32x96xf32> to vector<32x96xf32>
    %cst_10 = arith.constant dense<0.000000e+00> : vector<16x96xf32>
    %9 = tpu.matmul %5, %8, %cst_10 {dimension_numbers = #tpu.dot_dimension_numbers<[1], [0], [0], [1], [0, 0, 1, 1], [], []>} : vector<16x32xf32>, vector<32x96xf32>, vector<16x96xf32> -> vector<16x96xf32>
    %c0_11 = arith.constant 0 : index
    %c0_12 = arith.constant 0 : index
    %c0_13 = arith.constant 0 : index
    %10 = vector.load %arg6[%c0_11, %c0_12, %c0_13] : memref<2x1x96xf32, #tpu.memory_space<vmem>>, vector<1x1x96xf32>
    %11 = vector.shape_cast %10 : vector<1x1x96xf32> to vector<1x96xf32>
    %12 = vector.broadcast %11 : vector<1x96xf32> to vector<16x96xf32>
    %13 = arith.addf %9, %12 : vector<16x96xf32>
    %14 = vector.extract_strided_slice %13 {offsets = [0, 0], sizes = [16, 32], strides = [1, 1]} : vector<16x96xf32> to vector<16x32xf32>
    %cst_14 = arith.constant 0.353553385 : f32
    %15 = vector.broadcast %cst_14 : f32 to vector<16x32xf32>
    %16 = arith.mulf %14, %15 : vector<16x32xf32>
    %17 = vector.extract_strided_slice %13 {offsets = [0, 32], sizes = [16, 32], strides = [1, 1]} : vector<16x96xf32> to vector<16x32xf32>
    %18 = vector.extract_strided_slice %13 {offsets = [0, 64], sizes = [16, 32], strides = [1, 1]} : vector<16x96xf32> to vector<16x32xf32>
    %c0_15 = arith.constant 0 : index
    %c0_16 = arith.constant 0 : index
    %c0_17 = arith.constant 0 : index
    %19 = vector.load %arg7[%c0_15, %c0_16, %c0_17] : memref<2x32x32xf32, #tpu.memory_space<vmem>>, vector<1x32x32xf32>
    %20 = vector.shape_cast %19 : vector<1x32x32xf32> to vector<32x32xf32>
    %c0_18 = arith.constant 0 : index
    %c0_19 = arith.constant 0 : index
    %c0_20 = arith.constant 0 : index
    %21 = vector.load %arg8[%c0_18, %c0_19, %c0_20] : memref<2x1x32xf32, #tpu.memory_space<vmem>>, vector<1x1x32xf32>
    %22 = vector.shape_cast %21 : vector<1x1x32xf32> to vector<1x32xf32>
    %cst_21 = arith.constant 0.000000e+00 : f32
    %23 = vector.broadcast %cst_21 : f32 to vector<8x32xf32>
    %24 = vector.extract_strided_slice %16 {offsets = [0, 0], sizes = [8, 8], strides = [1, 1]} : vector<16x32xf32> to vector<8x8xf32>
    %25 = vector.extract_strided_slice %17 {offsets = [0, 0], sizes = [8, 8], strides = [1, 1]} : vector<16x32xf32> to vector<8x8xf32>
    %26 = vector.extract_strided_slice %18 {offsets = [0, 0], sizes = [8, 8], strides = [1, 1]} : vector<16x32xf32> to vector<8x8xf32>
    %cst_22 = arith.constant dense<0.000000e+00> : vector<8x8xf32>
    %27 = tpu.matmul %24, %25, %cst_22 {dimension_numbers = #tpu.dot_dimension_numbers<[1], [1], [0], [0], [0, 0, 1, 0], [], []>} : vector<8x8xf32>, vector<8x8xf32>, vector<8x8xf32> -> vector<8x8xf32>
    %cst_23 = arith.constant dense<0xFF800000> : vector<8xf32>
    %28 = vector.multi_reduction <maximumf>, %27, %cst_23 [1] : vector<8x8xf32> to vector<8xf32>
    %29 = vector.shape_cast %28 : vector<8xf32> to vector<8x1xf32>
    %30 = vector.broadcast %29 : vector<8x1xf32> to vector<8x8xf32>
    %31 = arith.subf %27, %30 : vector<8x8xf32>
    %32 = math.exp %31 : vector<8x8xf32>
    %cst_24 = arith.constant dense<0.000000e+00> : vector<8xf32>
    %33 = vector.multi_reduction <add>, %32, %cst_24 [1] : vector<8x8xf32> to vector<8xf32>
    %34 = vector.shape_cast %33 : vector<8xf32> to vector<8x1xf32>
    %35 = tpu.reciprocal %34 {approx = true} : vector<8x1xf32> -> vector<8x1xf32>
    %36 = vector.broadcast %35 : vector<8x1xf32> to vector<8x8xf32>
    %37 = arith.mulf %32, %36 : vector<8x8xf32>
    %cst_25 = arith.constant dense<0.000000e+00> : vector<8x8xf32>
    %38 = tpu.matmul %37, %26, %cst_25 {dimension_numbers = #tpu.dot_dimension_numbers<[1], [0], [0], [1], [0, 0, 1, 1], [], []>} : vector<8x8xf32>, vector<8x8xf32>, vector<8x8xf32> -> vector<8x8xf32>
    %39 = vector.extract_strided_slice %20 {offsets = [0, 0], sizes = [8, 32], strides = [1, 1]} : vector<32x32xf32> to vector<8x32xf32>
    %cst_26 = arith.constant dense<0.000000e+00> : vector<8x32xf32>
    %40 = tpu.matmul %38, %39, %cst_26 {dimension_numbers = #tpu.dot_dimension_numbers<[1], [0], [0], [1], [0, 0, 1, 1], [], []>} : vector<8x8xf32>, vector<8x32xf32>, vector<8x32xf32> -> vector<8x32xf32>
    %41 = arith.addf %23, %40 : vector<8x32xf32>
    %42 = vector.extract_strided_slice %16 {offsets = [0, 8], sizes = [8, 8], strides = [1, 1]} : vector<16x32xf32> to vector<8x8xf32>
    %43 = vector.extract_strided_slice %17 {offsets = [0, 8], sizes = [8, 8], strides = [1, 1]} : vector<16x32xf32> to vector<8x8xf32>
    %44 = vector.extract_strided_slice %18 {offsets = [0, 8], sizes = [8, 8], strides = [1, 1]} : vector<16x32xf32> to vector<8x8xf32>
    %cst_27 = arith.constant dense<0.000000e+00> : vector<8x8xf32>
    %45 = tpu.matmul %42, %43, %cst_27 {dimension_numbers = #tpu.dot_dimension_numbers<[1], [1], [0], [0], [0, 0, 1, 0], [], []>} : vector<8x8xf32>, vector<8x8xf32>, vector<8x8xf32> -> vector<8x8xf32>
    %cst_28 = arith.constant dense<0xFF800000> : vector<8xf32>
    %46 = vector.multi_reduction <maximumf>, %45, %cst_28 [1] : vector<8x8xf32> to vector<8xf32>
    %47 = vector.shape_cast %46 : vector<8xf32> to vector<8x1xf32>
    %48 = vector.broadcast %47 : vector<8x1xf32> to vector<8x8xf32>
    %49 = arith.subf %45, %48 : vector<8x8xf32>
    %50 = math.exp %49 : vector<8x8xf32>
    %cst_29 = arith.constant dense<0.000000e+00> : vector<8xf32>
    %51 = vector.multi_reduction <add>, %50, %cst_29 [1] : vector<8x8xf32> to vector<8xf32>
    %52 = vector.shape_cast %51 : vector<8xf32> to vector<8x1xf32>
    %53 = tpu.reciprocal %52 {approx = true} : vector<8x1xf32> -> vector<8x1xf32>
    %54 = vector.broadcast %53 : vector<8x1xf32> to vector<8x8xf32>
    %55 = arith.mulf %50, %54 : vector<8x8xf32>
    %cst_30 = arith.constant dense<0.000000e+00> : vector<8x8xf32>
    %56 = tpu.matmul %55, %44, %cst_30 {dimension_numbers = #tpu.dot_dimension_numbers<[1], [0], [0], [1], [0, 0, 1, 1], [], []>} : vector<8x8xf32>, vector<8x8xf32>, vector<8x8xf32> -> vector<8x8xf32>
    %57 = vector.extract_strided_slice %20 {offsets = [8, 0], sizes = [8, 32], strides = [1, 1]} : vector<32x32xf32> to vector<8x32xf32>
    %cst_31 = arith.constant dense<0.000000e+00> : vector<8x32xf32>
    %58 = tpu.matmul %56, %57, %cst_31 {dimension_numbers = #tpu.dot_dimension_numbers<[1], [0], [0], [1], [0, 0, 1, 1], [], []>} : vector<8x8xf32>, vector<8x32xf32>, vector<8x32xf32> -> vector<8x32xf32>
    %59 = arith.addf %41, %58 : vector<8x32xf32>
    %60 = vector.extract_strided_slice %16 {offsets = [0, 16], sizes = [8, 8], strides = [1, 1]} : vector<16x32xf32> to vector<8x8xf32>
    %61 = vector.extract_strided_slice %17 {offsets = [0, 16], sizes = [8, 8], strides = [1, 1]} : vector<16x32xf32> to vector<8x8xf32>
    %62 = vector.extract_strided_slice %18 {offsets = [0, 16], sizes = [8, 8], strides = [1, 1]} : vector<16x32xf32> to vector<8x8xf32>
    %cst_32 = arith.constant dense<0.000000e+00> : vector<8x8xf32>
    %63 = tpu.matmul %60, %61, %cst_32 {dimension_numbers = #tpu.dot_dimension_numbers<[1], [1], [0], [0], [0, 0, 1, 0], [], []>} : vector<8x8xf32>, vector<8x8xf32>, vector<8x8xf32> -> vector<8x8xf32>
    %cst_33 = arith.constant dense<0xFF800000> : vector<8xf32>
    %64 = vector.multi_reduction <maximumf>, %63, %cst_33 [1] : vector<8x8xf32> to vector<8xf32>
    %65 = vector.shape_cast %64 : vector<8xf32> to vector<8x1xf32>
    %66 = vector.broadcast %65 : vector<8x1xf32> to vector<8x8xf32>
    %67 = arith.subf %63, %66 : vector<8x8xf32>
    %68 = math.exp %67 : vector<8x8xf32>
    %cst_34 = arith.constant dense<0.000000e+00> : vector<8xf32>
    %69 = vector.multi_reduction <add>, %68, %cst_34 [1] : vector<8x8xf32> to vector<8xf32>
    %70 = vector.shape_cast %69 : vector<8xf32> to vector<8x1xf32>
    %71 = tpu.reciprocal %70 {approx = true} : vector<8x1xf32> -> vector<8x1xf32>
    %72 = vector.broadcast %71 : vector<8x1xf32> to vector<8x8xf32>
    %73 = arith.mulf %68, %72 : vector<8x8xf32>
    %cst_35 = arith.constant dense<0.000000e+00> : vector<8x8xf32>
    %74 = tpu.matmul %73, %62, %cst_35 {dimension_numbers = #tpu.dot_dimension_numbers<[1], [0], [0], [1], [0, 0, 1, 1], [], []>} : vector<8x8xf32>, vector<8x8xf32>, vector<8x8xf32> -> vector<8x8xf32>
    %75 = vector.extract_strided_slice %20 {offsets = [16, 0], sizes = [8, 32], strides = [1, 1]} : vector<32x32xf32> to vector<8x32xf32>
    %cst_36 = arith.constant dense<0.000000e+00> : vector<8x32xf32>
    %76 = tpu.matmul %74, %75, %cst_36 {dimension_numbers = #tpu.dot_dimension_numbers<[1], [0], [0], [1], [0, 0, 1, 1], [], []>} : vector<8x8xf32>, vector<8x32xf32>, vector<8x32xf32> -> vector<8x32xf32>
    %77 = arith.addf %59, %76 : vector<8x32xf32>
    %78 = vector.extract_strided_slice %16 {offsets = [0, 24], sizes = [8, 8], strides = [1, 1]} : vector<16x32xf32> to vector<8x8xf32>
    %79 = vector.extract_strided_slice %17 {offsets = [0, 24], sizes = [8, 8], strides = [1, 1]} : vector<16x32xf32> to vector<8x8xf32>
    %80 = vector.extract_strided_slice %18 {offsets = [0, 24], sizes = [8, 8], strides = [1, 1]} : vector<16x32xf32> to vector<8x8xf32>
    %cst_37 = arith.constant dense<0.000000e+00> : vector<8x8xf32>
    %81 = tpu.matmul %78, %79, %cst_37 {dimension_numbers = #tpu.dot_dimension_numbers<[1], [1], [0], [0], [0, 0, 1, 0], [], []>} : vector<8x8xf32>, vector<8x8xf32>, vector<8x8xf32> -> vector<8x8xf32>
    %cst_38 = arith.constant dense<0xFF800000> : vector<8xf32>
    %82 = vector.multi_reduction <maximumf>, %81, %cst_38 [1] : vector<8x8xf32> to vector<8xf32>
    %83 = vector.shape_cast %82 : vector<8xf32> to vector<8x1xf32>
    %84 = vector.broadcast %83 : vector<8x1xf32> to vector<8x8xf32>
    %85 = arith.subf %81, %84 : vector<8x8xf32>
    %86 = math.exp %85 : vector<8x8xf32>
    %cst_39 = arith.constant dense<0.000000e+00> : vector<8xf32>
    %87 = vector.multi_reduction <add>, %86, %cst_39 [1] : vector<8x8xf32> to vector<8xf32>
    %88 = vector.shape_cast %87 : vector<8xf32> to vector<8x1xf32>
    %89 = tpu.reciprocal %88 {approx = true} : vector<8x1xf32> -> vector<8x1xf32>
    %90 = vector.broadcast %89 : vector<8x1xf32> to vector<8x8xf32>
    %91 = arith.mulf %86, %90 : vector<8x8xf32>
    %cst_40 = arith.constant dense<0.000000e+00> : vector<8x8xf32>
    %92 = tpu.matmul %91, %80, %cst_40 {dimension_numbers = #tpu.dot_dimension_numbers<[1], [0], [0], [1], [0, 0, 1, 1], [], []>} : vector<8x8xf32>, vector<8x8xf32>, vector<8x8xf32> -> vector<8x8xf32>
    %93 = vector.extract_strided_slice %20 {offsets = [24, 0], sizes = [8, 32], strides = [1, 1]} : vector<32x32xf32> to vector<8x32xf32>
    %cst_41 = arith.constant dense<0.000000e+00> : vector<8x32xf32>
    %94 = tpu.matmul %92, %93, %cst_41 {dimension_numbers = #tpu.dot_dimension_numbers<[1], [0], [0], [1], [0, 0, 1, 1], [], []>} : vector<8x8xf32>, vector<8x32xf32>, vector<8x32xf32> -> vector<8x32xf32>
    %95 = arith.addf %77, %94 : vector<8x32xf32>
    %96 = vector.broadcast %22 : vector<1x32xf32> to vector<8x32xf32>
    %97 = arith.addf %95, %96 : vector<8x32xf32>
    %c0_42 = arith.constant 0 : index
    %c0_43 = arith.constant 0 : index
    %98 = vector.load %arg30[%c0_42, %c0_43] : memref<16x32xf32, #tpu.memory_space<vmem>>, vector<8x32xf32>
    tpu.vector_store %arg30[%c0_42, %c0_43], %97 {strides = array<i32>} : memref<16x32xf32, #tpu.memory_space<vmem>>, vector<8x32xf32>,
    %cst_44 = arith.constant 0.000000e+00 : f32
    %99 = vector.broadcast %cst_44 : f32 to vector<8x32xf32>
    %100 = vector.extract_strided_slice %16 {offsets = [8, 0], sizes = [8, 8], strides = [1, 1]} : vector<16x32xf32> to vector<8x8xf32>
    %101 = vector.extract_strided_slice %17 {offsets = [8, 0], sizes = [8, 8], strides = [1, 1]} : vector<16x32xf32> to vector<8x8xf32>
    %102 = vector.extract_strided_slice %18 {offsets = [8, 0], sizes = [8, 8], strides = [1, 1]} : vector<16x32xf32> to vector<8x8xf32>
    %cst_45 = arith.constant dense<0.000000e+00> : vector<8x8xf32>
    %103 = tpu.matmul %100, %101, %cst_45 {dimension_numbers = #tpu.dot_dimension_numbers<[1], [1], [0], [0], [0, 0, 1, 0], [], []>} : vector<8x8xf32>, vector<8x8xf32>, vector<8x8xf32> -> vector<8x8xf32>
    %cst_46 = arith.constant dense<0xFF800000> : vector<8xf32>
    %104 = vector.multi_reduction <maximumf>, %103, %cst_46 [1] : vector<8x8xf32> to vector<8xf32>
    %105 = vector.shape_cast %104 : vector<8xf32> to vector<8x1xf32>
    %106 = vector.broadcast %105 : vector<8x1xf32> to vector<8x8xf32>
    %107 = arith.subf %103, %106 : vector<8x8xf32>
    %108 = math.exp %107 : vector<8x8xf32>
    %cst_47 = arith.constant dense<0.000000e+00> : vector<8xf32>
    %109 = vector.multi_reduction <add>, %108, %cst_47 [1] : vector<8x8xf32> to vector<8xf32>
    %110 = vector.shape_cast %109 : vector<8xf32> to vector<8x1xf32>
    %111 = tpu.reciprocal %110 {approx = true} : vector<8x1xf32> -> vector<8x1xf32>
    %112 = vector.broadcast %111 : vector<8x1xf32> to vector<8x8xf32>
    %113 = arith.mulf %108, %112 : vector<8x8xf32>
    %cst_48 = arith.constant dense<0.000000e+00> : vector<8x8xf32>
    %114 = tpu.matmul %113, %102, %cst_48 {dimension_numbers = #tpu.dot_dimension_numbers<[1], [0], [0], [1], [0, 0, 1, 1], [], []>} : vector<8x8xf32>, vector<8x8xf32>, vector<8x8xf32> -> vector<8x8xf32>
    %115 = vector.extract_strided_slice %20 {offsets = [0, 0], sizes = [8, 32], strides = [1, 1]} : vector<32x32xf32> to vector<8x32xf32>
    %cst_49 = arith.constant dense<0.000000e+00> : vector<8x32xf32>
    %116 = tpu.matmul %114, %115, %cst_49 {dimension_numbers = #tpu.dot_dimension_numbers<[1], [0], [0], [1], [0, 0, 1, 1], [], []>} : vector<8x8xf32>, vector<8x32xf32>, vector<8x32xf32> -> vector<8x32xf32>
    %117 = arith.addf %99, %116 : vector<8x32xf32>
    %118 = vector.extract_strided_slice %16 {offsets = [8, 8], sizes = [8, 8], strides = [1, 1]} : vector<16x32xf32> to vector<8x8xf32>
    %119 = vector.extract_strided_slice %17 {offsets = [8, 8], sizes = [8, 8], strides = [1, 1]} : vector<16x32xf32> to vector<8x8xf32>
    %120 = vector.extract_strided_slice %18 {offsets = [8, 8], sizes = [8, 8], strides = [1, 1]} : vector<16x32xf32> to vector<8x8xf32>
    %cst_50 = arith.constant dense<0.000000e+00> : vector<8x8xf32>
    %121 = tpu.matmul %118, %119, %cst_50 {dimension_numbers = #tpu.dot_dimension_numbers<[1], [1], [0], [0], [0, 0, 1, 0], [], []>} : vector<8x8xf32>, vector<8x8xf32>, vector<8x8xf32> -> vector<8x8xf32>
    %cst_51 = arith.constant dense<0xFF800000> : vector<8xf32>
    %122 = vector.multi_reduction <maximumf>, %121, %cst_51 [1] : vector<8x8xf32> to vector<8xf32>
    %123 = vector.shape_cast %122 : vector<8xf32> to vector<8x1xf32>
    %124 = vector.broadcast %123 : vector<8x1xf32> to vector<8x8xf32>
    %125 = arith.subf %121, %124 : vector<8x8xf32>
    %126 = math.exp %125 : vector<8x8xf32>
    %cst_52 = arith.constant dense<0.000000e+00> : vector<8xf32>
    %127 = vector.multi_reduction <add>, %126, %cst_52 [1] : vector<8x8xf32> to vector<8xf32>
    %128 = vector.shape_cast %127 : vector<8xf32> to vector<8x1xf32>
    %129 = tpu.reciprocal %128 {approx = true} : vector<8x1xf32> -> vector<8x1xf32>
    %130 = vector.broadcast %129 : vector<8x1xf32> to vector<8x8xf32>
    %131 = arith.mulf %126, %130 : vector<8x8xf32>
    %cst_53 = arith.constant dense<0.000000e+00> : vector<8x8xf32>
    %132 = tpu.matmul %131, %120, %cst_53 {dimension_numbers = #tpu.dot_dimension_numbers<[1], [0], [0], [1], [0, 0, 1, 1], [], []>} : vector<8x8xf32>, vector<8x8xf32>, vector<8x8xf32> -> vector<8x8xf32>
    %133 = vector.extract_strided_slice %20 {offsets = [8, 0], sizes = [8, 32], strides = [1, 1]} : vector<32x32xf32> to vector<8x32xf32>
    %cst_54 = arith.constant dense<0.000000e+00> : vector<8x32xf32>
    %134 = tpu.matmul %132, %133, %cst_54 {dimension_numbers = #tpu.dot_dimension_numbers<[1], [0], [0], [1], [0, 0, 1, 1], [], []>} : vector<8x8xf32>, vector<8x32xf32>, vector<8x32xf32> -> vector<8x32xf32>
    %135 = arith.addf %117, %134 : vector<8x32xf32>
    %136 = vector.extract_strided_slice %16 {offsets = [8, 16], sizes = [8, 8], strides = [1, 1]} : vector<16x32xf32> to vector<8x8xf32>
    %137 = vector.extract_strided_slice %17 {offsets = [8, 16], sizes = [8, 8], strides = [1, 1]} : vector<16x32xf32> to vector<8x8xf32>
    %138 = vector.extract_strided_slice %18 {offsets = [8, 16], sizes = [8, 8], strides = [1, 1]} : vector<16x32xf32> to vector<8x8xf32>
    %cst_55 = arith.constant dense<0.000000e+00> : vector<8x8xf32>
    %139 = tpu.matmul %136, %137, %cst_55 {dimension_numbers = #tpu.dot_dimension_numbers<[1], [1], [0], [0], [0, 0, 1, 0], [], []>} : vector<8x8xf32>, vector<8x8xf32>, vector<8x8xf32> -> vector<8x8xf32>
    %cst_56 = arith.constant dense<0xFF800000> : vector<8xf32>
    %140 = vector.multi_reduction <maximumf>, %139, %cst_56 [1] : vector<8x8xf32> to vector<8xf32>
    %141 = vector.shape_cast %140 : vector<8xf32> to vector<8x1xf32>
    %142 = vector.broadcast %141 : vector<8x1xf32> to vector<8x8xf32>
    %143 = arith.subf %139, %142 : vector<8x8xf32>
    %144 = math.exp %143 : vector<8x8xf32>
    %cst_57 = arith.constant dense<0.000000e+00> : vector<8xf32>
    %145 = vector.multi_reduction <add>, %144, %cst_57 [1] : vector<8x8xf32> to vector<8xf32>
    %146 = vector.shape_cast %145 : vector<8xf32> to vector<8x1xf32>
    %147 = tpu.reciprocal %146 {approx = true} : vector<8x1xf32> -> vector<8x1xf32>
    %148 = vector.broadcast %147 : vector<8x1xf32> to vector<8x8xf32>
    %149 = arith.mulf %144, %148 : vector<8x8xf32>
    %cst_58 = arith.constant dense<0.000000e+00> : vector<8x8xf32>
    %150 = tpu.matmul %149, %138, %cst_58 {dimension_numbers = #tpu.dot_dimension_numbers<[1], [0], [0], [1], [0, 0, 1, 1], [], []>} : vector<8x8xf32>, vector<8x8xf32>, vector<8x8xf32> -> vector<8x8xf32>
    %151 = vector.extract_strided_slice %20 {offsets = [16, 0], sizes = [8, 32], strides = [1, 1]} : vector<32x32xf32> to vector<8x32xf32>
    %cst_59 = arith.constant dense<0.000000e+00> : vector<8x32xf32>
    %152 = tpu.matmul %150, %151, %cst_59 {dimension_numbers = #tpu.dot_dimension_numbers<[1], [0], [0], [1], [0, 0, 1, 1], [], []>} : vector<8x8xf32>, vector<8x32xf32>, vector<8x32xf32> -> vector<8x32xf32>
    %153 = arith.addf %135, %152 : vector<8x32xf32>
    %154 = vector.extract_strided_slice %16 {offsets = [8, 24], sizes = [8, 8], strides = [1, 1]} : vector<16x32xf32> to vector<8x8xf32>
    %155 = vector.extract_strided_slice %17 {offsets = [8, 24], sizes = [8, 8], strides = [1, 1]} : vector<16x32xf32> to vector<8x8xf32>
    %156 = vector.extract_strided_slice %18 {offsets = [8, 24], sizes = [8, 8], strides = [1, 1]} : vector<16x32xf32> to vector<8x8xf32>
    %cst_60 = arith.constant dense<0.000000e+00> : vector<8x8xf32>
    %157 = tpu.matmul %154, %155, %cst_60 {dimension_numbers = #tpu.dot_dimension_numbers<[1], [1], [0], [0], [0, 0, 1, 0], [], []>} : vector<8x8xf32>, vector<8x8xf32>, vector<8x8xf32> -> vector<8x8xf32>
    %cst_61 = arith.constant dense<0xFF800000> : vector<8xf32>
    %158 = vector.multi_reduction <maximumf>, %157, %cst_61 [1] : vector<8x8xf32> to vector<8xf32>
    %159 = vector.shape_cast %158 : vector<8xf32> to vector<8x1xf32>
    %160 = vector.broadcast %159 : vector<8x1xf32> to vector<8x8xf32>
    %161 = arith.subf %157, %160 : vector<8x8xf32>
    %162 = math.exp %161 : vector<8x8xf32>
    %cst_62 = arith.constant dense<0.000000e+00> : vector<8xf32>
    %163 = vector.multi_reduction <add>, %162, %cst_62 [1] : vector<8x8xf32> to vector<8xf32>
    %164 = vector.shape_cast %163 : vector<8xf32> to vector<8x1xf32>
    %165 = tpu.reciprocal %164 {approx = true} : vector<8x1xf32> -> vector<8x1xf32>
    %166 = vector.broadcast %165 : vector<8x1xf32> to vector<8x8xf32>
    %167 = arith.mulf %162, %166 : vector<8x8xf32>
    %cst_63 = arith.constant dense<0.000000e+00> : vector<8x8xf32>
    %168 = tpu.matmul %167, %156, %cst_63 {dimension_numbers = #tpu.dot_dimension_numbers<[1], [0], [0], [1], [0, 0, 1, 1], [], []>} : vector<8x8xf32>, vector<8x8xf32>, vector<8x8xf32> -> vector<8x8xf32>
    %169 = vector.extract_strided_slice %20 {offsets = [24, 0], sizes = [8, 32], strides = [1, 1]} : vector<32x32xf32> to vector<8x32xf32>
    %cst_64 = arith.constant dense<0.000000e+00> : vector<8x32xf32>
    %170 = tpu.matmul %168, %169, %cst_64 {dimension_numbers = #tpu.dot_dimension_numbers<[1], [0], [0], [1], [0, 0, 1, 1], [], []>} : vector<8x8xf32>, vector<8x32xf32>, vector<8x32xf32> -> vector<8x32xf32>
    %171 = arith.addf %153, %170 : vector<8x32xf32>
    %172 = vector.broadcast %22 : vector<1x32xf32> to vector<8x32xf32>
    %173 = arith.addf %171, %172 : vector<8x32xf32>
    %c8 = arith.constant 8 : index
    %c0_65 = arith.constant 0 : index
    %174 = vector.load %arg30[%c8, %c0_65] : memref<16x32xf32, #tpu.memory_space<vmem>>, vector<8x32xf32>
    tpu.vector_store %arg30[%c8, %c0_65], %173 {strides = array<i32>} : memref<16x32xf32, #tpu.memory_space<vmem>>, vector<8x32xf32>,
    %c0_66 = arith.constant 0 : index
    %c0_67 = arith.constant 0 : index
    %175 = vector.load %arg30[%c0_66, %c0_67] : memref<16x32xf32, #tpu.memory_space<vmem>>, vector<16x32xf32>
    %176 = arith.addf %5, %175 : vector<16x32xf32>
    %c0_68 = arith.constant 0 : index
    %c0_69 = arith.constant 0 : index
    %c0_70 = arith.constant 0 : index
    %177 = vector.load %arg9[%c0_68, %c0_69, %c0_70] : memref<2x1x32xf32, #tpu.memory_space<vmem>>, vector<1x1x32xf32>
    %178 = vector.shape_cast %177 : vector<1x1x32xf32> to vector<1x32xf32>
    %c0_71 = arith.constant 0 : index
    %c0_72 = arith.constant 0 : index
    %c0_73 = arith.constant 0 : index
    %179 = vector.load %arg10[%c0_71, %c0_72, %c0_73] : memref<2x1x32xf32, #tpu.memory_space<vmem>>, vector<1x1x32xf32>
    %180 = vector.shape_cast %179 : vector<1x1x32xf32> to vector<1x32xf32>
    %cst_74 = arith.constant dense<0.000000e+00> : vector<16xf32>
    %181 = vector.multi_reduction <add>, %176, %cst_74 [1] : vector<16x32xf32> to vector<16xf32>
    %182 = vector.shape_cast %181 : vector<16xf32> to vector<16x1xf32>
    %cst_75 = arith.constant 3.200000e+01 : f32
    %183 = vector.broadcast %cst_75 : f32 to vector<16x1xf32>
    %184 = arith.divf %182, %183 : vector<16x1xf32>
    %185 = vector.broadcast %184 : vector<16x1xf32> to vector<16x32xf32>
    %186 = arith.subf %176, %185 : vector<16x32xf32>
    %187 = arith.mulf %186, %186 : vector<16x32xf32>
    %cst_76 = arith.constant dense<0.000000e+00> : vector<16xf32>
    %188 = vector.multi_reduction <add>, %187, %cst_76 [1] : vector<16x32xf32> to vector<16xf32>
    %189 = vector.shape_cast %188 : vector<16xf32> to vector<16x1xf32>
    %cst_77 = arith.constant 3.200000e+01 : f32
    %190 = vector.broadcast %cst_77 : f32 to vector<16x1xf32>
    %191 = arith.divf %189, %190 : vector<16x1xf32>
    %cst_78 = arith.constant 9.99999974E-6 : f32
    %192 = vector.broadcast %cst_78 : f32 to vector<16x1xf32>
    %193 = arith.addf %191, %192 : vector<16x1xf32>
    %194 = math.rsqrt %193 : vector<16x1xf32>
    %195 = vector.broadcast %194 : vector<16x1xf32> to vector<16x32xf32>
    %196 = arith.mulf %186, %195 : vector<16x32xf32>
    %197 = vector.broadcast %178 : vector<1x32xf32> to vector<16x32xf32>
    %198 = arith.mulf %196, %197 : vector<16x32xf32>
    %199 = vector.broadcast %180 : vector<1x32xf32> to vector<16x32xf32>
    %200 = arith.addf %198, %199 : vector<16x32xf32>
    %c0_79 = arith.constant 0 : index
    %c0_80 = arith.constant 0 : index
    %c0_81 = arith.constant 0 : index
    %201 = vector.load %arg11[%c0_79, %c0_80, %c0_81] : memref<2x32x32xf32, #tpu.memory_space<vmem>>, vector<1x32x32xf32>
    %202 = vector.shape_cast %201 : vector<1x32x32xf32> to vector<32x32xf32>
    %cst_82 = arith.constant dense<0.000000e+00> : vector<16x32xf32>
    %203 = tpu.matmul %200, %202, %cst_82 {dimension_numbers = #tpu.dot_dimension_numbers<[1], [0], [0], [1], [0, 0, 1, 1], [], []>} : vector<16x32xf32>, vector<32x32xf32>, vector<16x32xf32> -> vector<16x32xf32>
    %c0_83 = arith.constant 0 : index
    %c0_84 = arith.constant 0 : index
    %c0_85 = arith.constant 0 : index
    %204 = vector.load %arg12[%c0_83, %c0_84, %c0_85] : memref<2x1x32xf32, #tpu.memory_space<vmem>>, vector<1x1x32xf32>
    %205 = vector.shape_cast %204 : vector<1x1x32xf32> to vector<1x32xf32>
    %206 = vector.broadcast %205 : vector<1x32xf32> to vector<16x32xf32>
    %207 = arith.addf %203, %206 : vector<16x32xf32>
    %cst_86 = arith.constant 0.000000e+00 : f32
    %208 = vector.broadcast %cst_86 : f32 to vector<16x32xf32>
    %209 = arith.maximumf %207, %208 : vector<16x32xf32>
    %c0_87 = arith.constant 0 : index
    %c0_88 = arith.constant 0 : index
    %c0_89 = arith.constant 0 : index
    %210 = vector.load %arg13[%c0_87, %c0_88, %c0_89] : memref<2x32x32xf32, #tpu.memory_space<vmem>>, vector<1x32x32xf32>
    %211 = vector.shape_cast %210 : vector<1x32x32xf32> to vector<32x32xf32>
    %cst_90 = arith.constant dense<0.000000e+00> : vector<16x32xf32>
    %212 = tpu.matmul %209, %211, %cst_90 {dimension_numbers = #tpu.dot_dimension_numbers<[1], [0], [0], [1], [0, 0, 1, 1], [], []>} : vector<16x32xf32>, vector<32x32xf32>, vector<16x32xf32> -> vector<16x32xf32>
    %c0_91 = arith.constant 0 : index
    %c0_92 = arith.constant 0 : index
    %c0_93 = arith.constant 0 : index
    %213 = vector.load %arg14[%c0_91, %c0_92, %c0_93] : memref<2x1x32xf32, #tpu.memory_space<vmem>>, vector<1x1x32xf32>
    %214 = vector.shape_cast %213 : vector<1x1x32xf32> to vector<1x32xf32>
    %215 = vector.broadcast %214 : vector<1x32xf32> to vector<16x32xf32>
    %216 = arith.addf %212, %215 : vector<16x32xf32>
    %217 = arith.addf %200, %216 : vector<16x32xf32>
    %c0_94 = arith.constant 0 : index
    %c0_95 = arith.constant 0 : index
    %c0_96 = arith.constant 0 : index
    %218 = vector.load %arg15[%c0_94, %c0_95, %c0_96] : memref<2x1x32xf32, #tpu.memory_space<vmem>>, vector<1x1x32xf32>
    %219 = vector.shape_cast %218 : vector<1x1x32xf32> to vector<1x32xf32>
    %c0_97 = arith.constant 0 : index
    %c0_98 = arith.constant 0 : index
    %c0_99 = arith.constant 0 : index
    %220 = vector.load %arg16[%c0_97, %c0_98, %c0_99] : memref<2x1x32xf32, #tpu.memory_space<vmem>>, vector<1x1x32xf32>
    %221 = vector.shape_cast %220 : vector<1x1x32xf32> to vector<1x32xf32>
    %cst_100 = arith.constant dense<0.000000e+00> : vector<16xf32>
    %222 = vector.multi_reduction <add>, %217, %cst_100 [1] : vector<16x32xf32> to vector<16xf32>
    %223 = vector.shape_cast %222 : vector<16xf32> to vector<16x1xf32>
    %cst_101 = arith.constant 3.200000e+01 : f32
    %224 = vector.broadcast %cst_101 : f32 to vector<16x1xf32>
    %225 = arith.divf %223, %224 : vector<16x1xf32>
    %226 = vector.broadcast %225 : vector<16x1xf32> to vector<16x32xf32>
    %227 = arith.subf %217, %226 : vector<16x32xf32>
    %228 = arith.mulf %227, %227 : vector<16x32xf32>
    %cst_102 = arith.constant dense<0.000000e+00> : vector<16xf32>
    %229 = vector.multi_reduction <add>, %228, %cst_102 [1] : vector<16x32xf32> to vector<16xf32>
    %230 = vector.shape_cast %229 : vector<16xf32> to vector<16x1xf32>
    %cst_103 = arith.constant 3.200000e+01 : f32
    %231 = vector.broadcast %cst_103 : f32 to vector<16x1xf32>
    %232 = arith.divf %230, %231 : vector<16x1xf32>
    %cst_104 = arith.constant 9.99999974E-6 : f32
    %233 = vector.broadcast %cst_104 : f32 to vector<16x1xf32>
    %234 = arith.addf %232, %233 : vector<16x1xf32>
    %235 = math.rsqrt %234 : vector<16x1xf32>
    %236 = vector.broadcast %235 : vector<16x1xf32> to vector<16x32xf32>
    %237 = arith.mulf %227, %236 : vector<16x32xf32>
    %238 = vector.broadcast %219 : vector<1x32xf32> to vector<16x32xf32>
    %239 = arith.mulf %237, %238 : vector<16x32xf32>
    %240 = vector.broadcast %221 : vector<1x32xf32> to vector<16x32xf32>
    %241 = arith.addf %239, %240 : vector<16x32xf32>
    %cst_105 = arith.constant dense<0.000000e+00> : vector<16x32xf32>
    %242 = tpu.matmul %241, %6, %cst_105 {dimension_numbers = #tpu.dot_dimension_numbers<[1], [0], [0], [1], [0, 0, 1, 1], [], []>} : vector<16x32xf32>, vector<32x32xf32>, vector<16x32xf32> -> vector<16x32xf32>
    %c0_106 = arith.constant 0 : index
    %c0_107 = arith.constant 0 : index
    %243 = vector.load %arg17[%c0_106, %c0_107] : memref<32x96xf32, #tpu.memory_space<vmem>>, vector<32x96xf32>
    %cst_108 = arith.constant dense<0.000000e+00> : vector<16x96xf32>
    %244 = tpu.matmul %242, %243, %cst_108 {dimension_numbers = #tpu.dot_dimension_numbers<[1], [0], [0], [1], [0, 0, 1, 1], [], []>} : vector<16x32xf32>, vector<32x96xf32>, vector<16x96xf32> -> vector<16x96xf32>
    %c0_109 = arith.constant 0 : index
    %c0_110 = arith.constant 0 : index
    %245 = vector.load %arg18[%c0_109, %c0_110] : memref<1x96xf32, #tpu.memory_space<vmem>>, vector<1x96xf32>
    %246 = vector.broadcast %245 : vector<1x96xf32> to vector<16x96xf32>
    %247 = arith.addf %244, %246 : vector<16x96xf32>
    %c0_111 = arith.constant 0 : index
    %c0_112 = arith.constant 0 : index
    %248 = vector.load %arg19[%c0_111, %c0_112] : memref<32x64xf32, #tpu.memory_space<vmem>>, vector<32x64xf32>
    %cst_113 = arith.constant dense<0.000000e+00> : vector<16x64xf32>
    %249 = tpu.matmul %241, %248, %cst_113 {dimension_numbers = #tpu.dot_dimension_numbers<[1], [0], [0], [1], [0, 0, 1, 1], [], []>} : vector<16x32xf32>, vector<32x64xf32>, vector<16x64xf32> -> vector<16x64xf32>
    %c0_114 = arith.constant 0 : index
    %c0_115 = arith.constant 0 : index
    %250 = vector.load %arg20[%c0_114, %c0_115] : memref<1x64xf32, #tpu.memory_space<vmem>>, vector<1x64xf32>
    %251 = vector.broadcast %250 : vector<1x64xf32> to vector<16x64xf32>
    %252 = arith.addf %249, %251 : vector<16x64xf32>
    %253 = vector.extract_strided_slice %247 {offsets = [0, 0], sizes = [16, 32], strides = [1, 1]} : vector<16x96xf32> to vector<16x32xf32>
    %254 = vector.extract_strided_slice %252 {offsets = [0, 0], sizes = [16, 32], strides = [1, 1]} : vector<16x64xf32> to vector<16x32xf32>
    %255 = arith.addf %253, %254 : vector<16x32xf32>
    %cst_116 = arith.constant 0.000000e+00 : f32
    %256 = vector.broadcast %cst_116 : f32 to vector<16x32xf32>
    %257 = arith.subf %256, %255 : vector<16x32xf32>
    %258 = math.exp %257 : vector<16x32xf32>
    %cst_117 = arith.constant 1.000000e+00 : f32
    %259 = vector.broadcast %cst_117 : f32 to vector<16x32xf32>
    %260 = arith.addf %259, %258 : vector<16x32xf32>
    %cst_118 = arith.constant 1.000000e+00 : f32
    %261 = vector.broadcast %cst_118 : f32 to vector<16x32xf32>
    %262 = arith.divf %261, %260 : vector<16x32xf32>
    %263 = vector.extract_strided_slice %247 {offsets = [0, 32], sizes = [16, 32], strides = [1, 1]} : vector<16x96xf32> to vector<16x32xf32>
    %264 = vector.extract_strided_slice %252 {offsets = [0, 32], sizes = [16, 32], strides = [1, 1]} : vector<16x64xf32> to vector<16x32xf32>
    %265 = arith.addf %263, %264 : vector<16x32xf32>
    %cst_119 = arith.constant 0.000000e+00 : f32
    %266 = vector.broadcast %cst_119 : f32 to vector<16x32xf32>
    %267 = arith.subf %266, %265 : vector<16x32xf32>
    %268 = math.exp %267 : vector<16x32xf32>
    %cst_120 = arith.constant 1.000000e+00 : f32
    %269 = vector.broadcast %cst_120 : f32 to vector<16x32xf32>
    %270 = arith.addf %269, %268 : vector<16x32xf32>
    %cst_121 = arith.constant 1.000000e+00 : f32
    %271 = vector.broadcast %cst_121 : f32 to vector<16x32xf32>
    %272 = arith.divf %271, %270 : vector<16x32xf32>
    %273 = vector.extract_strided_slice %247 {offsets = [0, 64], sizes = [16, 32], strides = [1, 1]} : vector<16x96xf32> to vector<16x32xf32>
    %274 = arith.mulf %272, %241 : vector<16x32xf32>
    %c0_122 = arith.constant 0 : index
    %c0_123 = arith.constant 0 : index
    %275 = vector.load %arg21[%c0_122, %c0_123] : memref<32x32xf32, #tpu.memory_space<vmem>>, vector<32x32xf32>
    %cst_124 = arith.constant dense<0.000000e+00> : vector<16x32xf32>
    %276 = tpu.matmul %274, %275, %cst_124 {dimension_numbers = #tpu.dot_dimension_numbers<[1], [0], [0], [1], [0, 0, 1, 1], [], []>} : vector<16x32xf32>, vector<32x32xf32>, vector<16x32xf32> -> vector<16x32xf32>
    %277 = arith.addf %273, %276 : vector<16x32xf32>
    %c0_125 = arith.constant 0 : index
    %c0_126 = arith.constant 0 : index
    %278 = vector.load %arg22[%c0_125, %c0_126] : memref<1x32xf32, #tpu.memory_space<vmem>>, vector<1x32xf32>
    %279 = vector.broadcast %278 : vector<1x32xf32> to vector<16x32xf32>
    %280 = arith.addf %277, %279 : vector<16x32xf32>
    %cst_127 = arith.constant 0.000000e+00 : f32
    %281 = vector.broadcast %cst_127 : f32 to vector<16x32xf32>
    %282 = arith.maximumf %280, %281 : vector<16x32xf32>
    %283 = arith.mulf %282, %262 : vector<16x32xf32>
    %cst_128 = arith.constant 1.000000e+00 : f32
    %284 = vector.broadcast %cst_128 : f32 to vector<16x32xf32>
    %285 = arith.subf %284, %262 : vector<16x32xf32>
    %286 = arith.mulf %241, %285 : vector<16x32xf32>
    %287 = arith.addf %283, %286 : vector<16x32xf32>
    %c1 = arith.constant 1 : index
    %c0_129 = arith.constant 0 : index
    %c0_130 = arith.constant 0 : index
    %288 = vector.load %arg5[%c1, %c0_129, %c0_130] : memref<2x32x96xf32, #tpu.memory_space<vmem>>, vector<1x32x96xf32>
    %289 = vector.shape_cast %288 : vector<1x32x96xf32> to vector<32x96xf32>
    %cst_131 = arith.constant dense<0.000000e+00> : vector<16x96xf32>
    %290 = tpu.matmul %287, %289, %cst_131 {dimension_numbers = #tpu.dot_dimension_numbers<[1], [0], [0], [1], [0, 0, 1, 1], [], []>} : vector<16x32xf32>, vector<32x96xf32>, vector<16x96xf32> -> vector<16x96xf32>
    %c1_132 = arith.constant 1 : index
    %c0_133 = arith.constant 0 : index
    %c0_134 = arith.constant 0 : index
    %291 = vector.load %arg6[%c1_132, %c0_133, %c0_134] : memref<2x1x96xf32, #tpu.memory_space<vmem>>, vector<1x1x96xf32>
    %292 = vector.shape_cast %291 : vector<1x1x96xf32> to vector<1x96xf32>
    %293 = vector.broadcast %292 : vector<1x96xf32> to vector<16x96xf32>
    %294 = arith.addf %290, %293 : vector<16x96xf32>
    %295 = vector.extract_strided_slice %294 {offsets = [0, 0], sizes = [16, 32], strides = [1, 1]} : vector<16x96xf32> to vector<16x32xf32>
    %cst_135 = arith.constant 0.353553385 : f32
    %296 = vector.broadcast %cst_135 : f32 to vector<16x32xf32>
    %297 = arith.mulf %295, %296 : vector<16x32xf32>
    %298 = vector.extract_strided_slice %294 {offsets = [0, 32], sizes = [16, 32], strides = [1, 1]} : vector<16x96xf32> to vector<16x32xf32>
    %299 = vector.extract_strided_slice %294 {offsets = [0, 64], sizes = [16, 32], strides = [1, 1]} : vector<16x96xf32> to vector<16x32xf32>
    %c1_136 = arith.constant 1 : index
    %c0_137 = arith.constant 0 : index
    %c0_138 = arith.constant 0 : index
    %300 = vector.load %arg7[%c1_136, %c0_137, %c0_138] : memref<2x32x32xf32, #tpu.memory_space<vmem>>, vector<1x32x32xf32>
    %301 = vector.shape_cast %300 : vector<1x32x32xf32> to vector<32x32xf32>
    %c1_139 = arith.constant 1 : index
    %c0_140 = arith.constant 0 : index
    %c0_141 = arith.constant 0 : index
    %302 = vector.load %arg8[%c1_139, %c0_140, %c0_141] : memref<2x1x32xf32, #tpu.memory_space<vmem>>, vector<1x1x32xf32>
    %303 = vector.shape_cast %302 : vector<1x1x32xf32> to vector<1x32xf32>
    %cst_142 = arith.constant 0.000000e+00 : f32
    %304 = vector.broadcast %cst_142 : f32 to vector<8x32xf32>
    %305 = vector.extract_strided_slice %297 {offsets = [0, 0], sizes = [8, 8], strides = [1, 1]} : vector<16x32xf32> to vector<8x8xf32>
    %306 = vector.extract_strided_slice %298 {offsets = [0, 0], sizes = [8, 8], strides = [1, 1]} : vector<16x32xf32> to vector<8x8xf32>
    %307 = vector.extract_strided_slice %299 {offsets = [0, 0], sizes = [8, 8], strides = [1, 1]} : vector<16x32xf32> to vector<8x8xf32>
    %cst_143 = arith.constant dense<0.000000e+00> : vector<8x8xf32>
    %308 = tpu.matmul %305, %306, %cst_143 {dimension_numbers = #tpu.dot_dimension_numbers<[1], [1], [0], [0], [0, 0, 1, 0], [], []>} : vector<8x8xf32>, vector<8x8xf32>, vector<8x8xf32> -> vector<8x8xf32>
    %cst_144 = arith.constant dense<0xFF800000> : vector<8xf32>
    %309 = vector.multi_reduction <maximumf>, %308, %cst_144 [1] : vector<8x8xf32> to vector<8xf32>
    %310 = vector.shape_cast %309 : vector<8xf32> to vector<8x1xf32>
    %311 = vector.broadcast %310 : vector<8x1xf32> to vector<8x8xf32>
    %312 = arith.subf %308, %311 : vector<8x8xf32>
    %313 = math.exp %312 : vector<8x8xf32>
    %cst_145 = arith.constant dense<0.000000e+00> : vector<8xf32>
    %314 = vector.multi_reduction <add>, %313, %cst_145 [1] : vector<8x8xf32> to vector<8xf32>
    %315 = vector.shape_cast %314 : vector<8xf32> to vector<8x1xf32>
    %316 = tpu.reciprocal %315 {approx = true} : vector<8x1xf32> -> vector<8x1xf32>
    %317 = vector.broadcast %316 : vector<8x1xf32> to vector<8x8xf32>
    %318 = arith.mulf %313, %317 : vector<8x8xf32>
    %cst_146 = arith.constant dense<0.000000e+00> : vector<8x8xf32>
    %319 = tpu.matmul %318, %307, %cst_146 {dimension_numbers = #tpu.dot_dimension_numbers<[1], [0], [0], [1], [0, 0, 1, 1], [], []>} : vector<8x8xf32>, vector<8x8xf32>, vector<8x8xf32> -> vector<8x8xf32>
    %320 = vector.extract_strided_slice %301 {offsets = [0, 0], sizes = [8, 32], strides = [1, 1]} : vector<32x32xf32> to vector<8x32xf32>
    %cst_147 = arith.constant dense<0.000000e+00> : vector<8x32xf32>
    %321 = tpu.matmul %319, %320, %cst_147 {dimension_numbers = #tpu.dot_dimension_numbers<[1], [0], [0], [1], [0, 0, 1, 1], [], []>} : vector<8x8xf32>, vector<8x32xf32>, vector<8x32xf32> -> vector<8x32xf32>
    %322 = arith.addf %304, %321 : vector<8x32xf32>
    %323 = vector.extract_strided_slice %297 {offsets = [0, 8], sizes = [8, 8], strides = [1, 1]} : vector<16x32xf32> to vector<8x8xf32>
    %324 = vector.extract_strided_slice %298 {offsets = [0, 8], sizes = [8, 8], strides = [1, 1]} : vector<16x32xf32> to vector<8x8xf32>
    %325 = vector.extract_strided_slice %299 {offsets = [0, 8], sizes = [8, 8], strides = [1, 1]} : vector<16x32xf32> to vector<8x8xf32>
    %cst_148 = arith.constant dense<0.000000e+00> : vector<8x8xf32>
    %326 = tpu.matmul %323, %324, %cst_148 {dimension_numbers = #tpu.dot_dimension_numbers<[1], [1], [0], [0], [0, 0, 1, 0], [], []>} : vector<8x8xf32>, vector<8x8xf32>, vector<8x8xf32> -> vector<8x8xf32>
    %cst_149 = arith.constant dense<0xFF800000> : vector<8xf32>
    %327 = vector.multi_reduction <maximumf>, %326, %cst_149 [1] : vector<8x8xf32> to vector<8xf32>
    %328 = vector.shape_cast %327 : vector<8xf32> to vector<8x1xf32>
    %329 = vector.broadcast %328 : vector<8x1xf32> to vector<8x8xf32>
    %330 = arith.subf %326, %329 : vector<8x8xf32>
    %331 = math.exp %330 : vector<8x8xf32>
    %cst_150 = arith.constant dense<0.000000e+00> : vector<8xf32>
    %332 = vector.multi_reduction <add>, %331, %cst_150 [1] : vector<8x8xf32> to vector<8xf32>
    %333 = vector.shape_cast %332 : vector<8xf32> to vector<8x1xf32>
    %334 = tpu.reciprocal %333 {approx = true} : vector<8x1xf32> -> vector<8x1xf32>
    %335 = vector.broadcast %334 : vector<8x1xf32> to vector<8x8xf32>
    %336 = arith.mulf %331, %335 : vector<8x8xf32>
    %cst_151 = arith.constant dense<0.000000e+00> : vector<8x8xf32>
    %337 = tpu.matmul %336, %325, %cst_151 {dimension_numbers = #tpu.dot_dimension_numbers<[1], [0], [0], [1], [0, 0, 1, 1], [], []>} : vector<8x8xf32>, vector<8x8xf32>, vector<8x8xf32> -> vector<8x8xf32>
    %338 = vector.extract_strided_slice %301 {offsets = [8, 0], sizes = [8, 32], strides = [1, 1]} : vector<32x32xf32> to vector<8x32xf32>
    %cst_152 = arith.constant dense<0.000000e+00> : vector<8x32xf32>
    %339 = tpu.matmul %337, %338, %cst_152 {dimension_numbers = #tpu.dot_dimension_numbers<[1], [0], [0], [1], [0, 0, 1, 1], [], []>} : vector<8x8xf32>, vector<8x32xf32>, vector<8x32xf32> -> vector<8x32xf32>
    %340 = arith.addf %322, %339 : vector<8x32xf32>
    %341 = vector.extract_strided_slice %297 {offsets = [0, 16], sizes = [8, 8], strides = [1, 1]} : vector<16x32xf32> to vector<8x8xf32>
    %342 = vector.extract_strided_slice %298 {offsets = [0, 16], sizes = [8, 8], strides = [1, 1]} : vector<16x32xf32> to vector<8x8xf32>
    %343 = vector.extract_strided_slice %299 {offsets = [0, 16], sizes = [8, 8], strides = [1, 1]} : vector<16x32xf32> to vector<8x8xf32>
    %cst_153 = arith.constant dense<0.000000e+00> : vector<8x8xf32>
    %344 = tpu.matmul %341, %342, %cst_153 {dimension_numbers = #tpu.dot_dimension_numbers<[1], [1], [0], [0], [0, 0, 1, 0], [], []>} : vector<8x8xf32>, vector<8x8xf32>, vector<8x8xf32> -> vector<8x8xf32>
    %cst_154 = arith.constant dense<0xFF800000> : vector<8xf32>
    %345 = vector.multi_reduction <maximumf>, %344, %cst_154 [1] : vector<8x8xf32> to vector<8xf32>
    %346 = vector.shape_cast %345 : vector<8xf32> to vector<8x1xf32>
    %347 = vector.broadcast %346 : vector<8x1xf32> to vector<8x8xf32>
    %348 = arith.subf %344, %347 : vector<8x8xf32>
    %349 = math.exp %348 : vector<8x8xf32>
    %cst_155 = arith.constant dense<0.000000e+00> : vector<8xf32>
    %350 = vector.multi_reduction <add>, %349, %cst_155 [1] : vector<8x8xf32> to vector<8xf32>
    %351 = vector.shape_cast %350 : vector<8xf32> to vector<8x1xf32>
    %352 = tpu.reciprocal %351 {approx = true} : vector<8x1xf32> -> vector<8x1xf32>
    %353 = vector.broadcast %352 : vector<8x1xf32> to vector<8x8xf32>
    %354 = arith.mulf %349, %353 : vector<8x8xf32>
    %cst_156 = arith.constant dense<0.000000e+00> : vector<8x8xf32>
    %355 = tpu.matmul %354, %343, %cst_156 {dimension_numbers = #tpu.dot_dimension_numbers<[1], [0], [0], [1], [0, 0, 1, 1], [], []>} : vector<8x8xf32>, vector<8x8xf32>, vector<8x8xf32> -> vector<8x8xf32>
    %356 = vector.extract_strided_slice %301 {offsets = [16, 0], sizes = [8, 32], strides = [1, 1]} : vector<32x32xf32> to vector<8x32xf32>
    %cst_157 = arith.constant dense<0.000000e+00> : vector<8x32xf32>
    %357 = tpu.matmul %355, %356, %cst_157 {dimension_numbers = #tpu.dot_dimension_numbers<[1], [0], [0], [1], [0, 0, 1, 1], [], []>} : vector<8x8xf32>, vector<8x32xf32>, vector<8x32xf32> -> vector<8x32xf32>
    %358 = arith.addf %340, %357 : vector<8x32xf32>
    %359 = vector.extract_strided_slice %297 {offsets = [0, 24], sizes = [8, 8], strides = [1, 1]} : vector<16x32xf32> to vector<8x8xf32>
    %360 = vector.extract_strided_slice %298 {offsets = [0, 24], sizes = [8, 8], strides = [1, 1]} : vector<16x32xf32> to vector<8x8xf32>
    %361 = vector.extract_strided_slice %299 {offsets = [0, 24], sizes = [8, 8], strides = [1, 1]} : vector<16x32xf32> to vector<8x8xf32>
    %cst_158 = arith.constant dense<0.000000e+00> : vector<8x8xf32>
    %362 = tpu.matmul %359, %360, %cst_158 {dimension_numbers = #tpu.dot_dimension_numbers<[1], [1], [0], [0], [0, 0, 1, 0], [], []>} : vector<8x8xf32>, vector<8x8xf32>, vector<8x8xf32> -> vector<8x8xf32>
    %cst_159 = arith.constant dense<0xFF800000> : vector<8xf32>
    %363 = vector.multi_reduction <maximumf>, %362, %cst_159 [1] : vector<8x8xf32> to vector<8xf32>
    %364 = vector.shape_cast %363 : vector<8xf32> to vector<8x1xf32>
    %365 = vector.broadcast %364 : vector<8x1xf32> to vector<8x8xf32>
    %366 = arith.subf %362, %365 : vector<8x8xf32>
    %367 = math.exp %366 : vector<8x8xf32>
    %cst_160 = arith.constant dense<0.000000e+00> : vector<8xf32>
    %368 = vector.multi_reduction <add>, %367, %cst_160 [1] : vector<8x8xf32> to vector<8xf32>
    %369 = vector.shape_cast %368 : vector<8xf32> to vector<8x1xf32>
    %370 = tpu.reciprocal %369 {approx = true} : vector<8x1xf32> -> vector<8x1xf32>
    %371 = vector.broadcast %370 : vector<8x1xf32> to vector<8x8xf32>
    %372 = arith.mulf %367, %371 : vector<8x8xf32>
    %cst_161 = arith.constant dense<0.000000e+00> : vector<8x8xf32>
    %373 = tpu.matmul %372, %361, %cst_161 {dimension_numbers = #tpu.dot_dimension_numbers<[1], [0], [0], [1], [0, 0, 1, 1], [], []>} : vector<8x8xf32>, vector<8x8xf32>, vector<8x8xf32> -> vector<8x8xf32>
    %374 = vector.extract_strided_slice %301 {offsets = [24, 0], sizes = [8, 32], strides = [1, 1]} : vector<32x32xf32> to vector<8x32xf32>
    %cst_162 = arith.constant dense<0.000000e+00> : vector<8x32xf32>
    %375 = tpu.matmul %373, %374, %cst_162 {dimension_numbers = #tpu.dot_dimension_numbers<[1], [0], [0], [1], [0, 0, 1, 1], [], []>} : vector<8x8xf32>, vector<8x32xf32>, vector<8x32xf32> -> vector<8x32xf32>
    %376 = arith.addf %358, %375 : vector<8x32xf32>
    %377 = vector.broadcast %303 : vector<1x32xf32> to vector<8x32xf32>
    %378 = arith.addf %376, %377 : vector<8x32xf32>
    %c0_163 = arith.constant 0 : index
    %c0_164 = arith.constant 0 : index
    %379 = vector.load %arg30[%c0_163, %c0_164] : memref<16x32xf32, #tpu.memory_space<vmem>>, vector<8x32xf32>
    tpu.vector_store %arg30[%c0_163, %c0_164], %378 {strides = array<i32>} : memref<16x32xf32, #tpu.memory_space<vmem>>, vector<8x32xf32>,
    %cst_165 = arith.constant 0.000000e+00 : f32
    %380 = vector.broadcast %cst_165 : f32 to vector<8x32xf32>
    %381 = vector.extract_strided_slice %297 {offsets = [8, 0], sizes = [8, 8], strides = [1, 1]} : vector<16x32xf32> to vector<8x8xf32>
    %382 = vector.extract_strided_slice %298 {offsets = [8, 0], sizes = [8, 8], strides = [1, 1]} : vector<16x32xf32> to vector<8x8xf32>
    %383 = vector.extract_strided_slice %299 {offsets = [8, 0], sizes = [8, 8], strides = [1, 1]} : vector<16x32xf32> to vector<8x8xf32>
    %cst_166 = arith.constant dense<0.000000e+00> : vector<8x8xf32>
    %384 = tpu.matmul %381, %382, %cst_166 {dimension_numbers = #tpu.dot_dimension_numbers<[1], [1], [0], [0], [0, 0, 1, 0], [], []>} : vector<8x8xf32>, vector<8x8xf32>, vector<8x8xf32> -> vector<8x8xf32>
    %cst_167 = arith.constant dense<0xFF800000> : vector<8xf32>
    %385 = vector.multi_reduction <maximumf>, %384, %cst_167 [1] : vector<8x8xf32> to vector<8xf32>
    %386 = vector.shape_cast %385 : vector<8xf32> to vector<8x1xf32>
    %387 = vector.broadcast %386 : vector<8x1xf32> to vector<8x8xf32>
    %388 = arith.subf %384, %387 : vector<8x8xf32>
    %389 = math.exp %388 : vector<8x8xf32>
    %cst_168 = arith.constant dense<0.000000e+00> : vector<8xf32>
    %390 = vector.multi_reduction <add>, %389, %cst_168 [1] : vector<8x8xf32> to vector<8xf32>
    %391 = vector.shape_cast %390 : vector<8xf32> to vector<8x1xf32>
    %392 = tpu.reciprocal %391 {approx = true} : vector<8x1xf32> -> vector<8x1xf32>
    %393 = vector.broadcast %392 : vector<8x1xf32> to vector<8x8xf32>
    %394 = arith.mulf %389, %393 : vector<8x8xf32>
    %cst_169 = arith.constant dense<0.000000e+00> : vector<8x8xf32>
    %395 = tpu.matmul %394, %383, %cst_169 {dimension_numbers = #tpu.dot_dimension_numbers<[1], [0], [0], [1], [0, 0, 1, 1], [], []>} : vector<8x8xf32>, vector<8x8xf32>, vector<8x8xf32> -> vector<8x8xf32>
    %396 = vector.extract_strided_slice %301 {offsets = [0, 0], sizes = [8, 32], strides = [1, 1]} : vector<32x32xf32> to vector<8x32xf32>
    %cst_170 = arith.constant dense<0.000000e+00> : vector<8x32xf32>
    %397 = tpu.matmul %395, %396, %cst_170 {dimension_numbers = #tpu.dot_dimension_numbers<[1], [0], [0], [1], [0, 0, 1, 1], [], []>} : vector<8x8xf32>, vector<8x32xf32>, vector<8x32xf32> -> vector<8x32xf32>
    %398 = arith.addf %380, %397 : vector<8x32xf32>
    %399 = vector.extract_strided_slice %297 {offsets = [8, 8], sizes = [8, 8], strides = [1, 1]} : vector<16x32xf32> to vector<8x8xf32>
    %400 = vector.extract_strided_slice %298 {offsets = [8, 8], sizes = [8, 8], strides = [1, 1]} : vector<16x32xf32> to vector<8x8xf32>
    %401 = vector.extract_strided_slice %299 {offsets = [8, 8], sizes = [8, 8], strides = [1, 1]} : vector<16x32xf32> to vector<8x8xf32>
    %cst_171 = arith.constant dense<0.000000e+00> : vector<8x8xf32>
    %402 = tpu.matmul %399, %400, %cst_171 {dimension_numbers = #tpu.dot_dimension_numbers<[1], [1], [0], [0], [0, 0, 1, 0], [], []>} : vector<8x8xf32>, vector<8x8xf32>, vector<8x8xf32> -> vector<8x8xf32>
    %cst_172 = arith.constant dense<0xFF800000> : vector<8xf32>
    %403 = vector.multi_reduction <maximumf>, %402, %cst_172 [1] : vector<8x8xf32> to vector<8xf32>
    %404 = vector.shape_cast %403 : vector<8xf32> to vector<8x1xf32>
    %405 = vector.broadcast %404 : vector<8x1xf32> to vector<8x8xf32>
    %406 = arith.subf %402, %405 : vector<8x8xf32>
    %407 = math.exp %406 : vector<8x8xf32>
    %cst_173 = arith.constant dense<0.000000e+00> : vector<8xf32>
    %408 = vector.multi_reduction <add>, %407, %cst_173 [1] : vector<8x8xf32> to vector<8xf32>
    %409 = vector.shape_cast %408 : vector<8xf32> to vector<8x1xf32>
    %410 = tpu.reciprocal %409 {approx = true} : vector<8x1xf32> -> vector<8x1xf32>
    %411 = vector.broadcast %410 : vector<8x1xf32> to vector<8x8xf32>
    %412 = arith.mulf %407, %411 : vector<8x8xf32>
    %cst_174 = arith.constant dense<0.000000e+00> : vector<8x8xf32>
    %413 = tpu.matmul %412, %401, %cst_174 {dimension_numbers = #tpu.dot_dimension_numbers<[1], [0], [0], [1], [0, 0, 1, 1], [], []>} : vector<8x8xf32>, vector<8x8xf32>, vector<8x8xf32> -> vector<8x8xf32>
    %414 = vector.extract_strided_slice %301 {offsets = [8, 0], sizes = [8, 32], strides = [1, 1]} : vector<32x32xf32> to vector<8x32xf32>
    %cst_175 = arith.constant dense<0.000000e+00> : vector<8x32xf32>
    %415 = tpu.matmul %413, %414, %cst_175 {dimension_numbers = #tpu.dot_dimension_numbers<[1], [0], [0], [1], [0, 0, 1, 1], [], []>} : vector<8x8xf32>, vector<8x32xf32>, vector<8x32xf32> -> vector<8x32xf32>
    %416 = arith.addf %398, %415 : vector<8x32xf32>
    %417 = vector.extract_strided_slice %297 {offsets = [8, 16], sizes = [8, 8], strides = [1, 1]} : vector<16x32xf32> to vector<8x8xf32>
    %418 = vector.extract_strided_slice %298 {offsets = [8, 16], sizes = [8, 8], strides = [1, 1]} : vector<16x32xf32> to vector<8x8xf32>
    %419 = vector.extract_strided_slice %299 {offsets = [8, 16], sizes = [8, 8], strides = [1, 1]} : vector<16x32xf32> to vector<8x8xf32>
    %cst_176 = arith.constant dense<0.000000e+00> : vector<8x8xf32>
    %420 = tpu.matmul %417, %418, %cst_176 {dimension_numbers = #tpu.dot_dimension_numbers<[1], [1], [0], [0], [0, 0, 1, 0], [], []>} : vector<8x8xf32>, vector<8x8xf32>, vector<8x8xf32> -> vector<8x8xf32>
    %cst_177 = arith.constant dense<0xFF800000> : vector<8xf32>
    %421 = vector.multi_reduction <maximumf>, %420, %cst_177 [1] : vector<8x8xf32> to vector<8xf32>
    %422 = vector.shape_cast %421 : vector<8xf32> to vector<8x1xf32>
    %423 = vector.broadcast %422 : vector<8x1xf32> to vector<8x8xf32>
    %424 = arith.subf %420, %423 : vector<8x8xf32>
    %425 = math.exp %424 : vector<8x8xf32>
    %cst_178 = arith.constant dense<0.000000e+00> : vector<8xf32>
    %426 = vector.multi_reduction <add>, %425, %cst_178 [1] : vector<8x8xf32> to vector<8xf32>
    %427 = vector.shape_cast %426 : vector<8xf32> to vector<8x1xf32>
    %428 = tpu.reciprocal %427 {approx = true} : vector<8x1xf32> -> vector<8x1xf32>
    %429 = vector.broadcast %428 : vector<8x1xf32> to vector<8x8xf32>
    %430 = arith.mulf %425, %429 : vector<8x8xf32>
    %cst_179 = arith.constant dense<0.000000e+00> : vector<8x8xf32>
    %431 = tpu.matmul %430, %419, %cst_179 {dimension_numbers = #tpu.dot_dimension_numbers<[1], [0], [0], [1], [0, 0, 1, 1], [], []>} : vector<8x8xf32>, vector<8x8xf32>, vector<8x8xf32> -> vector<8x8xf32>
    %432 = vector.extract_strided_slice %301 {offsets = [16, 0], sizes = [8, 32], strides = [1, 1]} : vector<32x32xf32> to vector<8x32xf32>
    %cst_180 = arith.constant dense<0.000000e+00> : vector<8x32xf32>
    %433 = tpu.matmul %431, %432, %cst_180 {dimension_numbers = #tpu.dot_dimension_numbers<[1], [0], [0], [1], [0, 0, 1, 1], [], []>} : vector<8x8xf32>, vector<8x32xf32>, vector<8x32xf32> -> vector<8x32xf32>
    %434 = arith.addf %416, %433 : vector<8x32xf32>
    %435 = vector.extract_strided_slice %297 {offsets = [8, 24], sizes = [8, 8], strides = [1, 1]} : vector<16x32xf32> to vector<8x8xf32>
    %436 = vector.extract_strided_slice %298 {offsets = [8, 24], sizes = [8, 8], strides = [1, 1]} : vector<16x32xf32> to vector<8x8xf32>
    %437 = vector.extract_strided_slice %299 {offsets = [8, 24], sizes = [8, 8], strides = [1, 1]} : vector<16x32xf32> to vector<8x8xf32>
    %cst_181 = arith.constant dense<0.000000e+00> : vector<8x8xf32>
    %438 = tpu.matmul %435, %436, %cst_181 {dimension_numbers = #tpu.dot_dimension_numbers<[1], [1], [0], [0], [0, 0, 1, 0], [], []>} : vector<8x8xf32>, vector<8x8xf32>, vector<8x8xf32> -> vector<8x8xf32>
    %cst_182 = arith.constant dense<0xFF800000> : vector<8xf32>
    %439 = vector.multi_reduction <maximumf>, %438, %cst_182 [1] : vector<8x8xf32> to vector<8xf32>
    %440 = vector.shape_cast %439 : vector<8xf32> to vector<8x1xf32>
    %441 = vector.broadcast %440 : vector<8x1xf32> to vector<8x8xf32>
    %442 = arith.subf %438, %441 : vector<8x8xf32>
    %443 = math.exp %442 : vector<8x8xf32>
    %cst_183 = arith.constant dense<0.000000e+00> : vector<8xf32>
    %444 = vector.multi_reduction <add>, %443, %cst_183 [1] : vector<8x8xf32> to vector<8xf32>
    %445 = vector.shape_cast %444 : vector<8xf32> to vector<8x1xf32>
    %446 = tpu.reciprocal %445 {approx = true} : vector<8x1xf32> -> vector<8x1xf32>
    %447 = vector.broadcast %446 : vector<8x1xf32> to vector<8x8xf32>
    %448 = arith.mulf %443, %447 : vector<8x8xf32>
    %cst_184 = arith.constant dense<0.000000e+00> : vector<8x8xf32>
    %449 = tpu.matmul %448, %437, %cst_184 {dimension_numbers = #tpu.dot_dimension_numbers<[1], [0], [0], [1], [0, 0, 1, 1], [], []>} : vector<8x8xf32>, vector<8x8xf32>, vector<8x8xf32> -> vector<8x8xf32>
    %450 = vector.extract_strided_slice %301 {offsets = [24, 0], sizes = [8, 32], strides = [1, 1]} : vector<32x32xf32> to vector<8x32xf32>
    %cst_185 = arith.constant dense<0.000000e+00> : vector<8x32xf32>
    %451 = tpu.matmul %449, %450, %cst_185 {dimension_numbers = #tpu.dot_dimension_numbers<[1], [0], [0], [1], [0, 0, 1, 1], [], []>} : vector<8x8xf32>, vector<8x32xf32>, vector<8x32xf32> -> vector<8x32xf32>
    %452 = arith.addf %434, %451 : vector<8x32xf32>
    %453 = vector.broadcast %303 : vector<1x32xf32> to vector<8x32xf32>
    %454 = arith.addf %452, %453 : vector<8x32xf32>
    %c8_186 = arith.constant 8 : index
    %c0_187 = arith.constant 0 : index
    %455 = vector.load %arg30[%c8_186, %c0_187] : memref<16x32xf32, #tpu.memory_space<vmem>>, vector<8x32xf32>
    tpu.vector_store %arg30[%c8_186, %c0_187], %454 {strides = array<i32>} : memref<16x32xf32, #tpu.memory_space<vmem>>, vector<8x32xf32>,
    %c0_188 = arith.constant 0 : index
    %c0_189 = arith.constant 0 : index
    %456 = vector.load %arg30[%c0_188, %c0_189] : memref<16x32xf32, #tpu.memory_space<vmem>>, vector<16x32xf32>
    %457 = arith.addf %287, %456 : vector<16x32xf32>
    %c1_190 = arith.constant 1 : index
    %c0_191 = arith.constant 0 : index
    %c0_192 = arith.constant 0 : index
    %458 = vector.load %arg9[%c1_190, %c0_191, %c0_192] : memref<2x1x32xf32, #tpu.memory_space<vmem>>, vector<1x1x32xf32>
    %459 = vector.shape_cast %458 : vector<1x1x32xf32> to vector<1x32xf32>
    %c1_193 = arith.constant 1 : index
    %c0_194 = arith.constant 0 : index
    %c0_195 = arith.constant 0 : index
    %460 = vector.load %arg10[%c1_193, %c0_194, %c0_195] : memref<2x1x32xf32, #tpu.memory_space<vmem>>, vector<1x1x32xf32>
    %461 = vector.shape_cast %460 : vector<1x1x32xf32> to vector<1x32xf32>
    %cst_196 = arith.constant dense<0.000000e+00> : vector<16xf32>
    %462 = vector.multi_reduction <add>, %457, %cst_196 [1] : vector<16x32xf32> to vector<16xf32>
    %463 = vector.shape_cast %462 : vector<16xf32> to vector<16x1xf32>
    %cst_197 = arith.constant 3.200000e+01 : f32
    %464 = vector.broadcast %cst_197 : f32 to vector<16x1xf32>
    %465 = arith.divf %463, %464 : vector<16x1xf32>
    %466 = vector.broadcast %465 : vector<16x1xf32> to vector<16x32xf32>
    %467 = arith.subf %457, %466 : vector<16x32xf32>
    %468 = arith.mulf %467, %467 : vector<16x32xf32>
    %cst_198 = arith.constant dense<0.000000e+00> : vector<16xf32>
    %469 = vector.multi_reduction <add>, %468, %cst_198 [1] : vector<16x32xf32> to vector<16xf32>
    %470 = vector.shape_cast %469 : vector<16xf32> to vector<16x1xf32>
    %cst_199 = arith.constant 3.200000e+01 : f32
    %471 = vector.broadcast %cst_199 : f32 to vector<16x1xf32>
    %472 = arith.divf %470, %471 : vector<16x1xf32>
    %cst_200 = arith.constant 9.99999974E-6 : f32
    %473 = vector.broadcast %cst_200 : f32 to vector<16x1xf32>
    %474 = arith.addf %472, %473 : vector<16x1xf32>
    %475 = math.rsqrt %474 : vector<16x1xf32>
    %476 = vector.broadcast %475 : vector<16x1xf32> to vector<16x32xf32>
    %477 = arith.mulf %467, %476 : vector<16x32xf32>
    %478 = vector.broadcast %459 : vector<1x32xf32> to vector<16x32xf32>
    %479 = arith.mulf %477, %478 : vector<16x32xf32>
    %480 = vector.broadcast %461 : vector<1x32xf32> to vector<16x32xf32>
    %481 = arith.addf %479, %480 : vector<16x32xf32>
    %c1_201 = arith.constant 1 : index
    %c0_202 = arith.constant 0 : index
    %c0_203 = arith.constant 0 : index
    %482 = vector.load %arg11[%c1_201, %c0_202, %c0_203] : memref<2x32x32xf32, #tpu.memory_space<vmem>>, vector<1x32x32xf32>
    %483 = vector.shape_cast %482 : vector<1x32x32xf32> to vector<32x32xf32>
    %cst_204 = arith.constant dense<0.000000e+00> : vector<16x32xf32>
    %484 = tpu.matmul %481, %483, %cst_204 {dimension_numbers = #tpu.dot_dimension_numbers<[1], [0], [0], [1], [0, 0, 1, 1], [], []>} : vector<16x32xf32>, vector<32x32xf32>, vector<16x32xf32> -> vector<16x32xf32>
    %c1_205 = arith.constant 1 : index
    %c0_206 = arith.constant 0 : index
    %c0_207 = arith.constant 0 : index
    %485 = vector.load %arg12[%c1_205, %c0_206, %c0_207] : memref<2x1x32xf32, #tpu.memory_space<vmem>>, vector<1x1x32xf32>
    %486 = vector.shape_cast %485 : vector<1x1x32xf32> to vector<1x32xf32>
    %487 = vector.broadcast %486 : vector<1x32xf32> to vector<16x32xf32>
    %488 = arith.addf %484, %487 : vector<16x32xf32>
    %cst_208 = arith.constant 0.000000e+00 : f32
    %489 = vector.broadcast %cst_208 : f32 to vector<16x32xf32>
    %490 = arith.maximumf %488, %489 : vector<16x32xf32>
    %c1_209 = arith.constant 1 : index
    %c0_210 = arith.constant 0 : index
    %c0_211 = arith.constant 0 : index
    %491 = vector.load %arg13[%c1_209, %c0_210, %c0_211] : memref<2x32x32xf32, #tpu.memory_space<vmem>>, vector<1x32x32xf32>
    %492 = vector.shape_cast %491 : vector<1x32x32xf32> to vector<32x32xf32>
    %cst_212 = arith.constant dense<0.000000e+00> : vector<16x32xf32>
    %493 = tpu.matmul %490, %492, %cst_212 {dimension_numbers = #tpu.dot_dimension_numbers<[1], [0], [0], [1], [0, 0, 1, 1], [], []>} : vector<16x32xf32>, vector<32x32xf32>, vector<16x32xf32> -> vector<16x32xf32>
    %c1_213 = arith.constant 1 : index
    %c0_214 = arith.constant 0 : index
    %c0_215 = arith.constant 0 : index
    %494 = vector.load %arg14[%c1_213, %c0_214, %c0_215] : memref<2x1x32xf32, #tpu.memory_space<vmem>>, vector<1x1x32xf32>
    %495 = vector.shape_cast %494 : vector<1x1x32xf32> to vector<1x32xf32>
    %496 = vector.broadcast %495 : vector<1x32xf32> to vector<16x32xf32>
    %497 = arith.addf %493, %496 : vector<16x32xf32>
    %498 = arith.addf %481, %497 : vector<16x32xf32>
    %c1_216 = arith.constant 1 : index
    %c0_217 = arith.constant 0 : index
    %c0_218 = arith.constant 0 : index
    %499 = vector.load %arg15[%c1_216, %c0_217, %c0_218] : memref<2x1x32xf32, #tpu.memory_space<vmem>>, vector<1x1x32xf32>
    %500 = vector.shape_cast %499 : vector<1x1x32xf32> to vector<1x32xf32>
    %c1_219 = arith.constant 1 : index
    %c0_220 = arith.constant 0 : index
    %c0_221 = arith.constant 0 : index
    %501 = vector.load %arg16[%c1_219, %c0_220, %c0_221] : memref<2x1x32xf32, #tpu.memory_space<vmem>>, vector<1x1x32xf32>
    %502 = vector.shape_cast %501 : vector<1x1x32xf32> to vector<1x32xf32>
    %cst_222 = arith.constant dense<0.000000e+00> : vector<16xf32>
    %503 = vector.multi_reduction <add>, %498, %cst_222 [1] : vector<16x32xf32> to vector<16xf32>
    %504 = vector.shape_cast %503 : vector<16xf32> to vector<16x1xf32>
    %cst_223 = arith.constant 3.200000e+01 : f32
    %505 = vector.broadcast %cst_223 : f32 to vector<16x1xf32>
    %506 = arith.divf %504, %505 : vector<16x1xf32>
    %507 = vector.broadcast %506 : vector<16x1xf32> to vector<16x32xf32>
    %508 = arith.subf %498, %507 : vector<16x32xf32>
    %509 = arith.mulf %508, %508 : vector<16x32xf32>
    %cst_224 = arith.constant dense<0.000000e+00> : vector<16xf32>
    %510 = vector.multi_reduction <add>, %509, %cst_224 [1] : vector<16x32xf32> to vector<16xf32>
    %511 = vector.shape_cast %510 : vector<16xf32> to vector<16x1xf32>
    %cst_225 = arith.constant 3.200000e+01 : f32
    %512 = vector.broadcast %cst_225 : f32 to vector<16x1xf32>
    %513 = arith.divf %511, %512 : vector<16x1xf32>
    %cst_226 = arith.constant 9.99999974E-6 : f32
    %514 = vector.broadcast %cst_226 : f32 to vector<16x1xf32>
    %515 = arith.addf %513, %514 : vector<16x1xf32>
    %516 = math.rsqrt %515 : vector<16x1xf32>
    %517 = vector.broadcast %516 : vector<16x1xf32> to vector<16x32xf32>
    %518 = arith.mulf %508, %517 : vector<16x32xf32>
    %519 = vector.broadcast %500 : vector<1x32xf32> to vector<16x32xf32>
    %520 = arith.mulf %518, %519 : vector<16x32xf32>
    %521 = vector.broadcast %502 : vector<1x32xf32> to vector<16x32xf32>
    %522 = arith.addf %520, %521 : vector<16x32xf32>
    %cst_227 = arith.constant dense<0.000000e+00> : vector<16x32xf32>
    %523 = tpu.matmul %522, %6, %cst_227 {dimension_numbers = #tpu.dot_dimension_numbers<[1], [0], [0], [1], [0, 0, 1, 1], [], []>} : vector<16x32xf32>, vector<32x32xf32>, vector<16x32xf32> -> vector<16x32xf32>
    %c0_228 = arith.constant 0 : index
    %c0_229 = arith.constant 0 : index
    %524 = vector.load %arg17[%c0_228, %c0_229] : memref<32x96xf32, #tpu.memory_space<vmem>>, vector<32x96xf32>
    %cst_230 = arith.constant dense<0.000000e+00> : vector<16x96xf32>
    %525 = tpu.matmul %523, %524, %cst_230 {dimension_numbers = #tpu.dot_dimension_numbers<[1], [0], [0], [1], [0, 0, 1, 1], [], []>} : vector<16x32xf32>, vector<32x96xf32>, vector<16x96xf32> -> vector<16x96xf32>
    %c0_231 = arith.constant 0 : index
    %c0_232 = arith.constant 0 : index
    %526 = vector.load %arg18[%c0_231, %c0_232] : memref<1x96xf32, #tpu.memory_space<vmem>>, vector<1x96xf32>
    %527 = vector.broadcast %526 : vector<1x96xf32> to vector<16x96xf32>
    %528 = arith.addf %525, %527 : vector<16x96xf32>
    %c0_233 = arith.constant 0 : index
    %c0_234 = arith.constant 0 : index
    %529 = vector.load %arg19[%c0_233, %c0_234] : memref<32x64xf32, #tpu.memory_space<vmem>>, vector<32x64xf32>
    %cst_235 = arith.constant dense<0.000000e+00> : vector<16x64xf32>
    %530 = tpu.matmul %522, %529, %cst_235 {dimension_numbers = #tpu.dot_dimension_numbers<[1], [0], [0], [1], [0, 0, 1, 1], [], []>} : vector<16x32xf32>, vector<32x64xf32>, vector<16x64xf32> -> vector<16x64xf32>
    %c0_236 = arith.constant 0 : index
    %c0_237 = arith.constant 0 : index
    %531 = vector.load %arg20[%c0_236, %c0_237] : memref<1x64xf32, #tpu.memory_space<vmem>>, vector<1x64xf32>
    %532 = vector.broadcast %531 : vector<1x64xf32> to vector<16x64xf32>
    %533 = arith.addf %530, %532 : vector<16x64xf32>
    %534 = vector.extract_strided_slice %528 {offsets = [0, 0], sizes = [16, 32], strides = [1, 1]} : vector<16x96xf32> to vector<16x32xf32>
    %535 = vector.extract_strided_slice %533 {offsets = [0, 0], sizes = [16, 32], strides = [1, 1]} : vector<16x64xf32> to vector<16x32xf32>
    %536 = arith.addf %534, %535 : vector<16x32xf32>
    %cst_238 = arith.constant 0.000000e+00 : f32
    %537 = vector.broadcast %cst_238 : f32 to vector<16x32xf32>
    %538 = arith.subf %537, %536 : vector<16x32xf32>
    %539 = math.exp %538 : vector<16x32xf32>
    %cst_239 = arith.constant 1.000000e+00 : f32
    %540 = vector.broadcast %cst_239 : f32 to vector<16x32xf32>
    %541 = arith.addf %540, %539 : vector<16x32xf32>
    %cst_240 = arith.constant 1.000000e+00 : f32
    %542 = vector.broadcast %cst_240 : f32 to vector<16x32xf32>
    %543 = arith.divf %542, %541 : vector<16x32xf32>
    %544 = vector.extract_strided_slice %528 {offsets = [0, 32], sizes = [16, 32], strides = [1, 1]} : vector<16x96xf32> to vector<16x32xf32>
    %545 = vector.extract_strided_slice %533 {offsets = [0, 32], sizes = [16, 32], strides = [1, 1]} : vector<16x64xf32> to vector<16x32xf32>
    %546 = arith.addf %544, %545 : vector<16x32xf32>
    %cst_241 = arith.constant 0.000000e+00 : f32
    %547 = vector.broadcast %cst_241 : f32 to vector<16x32xf32>
    %548 = arith.subf %547, %546 : vector<16x32xf32>
    %549 = math.exp %548 : vector<16x32xf32>
    %cst_242 = arith.constant 1.000000e+00 : f32
    %550 = vector.broadcast %cst_242 : f32 to vector<16x32xf32>
    %551 = arith.addf %550, %549 : vector<16x32xf32>
    %cst_243 = arith.constant 1.000000e+00 : f32
    %552 = vector.broadcast %cst_243 : f32 to vector<16x32xf32>
    %553 = arith.divf %552, %551 : vector<16x32xf32>
    %554 = vector.extract_strided_slice %528 {offsets = [0, 64], sizes = [16, 32], strides = [1, 1]} : vector<16x96xf32> to vector<16x32xf32>
    %555 = arith.mulf %553, %522 : vector<16x32xf32>
    %c0_244 = arith.constant 0 : index
    %c0_245 = arith.constant 0 : index
    %556 = vector.load %arg21[%c0_244, %c0_245] : memref<32x32xf32, #tpu.memory_space<vmem>>, vector<32x32xf32>
    %cst_246 = arith.constant dense<0.000000e+00> : vector<16x32xf32>
    %557 = tpu.matmul %555, %556, %cst_246 {dimension_numbers = #tpu.dot_dimension_numbers<[1], [0], [0], [1], [0, 0, 1, 1], [], []>} : vector<16x32xf32>, vector<32x32xf32>, vector<16x32xf32> -> vector<16x32xf32>
    %558 = arith.addf %554, %557 : vector<16x32xf32>
    %c0_247 = arith.constant 0 : index
    %c0_248 = arith.constant 0 : index
    %559 = vector.load %arg22[%c0_247, %c0_248] : memref<1x32xf32, #tpu.memory_space<vmem>>, vector<1x32xf32>
    %560 = vector.broadcast %559 : vector<1x32xf32> to vector<16x32xf32>
    %561 = arith.addf %558, %560 : vector<16x32xf32>
    %cst_249 = arith.constant 0.000000e+00 : f32
    %562 = vector.broadcast %cst_249 : f32 to vector<16x32xf32>
    %563 = arith.maximumf %561, %562 : vector<16x32xf32>
    %564 = arith.mulf %563, %543 : vector<16x32xf32>
    %cst_250 = arith.constant 1.000000e+00 : f32
    %565 = vector.broadcast %cst_250 : f32 to vector<16x32xf32>
    %566 = arith.subf %565, %543 : vector<16x32xf32>
    %567 = arith.mulf %522, %566 : vector<16x32xf32>
    %568 = arith.addf %564, %567 : vector<16x32xf32>
    %c0_251 = arith.constant 0 : index
    %c0_252 = arith.constant 0 : index
    %569 = vector.load %arg23[%c0_251, %c0_252] : memref<32x1xf32, #tpu.memory_space<vmem>>, vector<32x1xf32>
    %cst_253 = arith.constant dense<0.000000e+00> : vector<16x1xf32>
    %570 = tpu.matmul %568, %569, %cst_253 {dimension_numbers = #tpu.dot_dimension_numbers<[1], [0], [0], [1], [0, 0, 1, 1], [], []>} : vector<16x32xf32>, vector<32x1xf32>, vector<16x1xf32> -> vector<16x1xf32>
    %c0_254 = arith.constant 0 : index
    %c0_255 = arith.constant 0 : index
    %571 = vector.load %arg24[%c0_254, %c0_255] : memref<1x1xf32, #tpu.memory_space<vmem>>, vector<1x1xf32>
    %572 = vector.broadcast %571 : vector<1x1xf32> to vector<16x1xf32>
    %573 = arith.addf %570, %572 : vector<16x1xf32>
    %cst_256 = arith.constant 0.000000e+00 : f32
    %574 = vector.broadcast %cst_256 : f32 to vector<16x1xf32>
    %575 = arith.subf %574, %573 : vector<16x1xf32>
    %576 = math.exp %575 : vector<16x1xf32>
    %cst_257 = arith.constant 1.000000e+00 : f32
    %577 = vector.broadcast %cst_257 : f32 to vector<16x1xf32>
    %578 = arith.addf %577, %576 : vector<16x1xf32>
    %cst_258 = arith.constant 1.000000e+00 : f32
    %579 = vector.broadcast %cst_258 : f32 to vector<16x1xf32>
    %580 = arith.divf %579, %578 : vector<16x1xf32>
    %c0_259 = arith.constant 0 : index
    %c0_260 = arith.constant 0 : index
    %581 = vector.load %arg25[%c0_259, %c0_260] : memref<32x32xf32, #tpu.memory_space<vmem>>, vector<32x32xf32>
    %cst_261 = arith.constant dense<0.000000e+00> : vector<16x32xf32>
    %582 = tpu.matmul %568, %581, %cst_261 {dimension_numbers = #tpu.dot_dimension_numbers<[1], [0], [0], [1], [0, 0, 1, 1], [], []>} : vector<16x32xf32>, vector<32x32xf32>, vector<16x32xf32> -> vector<16x32xf32>
    %c0_262 = arith.constant 0 : index
    %c0_263 = arith.constant 0 : index
    %583 = vector.load %arg26[%c0_262, %c0_263] : memref<1x32xf32, #tpu.memory_space<vmem>>, vector<1x32xf32>
    %584 = vector.broadcast %583 : vector<1x32xf32> to vector<16x32xf32>
    %585 = arith.addf %582, %584 : vector<16x32xf32>
    %cst_264 = arith.constant 0.000000e+00 : f32
    %586 = vector.broadcast %cst_264 : f32 to vector<16x32xf32>
    %587 = arith.maximumf %585, %586 : vector<16x32xf32>
    %588 = vector.broadcast %580 : vector<16x1xf32> to vector<16x32xf32>
    %589 = arith.mulf %588, %587 : vector<16x32xf32>
    %cst_265 = arith.constant -1.000000e+05 : f32
    %cst_266 = arith.constant 1.000000e+05 : f32
    %590 = vector.broadcast %cst_265 : f32 to vector<16x32xf32>
    %591 = arith.maximumf %590, %589 : vector<16x32xf32>
    %592 = vector.broadcast %cst_266 : f32 to vector<16x32xf32>
    %593 = arith.minimumf %592, %591 : vector<16x32xf32>
    %c0_267 = arith.constant 0 : index
    %c0_268 = arith.constant 0 : index
    %594 = vector.load %arg27[%c0_267, %c0_268] : memref<32x4xf32, #tpu.memory_space<vmem>>, vector<32x4xf32>
    %cst_269 = arith.constant dense<0.000000e+00> : vector<16x4xf32>
    %595 = tpu.matmul %593, %594, %cst_269 {dimension_numbers = #tpu.dot_dimension_numbers<[1], [0], [0], [1], [0, 0, 1, 1], [], []>} : vector<16x32xf32>, vector<32x4xf32>, vector<16x4xf32> -> vector<16x4xf32>
    %c0_270 = arith.constant 0 : index
    %c0_271 = arith.constant 0 : index
    %596 = vector.load %arg28[%c0_270, %c0_271] : memref<1x4xf32, #tpu.memory_space<vmem>>, vector<1x4xf32>
    %597 = vector.broadcast %596 : vector<1x4xf32> to vector<16x4xf32>
    %598 = arith.addf %595, %597 : vector<16x4xf32>
    %c0_272 = arith.constant 0 : index
    %c0_273 = arith.constant 0 : index
    %599 = vector.load %arg29[%c0_272, %c0_273] : memref<16x4xf32, #tpu.memory_space<vmem>>, vector<16x4xf32>
    tpu.vector_store %arg29[%c0_272, %c0_273], %598 {strides = array<i32>} : memref<16x4xf32, #tpu.memory_space<vmem>>, vector<16x4xf32>,
    return
  }
  func.func @transform_0(%arg0: i32) -> (i32, i32) {
    %c0_i32 = arith.constant 0 : i32
    %c0_i32_0 = arith.constant 0 : i32
    %c0_i32_1 = arith.constant 0 : i32
    return %c0_i32, %c0_i32_0 : i32, i32
  }
  func.func @transform_1(%arg0: i32) -> (i32, i32) {
    %c0_i32 = arith.constant 0 : i32
    %c0_i32_0 = arith.constant 0 : i32
    %c0_i32_1 = arith.constant 0 : i32
    return %c0_i32, %c0_i32_0 : i32, i32
  }
  func.func @transform_2(%arg0: i32) -> (i32, i32) {
    %c0_i32 = arith.constant 0 : i32
    %c0_i32_0 = arith.constant 0 : i32
    %c0_i32_1 = arith.constant 0 : i32
    return %c0_i32, %c0_i32_0 : i32, i32
  }
  func.func @transform_3(%arg0: i32) -> (i32, i32) {
    %c0_i32 = arith.constant 0 : i32
    %c0_i32_0 = arith.constant 0 : i32
    %c0_i32_1 = arith.constant 0 : i32
    return %c0_i32, %c0_i32_0 : i32, i32
  }
  func.func @transform_4(%arg0: i32) -> (i32, i32, i32) {
    %c0_i32 = arith.constant 0 : i32
    %c0_i32_0 = arith.constant 0 : i32
    %c0_i32_1 = arith.constant 0 : i32
    %c0_i32_2 = arith.constant 0 : i32
    return %c0_i32, %c0_i32_0, %c0_i32_1 : i32, i32, i32
  }
  func.func @transform_5(%arg0: i32) -> (i32, i32, i32) {
    %c0_i32 = arith.constant 0 : i32
    %c0_i32_0 = arith.constant 0 : i32
    %c0_i32_1 = arith.constant 0 : i32
    %c0_i32_2 = arith.constant 0 : i32
    return %c0_i32, %c0_i32_0, %c0_i32_1 : i32, i32, i32
  }
  func.func @transform_6(%arg0: i32) -> (i32, i32, i32) {
    %c0_i32 = arith.constant 0 : i32
    %c0_i32_0 = arith.constant 0 : i32
    %c0_i32_1 = arith.constant 0 : i32
    %c0_i32_2 = arith.constant 0 : i32
    return %c0_i32, %c0_i32_0, %c0_i32_1 : i32, i32, i32
  }
  func.func @transform_7(%arg0: i32) -> (i32, i32, i32) {
    %c0_i32 = arith.constant 0 : i32
    %c0_i32_0 = arith.constant 0 : i32
    %c0_i32_1 = arith.constant 0 : i32
    %c0_i32_2 = arith.constant 0 : i32
    return %c0_i32, %c0_i32_0, %c0_i32_1 : i32, i32, i32
  }
  func.func @transform_8(%arg0: i32) -> (i32, i32, i32) {
    %c0_i32 = arith.constant 0 : i32
    %c0_i32_0 = arith.constant 0 : i32
    %c0_i32_1 = arith.constant 0 : i32
    %c0_i32_2 = arith.constant 0 : i32
    return %c0_i32, %c0_i32_0, %c0_i32_1 : i32, i32, i32
  }
  func.func @transform_9(%arg0: i32) -> (i32, i32, i32) {
    %c0_i32 = arith.constant 0 : i32
    %c0_i32_0 = arith.constant 0 : i32
    %c0_i32_1 = arith.constant 0 : i32
    %c0_i32_2 = arith.constant 0 : i32
    return %c0_i32, %c0_i32_0, %c0_i32_1 : i32, i32, i32
  }
  func.func @transform_10(%arg0: i32) -> (i32, i32, i32) {
    %c0_i32 = arith.constant 0 : i32
    %c0_i32_0 = arith.constant 0 : i32
    %c0_i32_1 = arith.constant 0 : i32
    %c0_i32_2 = arith.constant 0 : i32
    return %c0_i32, %c0_i32_0, %c0_i32_1 : i32, i32, i32
  }
  func.func @transform_11(%arg0: i32) -> (i32, i32, i32) {
    %c0_i32 = arith.constant 0 : i32
    %c0_i32_0 = arith.constant 0 : i32
    %c0_i32_1 = arith.constant 0 : i32
    %c0_i32_2 = arith.constant 0 : i32
    return %c0_i32, %c0_i32_0, %c0_i32_1 : i32, i32, i32
  }
  func.func @transform_12(%arg0: i32) -> (i32, i32, i32) {
    %c0_i32 = arith.constant 0 : i32
    %c0_i32_0 = arith.constant 0 : i32
    %c0_i32_1 = arith.constant 0 : i32
    %c0_i32_2 = arith.constant 0 : i32
    return %c0_i32, %c0_i32_0, %c0_i32_1 : i32, i32, i32
  }
  func.func @transform_13(%arg0: i32) -> (i32, i32, i32) {
    %c0_i32 = arith.constant 0 : i32
    %c0_i32_0 = arith.constant 0 : i32
    %c0_i32_1 = arith.constant 0 : i32
    %c0_i32_2 = arith.constant 0 : i32
    return %c0_i32, %c0_i32_0, %c0_i32_1 : i32, i32, i32
  }
  func.func @transform_14(%arg0: i32) -> (i32, i32, i32) {
    %c0_i32 = arith.constant 0 : i32
    %c0_i32_0 = arith.constant 0 : i32
    %c0_i32_1 = arith.constant 0 : i32
    %c0_i32_2 = arith.constant 0 : i32
    return %c0_i32, %c0_i32_0, %c0_i32_1 : i32, i32, i32
  }
  func.func @transform_15(%arg0: i32) -> (i32, i32, i32) {
    %c0_i32 = arith.constant 0 : i32
    %c0_i32_0 = arith.constant 0 : i32
    %c0_i32_1 = arith.constant 0 : i32
    %c0_i32_2 = arith.constant 0 : i32
    return %c0_i32, %c0_i32_0, %c0_i32_1 : i32, i32, i32
  }
  func.func @transform_16(%arg0: i32) -> (i32, i32) {
    %c0_i32 = arith.constant 0 : i32
    %c0_i32_0 = arith.constant 0 : i32
    %c0_i32_1 = arith.constant 0 : i32
    return %c0_i32, %c0_i32_0 : i32, i32
  }
  func.func @transform_17(%arg0: i32) -> (i32, i32) {
    %c0_i32 = arith.constant 0 : i32
    %c0_i32_0 = arith.constant 0 : i32
    %c0_i32_1 = arith.constant 0 : i32
    return %c0_i32, %c0_i32_0 : i32, i32
  }
  func.func @transform_18(%arg0: i32) -> (i32, i32) {
    %c0_i32 = arith.constant 0 : i32
    %c0_i32_0 = arith.constant 0 : i32
    %c0_i32_1 = arith.constant 0 : i32
    return %c0_i32, %c0_i32_0 : i32, i32
  }
  func.func @transform_19(%arg0: i32) -> (i32, i32) {
    %c0_i32 = arith.constant 0 : i32
    %c0_i32_0 = arith.constant 0 : i32
    %c0_i32_1 = arith.constant 0 : i32
    return %c0_i32, %c0_i32_0 : i32, i32
  }
  func.func @transform_20(%arg0: i32) -> (i32, i32) {
    %c0_i32 = arith.constant 0 : i32
    %c0_i32_0 = arith.constant 0 : i32
    %c0_i32_1 = arith.constant 0 : i32
    return %c0_i32, %c0_i32_0 : i32, i32
  }
  func.func @transform_21(%arg0: i32) -> (i32, i32) {
    %c0_i32 = arith.constant 0 : i32
    %c0_i32_0 = arith.constant 0 : i32
    %c0_i32_1 = arith.constant 0 : i32
    return %c0_i32, %c0_i32_0 : i32, i32
  }
  func.func @transform_22(%arg0: i32) -> (i32, i32) {
    %c0_i32 = arith.constant 0 : i32
    %c0_i32_0 = arith.constant 0 : i32
    %c0_i32_1 = arith.constant 0 : i32
    return %c0_i32, %c0_i32_0 : i32, i32
  }
  func.func @transform_23(%arg0: i32) -> (i32, i32) {
    %c0_i32 = arith.constant 0 : i32
    %c0_i32_0 = arith.constant 0 : i32
    %c0_i32_1 = arith.constant 0 : i32
    return %c0_i32, %c0_i32_0 : i32, i32
  }
  func.func @transform_24(%arg0: i32) -> (i32, i32) {
    %c0_i32 = arith.constant 0 : i32
    %c0_i32_0 = arith.constant 0 : i32
    %c0_i32_1 = arith.constant 0 : i32
    return %c0_i32, %c0_i32_0 : i32, i32
  }
  func.func @transform_25(%arg0: i32) -> (i32, i32) {
    %c0_i32 = arith.constant 0 : i32
    %c0_i32_0 = arith.constant 0 : i32
    %c0_i32_1 = arith.constant 0 : i32
    return %c0_i32, %c0_i32_0 : i32, i32
  }
  func.func @transform_26(%arg0: i32) -> (i32, i32) {
    %c0_i32 = arith.constant 0 : i32
    %c0_i32_0 = arith.constant 0 : i32
    %c0_i32_1 = arith.constant 0 : i32
    return %c0_i32, %c0_i32_0 : i32, i32
  }
  func.func @transform_27(%arg0: i32) -> (i32, i32) {
    %c0_i32 = arith.constant 0 : i32
    %c0_i32_0 = arith.constant 0 : i32
    %c0_i32_1 = arith.constant 0 : i32
    return %c0_i32, %c0_i32_0 : i32, i32
  }
  func.func @transform_28(%arg0: i32) -> (i32, i32) {
    %c0_i32 = arith.constant 0 : i32
    %c0_i32_0 = arith.constant 0 : i32
    %c0_i32_1 = arith.constant 0 : i32
    return %c0_i32, %c0_i32_0 : i32, i32
  }
}

</mosaic_0001>

<bundles_post_ra>
// kernel: tpu_custom_call.1
= control target key start
LH: loop header
LB: loop body
LE: loop exit
PB: predicated region body
PF: predicated region fallthrough
CT: control target
= control target key end

     0   :  { %s4295_s0 = inlined_call_operand.hbm [shape: f32[16,16], index: 0, kind: input, shape index: {}]   ;;  %s4296_s1 = inlined_call_operand.hbm [shape: f32[32,32], index: 1, kind: input, shape index: {}]   ;;  %s4297_s2 = inlined_call_operand.hbm [shape: f32[16,32], index: 2, kind: input, shape index: {}]   ;;  %s4298_s3 = inlined_call_operand.hbm [shape: f32[1,32], index: 3, kind: input, shape index: {}]   ;;  %s4299_s4 = inlined_call_operand.vmem [shape: f32[2,32,96], index: 4, kind: input, shape index: {}]   ;;  %s4300_s5 = inlined_call_operand.vmem [shape: f32[2,1,96], index: 5, kind: input, shape index: {}]   ;;  %s4301_s6 = inlined_call_operand.hbm [shape: f32[2,32,32], index: 6, kind: input, shape index: {}]   ;;  %s4302_s7 = inlined_call_operand.vmem [shape: f32[2,1,32], index: 7, kind: input, shape index: {}]   ;;  %s4303_s8 = inlined_call_operand.vmem [shape: f32[2,1,32], index: 8, kind: input, shape index: {}]   ;;  %s4304_s9 = inlined_call_operand.vmem [shape: f32[2,1,32], index: 9, kind: input, shape index: {}]   ;;  %s4305_s10 = inlined_call_operand.hbm [shape: f32[2,32,32], index: 10, kind: input, shape index: {}]   ;;  %s4306_s11 = inlined_call_operand.vmem [shape: f32[2,1,32], index: 11, kind: input, shape index: {}]   ;;  %s4307_s12 = inlined_call_operand.hbm [shape: f32[2,32,32], index: 12, kind: input, shape index: {}]   ;;  %s4308_s13 = inlined_call_operand.vmem [shape: f32[2,1,32], index: 13, kind: input, shape index: {}]   ;;  %s4309_s14 = inlined_call_operand.vmem [shape: f32[2,1,32], index: 14, kind: input, shape index: {}]   ;;  %s4310_s15 = inlined_call_operand.vmem [shape: f32[2,1,32], index: 15, kind: input, shape index: {}]   ;;  %s4311_s16 = inlined_call_operand.hbm [shape: f32[32,96], index: 16, kind: input, shape index: {}]   ;;  %s4312_s17 = inlined_call_operand.vmem [shape: f32[1,96], index: 17, kind: input, shape index: {}]   ;;  %s4313_s18 = inlined_call_operand.hbm [shape: f32[32,64], index: 18, kind: input, shape index: {}]   ;;  %s4314_s19 = inlined_call_operand.vmem [shape: f32[1,64], index: 19, kind: input, shape index: {}]   ;;  %s4315_s20 = inlined_call_operand.hbm [shape: f32[32,32], index: 20, kind: input, shape index: {}]   ;;  %s4316_s21 = inlined_call_operand.vmem [shape: f32[1,32], index: 21, kind: input, shape index: {}]   ;;  %s4317_s22 = inlined_call_operand.vmem [shape: f32[32,1], index: 22, kind: input, shape index: {}]   ;;  %s4318_s23 = inlined_call_operand.<no memory space> [shape: f32[1,1], index: 23, kind: input, shape index: {}]   ;;  %s4319_s24 = inlined_call_operand.hbm [shape: f32[32,32], index: 24, kind: input, shape index: {}]   ;;  %s4320_s25 = inlined_call_operand.vmem [shape: f32[1,32], index: 25, kind: input, shape index: {}]   ;;  %s4321_s26 = inlined_call_operand.vmem [shape: f32[32,4], index: 26, kind: input, shape index: {}]   ;;  %s4322_s27 = inlined_call_operand.vmem [shape: f32[1,4], index: 27, kind: input, shape index: {}]   ;;  %s4323_s28 = inlined_call_operand.vmem [shape: f32[16,4], index: 28, kind: output, shape index: {}]  }
   0x1   :  { %4342 = sst [smem:[#allocation27_spill]] %s4295_s0  ;;  %v33_v0 = vstv %s4318_s23 }
   0x2   :  { %4343 = sst [smem:[#allocation28_spill]] %s4296_s1  ;;  %34 = vst [vmem:[#allocation3] sm:$0x1] %v33_v0 }
   0x3   :  { %4344 = sst [smem:[#allocation29_spill]] %s4297_s2 }
   0x4   :  { %4345 = sst [smem:[#allocation30_spill]] %s4298_s3 }
   0x5   :  { %4346 = sst [smem:[#allocation31_spill]] %s4299_s4 }
   0x6   :  { %4347 = sst [smem:[#allocation32_spill]] %s4300_s5 }
   0x7   :  { %4348 = sst [smem:[#allocation33_spill]] %s4301_s6 }
   0x8   :  { %4349 = sst [smem:[#allocation34_spill]] %s4302_s7 }
   0x9   :  { %4350 = sst [smem:[#allocation35_spill]] %s4303_s8 }
   0xa   :  { %4351 = sst [smem:[#allocation36_spill]] %s4304_s9 }
   0xb   :  { %4352 = sst [smem:[#allocation37_spill]] %s4305_s10 }
   0xc   :  { %4353 = sst [smem:[#allocation38_spill]] %s4306_s11 }
   0xd   :  { %4354 = sst [smem:[#allocation39_spill]] %s4307_s12 }
   0xe   :  { %35 = vsyncpa [#allocation5], 0 }
   0xf   :  { %36 = vsyncpa [#allocation7], 0 }
  0x10   :  { %37 = vsyncpa [#allocation10], 0 }
  0x11   :  { %38 = vsyncpa [#allocation13], 0 }
  0x12   :  { %39 = vsyncpa [#allocation16], 0 }
  0x13   :  { %40 = vsyncpa [#allocation19], 0  ;;  %s4355_s3 = sld [smem:[#allocation28_spill]]  ;;  %s3479_s10 = smov [#allocation6]  }
  0x14   :  { %s60_s0 = sshll.u32 %s3479_s10, 4  ;;  %s4356_s2 = sld [smem:[#allocation30_spill]]  ;;  %s61_s0 = int_to_ptr.vmem [resolvable:$true] %s60_s0 }
  0x15   :  { %s3480_s23 = smov 128   ;;  %s3481_s12 = smov 8  }
  0x16   :  { %s3482_s1 = smov [#allocation9]   ;;  %s4357_s9 = sld [smem:[#allocation37_spill]] }
  0x17   :  { %s87_s4 = sshll.u32 %s3482_s1, 4  ;;  %s152_s11 = sshll.u32 %s4311_s16, 4  ;;  %s88_s4 = int_to_ptr.vmem [resolvable:$true] %s87_s4  ;;  %s153_s11 = int_to_ptr.hbm [resolvable:$true] %s152_s11 }
  0x18   :  { %s3483_s29 = smov [#allocation12]   ;;  %s182_s5 = sshll.u32 %s4315_s20, 4  ;;  %s183_s5 = int_to_ptr.hbm [resolvable:$true] %s182_s5 }
  0x19   :  { %s58_s6 = sshll.u32 %s4355_s3, 4  ;;  %s3485_s3 = smov [#allocation18]   ;;  %s59_s6 = int_to_ptr.hbm [resolvable:$true] %s58_s6 }
  0x1a   :  { %s85_s7 = sshll.u32 %s4356_s2, 4  ;;  %s120_s2 = sshll.u32 %s3483_s29, 4  ;;  %s86_s7 = int_to_ptr.hbm [resolvable:$true] %s85_s7  ;;  %s121_s2 = int_to_ptr.vmem [resolvable:$true] %s120_s2 }
  0x1b   :  { %66 = dma.hbm_to_vmem [thread:$0]  %s59_s6, 512, %s61_s0, [#allocation7], %s3480_s23, %s3480_s23, %s3481_s12  }
  0x1c   :  { %s118_s30 = sshll.u32 %s4357_s9, 4  ;;  %s3484_s6 = smov [#allocation15]   ;;  %s119_s30 = int_to_ptr.hbm [resolvable:$true] %s118_s30 }
  0x1d   :  { %90 = dma.hbm_to_vmem [thread:$0]  %s86_s7, 16, %s88_s4, [#allocation10]  }
  0x1e   :  { %126 = dma.hbm_to_vmem [thread:$0]  %s119_s30, 1024, %s121_s2, [#allocation13], %s3480_s23, %s3480_s23, %s3481_s12  }
  0x1f   :  { %s154_s0 = sshll.u32 %s3484_s6, 4  ;;  %s4358_s4 = sld [smem:[#allocation27_spill]]  ;;  %s155_s0 = int_to_ptr.vmem [resolvable:$true] %s154_s0 }
  0x20   :  { %160 = dma.hbm_to_vmem [thread:$0]  %s153_s11, 512, %s155_s0, [#allocation16], %s3480_s23, %s3480_s23, %s3481_s12  }
  0x21   :  { %s184_s10 = sshll.u32 %s3485_s3, 4  ;;  %s3486_s30 = smov [#allocation4]   ;;  %s185_s10 = int_to_ptr.vmem [resolvable:$true] %s184_s10 }
  0x22   :  { %190 = dma.hbm_to_vmem [thread:$0]  %s183_s5, 512, %s185_s10, [#allocation19], %s3480_s23, %s3480_s23, %s3481_s12  }
  0x23   :  { %s47_s20 = sshll.u32 %s3486_s30, 4  ;;  %s4359_s6 = sld [smem:[#allocation29_spill]]  ;;  %s48_s20 = int_to_ptr.vmem [resolvable:$true] %s47_s20 }
  0x24   :  { %s4360_s8 = sld [smem:[#allocation33_spill]]  ;;  %s3487_s7 = smov [#allocation8]  }
  0x25   :  { %s45_s9 = sshll.u32 %s4358_s4, 4  ;;  %s73_s4 = sshll.u32 %s3487_s7, 4  ;;  %s46_s9 = int_to_ptr.hbm [resolvable:$true] %s45_s9  ;;  %s74_s4 = int_to_ptr.vmem [resolvable:$true] %s73_s4 }
  0x26   :  { %53 = dma.hbm_to_vmem [thread:$0]  %s46_s9, 256, %s48_s20, [#allocation5], %s3480_s23, %s3480_s23, %s3481_s12  }
  0x27   :  { %s3488_s5 = smov [#allocation11]   ;;  %s4361_s29 = sld [smem:[#allocation39_spill]] }
  0x28   :  { %s101_s3 = sshll.u32 %s3488_s5, 4  ;;  %s3489_s11 = smov [#allocation14]   ;;  %s102_s3 = int_to_ptr.vmem [resolvable:$true] %s101_s3 }
  0x29   :  { %s71_s1 = sshll.u32 %s4359_s6, 4  ;;  %s167_s6 = sshll.u32 %s4313_s18, 4  ;;  %s72_s1 = int_to_ptr.hbm [resolvable:$true] %s71_s1  ;;  %s168_s6 = int_to_ptr.hbm [resolvable:$true] %s167_s6 }
  0x2a   :  { %s99_s16 = sshll.u32 %s4360_s8, 4  ;;  %s135_s0 = sshll.u32 %s3489_s11, 4  ;;  %s100_s16 = int_to_ptr.hbm [resolvable:$true] %s99_s16  ;;  %s136_s0 = int_to_ptr.vmem [resolvable:$true] %s135_s0 }
  0x2b   :  { %79 = dma.hbm_to_vmem [thread:$0]  %s72_s1, 256, %s74_s4, [#allocation7], %s3480_s23, %s3480_s23, %s3481_s12  }
  0x2c   :  { %107 = dma.hbm_to_vmem [thread:$0]  %s100_s16, 1024, %s102_s3, [#allocation10], %s3480_s23, %s3480_s23, %s3481_s12  }
  0x2d   :  { %s133_s2 = sshll.u32 %s4361_s29, 4  ;;  %s3490_s1 = smov [#allocation17]   ;;  %s134_s2 = int_to_ptr.hbm [resolvable:$true] %s133_s2 }
  0x2e   :  { %141 = dma.hbm_to_vmem [thread:$0]  %s134_s2, 1024, %s136_s0, [#allocation13], %s3480_s23, %s3480_s23, %s3481_s12  }
  0x2f   :  { %s169_s8 = sshll.u32 %s3490_s1, 4  ;;  %s201_s5 = sshll.u32 %s4319_s24, 4  ;;  %s170_s8 = int_to_ptr.vmem [resolvable:$true] %s169_s8  ;;  %s202_s5 = int_to_ptr.hbm [resolvable:$true] %s201_s5 }
  0x30   :  { %175 = dma.hbm_to_vmem [thread:$0]  %s168_s6, 512, %s170_s8, [#allocation16], %s3480_s23, %s3480_s23, %s3481_s12  }
  0x31   :  { %s3491_s18 = smov [#allocation20]  }
  0x32   :  { %s203_s16 = sshll.u32 %s3491_s18, 4  ;;  %s204_s16 = int_to_ptr.vmem [resolvable:$true] %s203_s16 }
  0x33   :  { %209 = dma.hbm_to_vmem [thread:$0]  %s202_s5, 512, %s204_s16, [#allocation19], %s3480_s23, %s3480_s23, %s3481_s12  }
  0x34   :  { %3467 = dma.done.wait [#allocation5], 256  }
  0x35   :  { %3468 = vsyncadd [#allocation5], 4294967040 }
  0x36   :  { %3469 = dma.done.wait [#allocation7], 768  }
  0x37   :  { %3470 = vsyncadd [#allocation7], 4294966528 }
  0x38   :  { %3471 = dma.done.wait [#allocation10], 1040  }
  0x39   :  { %3472 = vsyncadd [#allocation10], 4294966256 }
  0x3a   :  { %3473 = dma.done.wait [#allocation13], 2048  }
  0x3b   :  { %3474 = vsyncadd [#allocation13], 4294965248 }
  0x3c   :  { %3475 = dma.done.wait [#allocation16], 1024  }
  0x3d   :  { %3476 = vsyncadd [#allocation16], 4294966272 }
  0x3e   :  { %3477 = dma.done.wait [#allocation19], 1024  }
  0x3f   :  { %3478 = vsyncadd [#allocation19], 4294966272  ;;  %v263_v1 = vld [vmem:[#allocation8 + $0x8] sm:$0xff]  ;;  %v262_v2 = vld [vmem:[#allocation8] sm:$0xff]  ;;  %vm268_vm0 = vcmask 130048   ;;  %s4362_s23 = sld [smem:[#allocation31_spill]] }
  0x40   :  { %v260_v3 = vld [vmem:[#allocation4] sm:$0xff]  ;;  %289 = vmatpush.msra.mxu0 %v263_v1  ;;  %v261_v8 = vld [vmem:[#allocation4 + $0x8] sm:$0xff]  ;;  %vm310_vm1 = vcmask 261120   ;;  %s4363_s11 = sld [smem:[#allocation32_spill]]  ;;  %s3492_s0 = smov 88   ;;  %vm350_vm2 = vcmask 64512  }
  0x41   :  { %v3071_v9 = vld [vmem:[#allocation9] ss:$0 sm:$0xff]  ;;  %s3493_s1 = smov 96   ;;  %s3494_s8 = smov 120   ;;  %v3760_v34 = vld [vmem:[#allocation11] sm:$0xff]  ;;  %v343_v46 = vld [vmem:[#allocation11 + $0x8] sm:$0xff] }
  0x42   :  { %290 = vmatpush.msra.mxu0 %v262_v2  ;;  %s4338_s7 = smov 56   ;;  %s4340_s4 = smov 112   ;;  %v344_v51 = vld [vmem:[#allocation11 + $0x10] sm:$0xff] }
  0x43   :  { %2927 = vmatmul.msk.f32.vlgmr.msra.gmra.mxu0 %vm268_vm0, %v260_v3  ;;  %s3497_s5 = smov 64   ;;  %s3498_s18 = smov 80  }
  0x44   :  { %519 = vmatpush.msrb.mxu0 %v3760_v34  ;;  %s4334_s16 = smov 48   ;;  %s4332_s24 = smov 104  }
  0x45   :  { %v305_v4 = vld [vmem:[%s4362_s23 + $0x18] sm:$0xff]  ;;  %v304_v5 = vld [vmem:[%s4362_s23 + $0x10] sm:$0xff]  ;;  %v303_v6 = vld [vmem:[%s4362_s23 + $0x8] sm:$0xff]  ;;  %s4336_s3 = smov 72   ;;  %s4330_s12 = smov 40  }
  0x46   :  { %329 = vmatpush.msra.mxu1 %v305_v4  ;;  %v302_v7 = vld [vmem:[%s4362_s23] sm:$0xff]  ;;  %s4364_s29 = sld [smem:[#allocation34_spill]]  ;;  %s4373_s9 = smov 40  }
  0x47   :  { %v3072_v12 = vld [vmem:[%s4363_s11] ss:$0 sm:$0xff]  ;;  %s4365_s20 = sld [smem:[#allocation35_spill]] }
  0x48   :  { %330 = vmatpush.msra.mxu1 %v304_v5  ;;  %s4366_s30 = sld [smem:[#allocation36_spill]] }
  0x49   :  { %s4367_s6 = sld [smem:[#allocation38_spill]] }
  0x4a   :  { %331 = vmatpush.msra.mxu1 %v303_v6 }
  0x4b   :  { %2928 = vmatmul.msk.f32.gmra.mxu0 %vm268_vm0, %v261_v8 }
  0x4c   :  { %332 = vmatpush.msra.mxu1 %v302_v7 }
  0xc0   :  { %v292_v10 = vpop.f32.mrf.mxu0 }
  0xc1   :  { %v3729_v11 = vadd.f32 %v3071_v9, %v292_v10 }
  0xc3   :  { %2929 = vmatmul.msk.f32.vlgmr.msra.gmra.mxu1 %vm310_vm1, %v3729_v11 }
  0xc8   :  { %v295_v16 = vpop.f32.mrf.mxu0 }
  0xc9   :  { %v3744_v17 = vadd.f32 %v3071_v9, %v295_v16 }
  0xcb   :  { %2930 = vmatmul.msk.f32.gmra.mxu1 %vm310_vm1, %v3744_v17 }
 0x140   :  { %v334_v13 = vpop.f32.mrf.mxu1 }
 0x141   :  { %v3736_v14 = vadd.f32 %v3072_v12, %v334_v13 }
 0x143   :  { %415 = vrot.lane.b32.xlu2 %v3736_v14, %s3492_s0  ;;  %348 = vrot.lane.b32.xlu0 %v3736_v14, %s3493_s1  ;;  %v340_v15 = vmul.f32 0.35355338, %v3736_v14 }
 0x148   :  { %v337_v19 = vpop.f32.mrf.mxu1 }
 0x149   :  { %v3770_v38 = vadd.f32 %v3072_v12, %v337_v19 }
 0x14b   :  { %413 = vrot.lane.b32.xlu2 %v340_v15, %s3494_s8  ;;  %v341_v7 = vmul.f32 0.35355338, %v3770_v38 }
 0x19d   :  { %v416_v30 = vpop.permute.xlu2 %415 }
 0x1a5   :  { %v414_v33 = vpop.permute.xlu2 %413 }
 0x1b5   :  { %v349_v18 = vpop.permute.xlu0 %348 }
 0x1b6   :  { %2931 = vmatpush.xpose.msk.msrb.mxu1 %vm350_vm2, %v349_v18 }
 0x1b9   :  { %2932 = vmatmul.msk.f32.vlgmr.msrb.gmra.mxu1 %vm350_vm2, %v340_v15 }
 0x236   :  { %v373_v20 = vpop.f32.mrf.mxu1 }
 0x237   :  { %v376_v21 = vsel %vm350_vm2, %v373_v20, -inf }
 0x238   :  { %377 = vmax.xlane.f32.xlu0 %v376_v21 }
 0x24c   :  { %452 = vrot.lane.b32.xlu0 %v3736_v14, %s4338_s7 }
 0x254   :  { %524 = vrot.lane.b32.xlu0 %v340_v15, %s4340_s4 }
 0x2ab   :  { %v378_v22 = vpop.xlane.xlu0 %377 }
 0x2ac   :  { %v379_v23 = vsub.f32 %v373_v20, %v378_v22 }
 0x2ae   :  { %v380_v24 = vmul.f32 1.442695, %v379_v23 }
 0x2b0   :  { %3097 = vpow2.f32 %v380_v24  ;;  %v3809_v24 = vld [vmem:[#allocation11 + $0x18] sm:$0xff] }
 0x2b6   :  { %v3098_v25 = vpop.eup %3097 }
 0x2b7   :  { %v382_v26 = vsel %vm350_vm2, %v3098_v25, 0.0 }
 0x2b8   :  { %383 = vadd.xlane.f32.xlu1 %v382_v26 }
 0x2be   :  { %v453_v27 = vpop.permute.xlu0 %452 }
 0x2bf   :  { %473 = vmatpush.msra.mxu2 %v453_v27 }
 0x2c6   :  { %v525_v50 = vpop.permute.xlu0 %524 }
 0x2d1   :  { %387 = vrot.lane.b32.xlu1 %v3736_v14, %s3497_s5 }
 0x32b   :  { %v384_v28 = vpop.xlane.xlu1 %383 }
 0x32c   :  { %3099 = vrcp.f32 %v384_v28 }
 0x332   :  { %v3100_v29 = vpop.eup %3099 }
 0x333   :  { %v386_v32 = vmul.f32 %v3100_v29, %v3098_v25 }
 0x343   :  { %v388_v31 = vpop.permute.xlu1 %387 }
 0x344   :  { %408 = vmatpush.msra.mxu3 %v388_v31 }
 0x345   :  { %2933 = vmatmul.msk.f32.vlgmr.msra.gmra.mxu3 %vm350_vm2, %v386_v32 }
 0x346   :  { %2934 = vmatpush.xpose.msk.msrb.mxu3 %vm350_vm2, %v416_v30 }
 0x34a   :  { %496 = vmatpush.msra.mxu3 %v343_v46 }
 0x34d   :  { %2935 = vmatmul.msk.f32.vlgmr.msrb.gmra.mxu3 %vm350_vm2, %v414_v33 }
 0x34e   :  { %607 = vmatpush.msrb.mxu3 %v344_v51 }
 0x3c8   :  { %v410_v35 = vpop.f32.mrf.mxu3 }
 0x3c9   :  { %2938 = vmatmul.msk.f32.vlgmr.msrb.gmra.mxu0 %vm350_vm2, %v410_v35 }
 0x3d0   :  { %v438_v36 = vpop.f32.mrf.mxu3 }
 0x3d1   :  { %v441_v37 = vsel %vm350_vm2, %v438_v36, -inf }
 0x3d2   :  { %442 = vmax.xlane.f32.xlu2 %v441_v37 }
 0x3ea   :  { %526 = vrot.lane.b32.xlu2 %v3736_v14, %s3498_s18 }
 0x3f2   :  { %563 = vrot.lane.b32.xlu2 %v3736_v14, %s4334_s16 }
 0x3fa   :  { %613 = vrot.lane.b32.xlu2 %v340_v15, %s4332_s24 }
 0x402   :  { %708 = vrot.lane.b32.xlu2 %v3770_v38, %s3493_s1 }
 0x445   :  { %v443_v39 = vpop.xlane.xlu2 %442 }
 0x446   :  { %v444_v40 = vsub.f32 %v438_v36, %v443_v39  ;;  %v3787_v2 = vpop.f32.mrf.mxu0 }
 0x448   :  { %v445_v41 = vmul.f32 1.442695, %v444_v40 }
 0x44a   :  { %3101 = vpow2.f32 %v445_v41 }
 0x44d   :  { %v527_v42 = vpop.permute.xlu2 %526 }
 0x44e   :  { %2939 = vmatpush.xpose.msk.msrb.mxu2 %vm350_vm2, %v527_v42  ;;  %v3825_v42 = vld [vmem:[%s4364_s29] ss:$0 sm:$0xff] }
 0x450   :  { %v3102_v43 = vpop.eup %3101 }
 0x451   :  { %v447_v44 = vsel %vm350_vm2, %v3102_v43, 0.0 }
 0x452   :  { %448 = vadd.xlane.f32.xlu1 %v447_v44 }
 0x455   :  { %v564_v45 = vpop.permute.xlu2 %563 }
 0x456   :  { %584 = vmatpush.msra.mxu1 %v564_v45 }
 0x458   :  { %696 = vmatpush.msrb.mxu1 %v3809_v24 }
 0x45d   :  { %v614_v52 = vpop.permute.xlu2 %613 }
 0x465   :  { %v709_v54 = vpop.permute.xlu2 %708 }
 0x4c5   :  { %v449_v47 = vpop.xlane.xlu1 %448 }
 0x4c6   :  { %3103 = vrcp.f32 %v449_v47 }
 0x4cc   :  { %v3104_v48 = vpop.eup %3103 }
 0x4cd   :  { %v451_v49 = vmul.f32 %v3104_v48, %v3102_v43 }
 0x4cf   :  { %2936 = vmatmul.msk.f32.vlgmr.msra.gmra.mxu2 %vm350_vm2, %v451_v49 }
 0x4d7   :  { %2940 = vmatmul.msk.f32.vlgmr.msrb.gmra.mxu2 %vm350_vm2, %v525_v50 }
 0x552   :  { %v475_v53 = vpop.f32.mrf.mxu2 }
 0x553   :  { %2937 = vmatmul.msk.f32.vlgmr.msra.gmra.mxu3 %vm350_vm2, %v475_v53 }
 0x554   :  { %2947 = vmatpush.xpose.msk.msra.mxu3 %vm350_vm2, %v709_v54 }
 0x55a   :  { %v549_v55 = vpop.f32.mrf.mxu2 }
 0x55b   :  { %v552_v56 = vsel %vm350_vm2, %v549_v55, -inf }
 0x55c   :  { %553 = vmax.xlane.f32.xlu1 %v552_v56 }
 0x575   :  { %615 = vrot.lane.b32.xlu1 %v3736_v14, %s4336_s3 }
 0x5cf   :  { %v554_v57 = vpop.xlane.xlu1 %553 }
 0x5d0   :  { %v555_v58 = vsub.f32 %v549_v55, %v554_v57 }
 0x5d2   :  { %v556_v59 = vmul.f32 1.442695, %v555_v58 }
 0x5d4   :  { %3105 = vpow2.f32 %v556_v59 }
 0x5d6   :  { %v498_v13 = vpop.f32.mrf.mxu3 }
 0x5d7   :  { %v522_v40 = vadd.f32 %v3787_v2, %v498_v13  ;;  %v3503_v2 = vmov 32.0  }
 0x5da   :  { %v3106_v60 = vpop.eup %3105 }
 0x5db   :  { %v558_v61 = vsel %vm350_vm2, %v3106_v60, 0.0 }
 0x5dc   :  { %559 = vadd.xlane.f32.xlu0 %v558_v61 }
 0x5e7   :  { %v616_v62 = vpop.permute.xlu1 %615 }
 0x5e8   :  { %2943 = vmatpush.xpose.msk.msra.mxu0 %vm350_vm2, %v616_v62 }
 0x5eb   :  { %2944 = vmatmul.msk.f32.vlgmr.msra.gmra.mxu0 %vm350_vm2, %v614_v52 }
 0x64f   :  { %v560_v63 = vpop.xlane.xlu0 %559 }
 0x650   :  { %3107 = vrcp.f32 %v560_v63 }
 0x656   :  { %v3108_v0 = vpop.eup %3107 }
 0x657   :  { %v562_v1 = vmul.f32 %v3108_v0, %v3106_v60 }
 0x659   :  { %2941 = vmatmul.msk.f32.vlgmr.msra.gmra.mxu1 %vm350_vm2, %v562_v1 }
 0x668   :  { %v638_v3 = vpop.f32.mrf.mxu0 }
 0x669   :  { %v641_v4 = vsel %vm350_vm2, %v638_v3, -inf }
 0x66a   :  { %642 = vmax.xlane.f32.xlu2 %v641_v4 }
 0x6d6   :  { %v586_v5 = vpop.f32.mrf.mxu1 }
 0x6d7   :  { %2942 = vmatmul.msk.f32.vlgmr.msrb.gmra.mxu3 %vm350_vm2, %v586_v5 }
 0x6d8   :  { %855 = vmatpush.msrb.mxu3 %v343_v46 }
 0x6dd   :  { %v643_v6 = vpop.xlane.xlu2 %642 }
 0x6de   :  { %v644_v8 = vsub.f32 %v638_v3, %v643_v6 }
 0x6df   :  { %2948 = vmatmul.msk.f32.vlgmr.msra.gmra.mxu3 %vm350_vm2, %v341_v7 }
 0x6e0   :  { %v645_v9 = vmul.f32 1.442695, %v644_v8  ;;  %966 = vmatpush.msra.mxu3 %v344_v51 }
 0x6e2   :  { %3109 = vpow2.f32 %v645_v9 }
 0x6e8   :  { %v3110_v10 = vpop.eup %3109 }
 0x6e9   :  { %v647_v12 = vsel %vm350_vm2, %v3110_v10, 0.0 }
 0x6ea   :  { %648 = vadd.xlane.f32.xlu0 %v647_v12 }
 0x6fe   :  { %652 = vrot.lane.b32.xlu0 %v3736_v14, %s4330_s12 }
 0x706   :  { %774 = vrot.lane.b32.xlu0 %v3770_v38, %s3492_s0 }
 0x70e   :  { %885 = vrot.lane.b32.xlu0 %v3770_v38, %s3498_s18 }
 0x716   :  { %883 = vrot.lane.b32.xlu0 %v341_v7, %s4340_s4  ;;  %s4369_s4 = smov 56  }
 0x71e   :  { %974 = vrot.lane.b32.xlu0 %v3770_v38, %s4336_s3  ;;  %s4372_s3 = smov 104  }
 0x75a   :  { %v609_v15 = vpop.f32.mrf.mxu3 }
 0x75b   :  { %v612_v41 = vadd.f32 %v609_v15, %v522_v40 }
 0x75d   :  { %v649_v19 = vpop.xlane.xlu0 %648 }
 0x75e   :  { %3111 = vrcp.f32 %v649_v19 }
 0x762   :  { %v732_v16 = vpop.f32.mrf.mxu3 }
 0x763   :  { %v735_v18 = vsel %vm350_vm2, %v732_v16, -inf }
 0x764   :  { %736 = vmax.xlane.f32.xlu1 %v735_v18  ;;  %v3112_v14 = vpop.eup %3111 }
 0x765   :  { %v651_v20 = vmul.f32 %v3112_v14, %v3110_v10 }
 0x770   :  { %v653_v21 = vpop.permute.xlu0 %652 }
 0x771   :  { %673 = vmatpush.msra.mxu2 %v653_v21 }
 0x772   :  { %2945 = vmatmul.msk.f32.vlgmr.msra.gmra.mxu2 %vm350_vm2, %v651_v20 }
 0x778   :  { %v775_v22 = vpop.permute.xlu0 %774 }
 0x779   :  { %2950 = vmatpush.xpose.msk.msrb.mxu2 %vm350_vm2, %v775_v22 }
 0x77d   :  { %772 = vrot.lane.b32.xlu1 %v341_v7, %s3494_s8 }
 0x780   :  { %v886_v23 = vpop.permute.xlu0 %885 }
 0x781   :  { %2955 = vmatpush.xpose.msk.msra.mxu2 %vm350_vm2, %v886_v23 }
 0x785   :  { %972 = vrot.lane.b32.xlu1 %v341_v7, %s4332_s24  ;;  %s3504_s24 = smov 32  }
 0x788   :  { %v884_v32 = vpop.permute.xlu0 %883 }
 0x790   :  { %v975_v39 = vpop.permute.xlu0 %974 }
 0x7d7   :  { %v737_v25 = vpop.xlane.xlu1 %736 }
 0x7d8   :  { %v738_v26 = vsub.f32 %v732_v16, %v737_v25 }
 0x7da   :  { %v739_v27 = vmul.f32 1.442695, %v738_v26 }
 0x7dc   :  { %3113 = vpow2.f32 %v739_v27 }
 0x7e2   :  { %v3114_v28 = vpop.eup %3113 }
 0x7e3   :  { %v741_v29 = vsel %vm350_vm2, %v3114_v28, 0.0 }
 0x7e4   :  { %742 = vadd.xlane.f32.xlu2 %v741_v29 }
 0x7ef   :  { %v773_v30 = vpop.permute.xlu1 %772 }
 0x7f0   :  { %2951 = vmatmul.msk.f32.vlgmr.msrb.gmra.mxu2 %vm350_vm2, %v773_v30  ;;  %v1133_v30 = vld [vmem:[#allocation12 + $0x18] sm:$0xff] }
 0x7f5   :  { %v675_v31 = vpop.f32.mrf.mxu2 }
 0x7f6   :  { %2946 = vmatmul.msk.f32.vlgmr.msrb.gmra.mxu1 %vm350_vm2, %v675_v31 }
 0x7f7   :  { %v973_v50 = vpop.permute.xlu1 %972 }
 0x7f8   :  { %2956 = vmatmul.msk.f32.vlgmr.msra.gmra.mxu2 %vm350_vm2, %v884_v32  ;;  %v1132_v32 = vld [vmem:[#allocation12 + $0x10] sm:$0xff] }
 0x7fc   :  { %746 = vrot.lane.b32.xlu2 %v3770_v38, %s3497_s5 }
 0x857   :  { %v743_v33 = vpop.xlane.xlu2 %742 }
 0x858   :  { %3115 = vrcp.f32 %v743_v33  ;;  %v1131_v33 = vld [vmem:[#allocation12 + $0x8] sm:$0xff] }
 0x85e   :  { %v3116_v35 = vpop.eup %3115 }
 0x85f   :  { %v745_v36 = vmul.f32 %v3116_v35, %v3114_v28  ;;  %v747_v37 = vpop.permute.xlu2 %746 }
 0x860   :  { %767 = vmatpush.msrb.mxu0 %v747_v37 }
 0x861   :  { %2949 = vmatmul.msk.f32.vlgmr.msrb.gmra.mxu0 %vm350_vm2, %v745_v36  ;;  %v1130_v36 = vld [vmem:[#allocation12] sm:$0xff] }
 0x862   :  { %878 = vmatpush.msra.mxu0 %v3760_v34 }
 0x864   :  { %2959 = vmatpush.xpose.msk.msrb.mxu0 %vm350_vm2, %v975_v39 }
 0x873   :  { %v698_v43 = vpop.f32.mrf.mxu1  ;;  %v797_v44 = vpop.f32.mrf.mxu2 }
 0x874   :  { %v701_v45 = vadd.f32 %v698_v43, %v612_v41  ;;  %v800_v46 = vsel %vm350_vm2, %v797_v44, -inf }
 0x875   :  { %801 = vmax.xlane.f32.xlu2 %v800_v46 }
 0x876   :  { %v705_v47 = vadd.f32 %v3825_v42, %v701_v45 }
 0x878   :  { %706 = vst.msk [vmem:[#allocation2] sm:$0xff] %vm310_vm1, %v705_v47  ;;  %v3860_v47 = vld [vmem:[%s4365_s20] ss:$0 sm:$0xff] }
 0x87b   :  { %v908_v34 = vpop.f32.mrf.mxu2 }
 0x87c   :  { %v911_v48 = vsel %vm350_vm2, %v908_v34, -inf }
 0x87d   :  { %912 = vmax.xlane.f32.xlu0 %v911_v48 }
 0x87f   :  { %v1063_v61 = vld [vmem:[#allocation2] sm:$0xff] }
 0x880   :  { %v1065_v62 = vadd.f32 %v1063_v61, %v3729_v11 }
 0x882   :  { %v1069_v0 = vsel %vm310_vm1, %v1065_v62, 0.0 }
 0x891   :  { %811 = vrot.lane.b32.xlu0 %v3770_v38, %s4338_s7 }
 0x8de   :  { %v769_v49 = vpop.f32.mrf.mxu0 }
 0x8df   :  { %2954 = vmatmul.msk.f32.vlgmr.msra.gmra.mxu0 %vm350_vm2, %v769_v49  ;;  %v3865_v49 = vld [vmem:[%s4366_s30] ss:$0 sm:$0xff] }
 0x8e7   :  { %2960 = vmatmul.msk.f32.vlgmr.msrb.gmra.mxu0 %vm350_vm2, %v973_v50 }
 0x8e8   :  { %v802_v51 = vpop.xlane.xlu2 %801 }
 0x8e9   :  { %v803_v52 = vsub.f32 %v797_v44, %v802_v51 }
 0x8eb   :  { %v804_v53 = vmul.f32 1.442695, %v803_v52 }
 0x8ed   :  { %3117 = vpow2.f32 %v804_v53 }
 0x8f0   :  { %v913_v54 = vpop.xlane.xlu0 %912 }
 0x8f1   :  { %v914_v55 = vsub.f32 %v908_v34, %v913_v54 }
 0x8f3   :  { %v3118_v56 = vpop.eup %3117  ;;  %v915_v57 = vmul.f32 1.442695, %v914_v55  ;;  %v1172_v55 = vld [vmem:[#allocation14 + $0x18] sm:$0xff] }
 0x8f4   :  { %v806_v58 = vsel %vm350_vm2, %v3118_v56, 0.0  ;;  %1195 = vmatpush.msra.mxu0 %v1172_v55 }
 0x8f5   :  { %3119 = vpow2.f32 %v915_v57  ;;  %807 = vadd.xlane.f32.xlu1 %v806_v58  ;;  %v1170_v57 = vld [vmem:[#allocation14 + $0x8] sm:$0xff]  ;;  %v1169_v58 = vld [vmem:[#allocation14] sm:$0xff] }
 0x8f6   :  { %3121 = vrcp.f32 %v3503_v2 }
 0x8fb   :  { %v3120_v59 = vpop.eup %3119 }
 0x8fc   :  { %v917_v60 = vsel %vm350_vm2, %v3120_v59, 0.0  ;;  %v3122_v3 = vpop.eup %3121 }
 0x8fd   :  { %918 = vadd.xlane.f32.xlu2 %v917_v60  ;;  %v1076_v11 = vmul.f32 32.0, %v3122_v3  ;;  %vm1080_vm3 = vweird.f32 %v3122_v3 }
 0x8ff   :  { %v1077_v7 = vsub.f32 1.0, %v1076_v11 }
 0x901   :  { %v1078_v8 = vmul.f32 %v3122_v3, %v1077_v7 }
 0x903   :  { %v812_v63 = vpop.permute.xlu0 %811 }
 0x904   :  { %832 = vmatpush.msra.mxu1 %v812_v63  ;;  %v3875_v63 = vld [vmem:[%s4367_s6] ss:$0 sm:$0xff] }
 0x905   :  { %1070 = vadd.xlane.f32.xlu2 %v1069_v0 }
 0x90e   :  { %922 = vrot.lane.b32.xlu1 %v3770_v38, %s4334_s16  ;;  %s4370_s16 = smov 72  }
 0x916   :  { %1011 = vrot.lane.b32.xlu1 %v3770_v38, %s4330_s12  ;;  %v1079_v38 = vadd.f32 %v3122_v3, %v1078_v8 }
 0x918   :  { %v3847_v13 = vsel %vm1080_vm3, %v3122_v3, %v1079_v38 }
 0x95c   :  { %v3843_v1 = vpop.f32.mrf.mxu0 }
 0x964   :  { %v997_v4 = vpop.f32.mrf.mxu0 }
 0x965   :  { %v1000_v5 = vsel %vm350_vm2, %v997_v4, -inf }
 0x966   :  { %1001 = vmax.xlane.f32.xlu2 %v1000_v5 }
 0x968   :  { %v808_v6 = vpop.xlane.xlu1 %807 }
 0x969   :  { %3123 = vrcp.f32 %v808_v6 }
 0x96f   :  { %v3124_v9 = vpop.eup %3123 }
 0x970   :  { %v810_v10 = vmul.f32 %v3124_v9, %v3118_v56  ;;  %v919_v12 = vpop.xlane.xlu2 %918  ;;  %v1171_v56 = vld [vmem:[#allocation14 + $0x10] sm:$0xff] }
 0x971   :  { %3125 = vrcp.f32 %v919_v12  ;;  %1196 = vmatpush.msra.mxu0 %v1171_v56 }
 0x972   :  { %2952 = vmatmul.msk.f32.vlgmr.msra.gmra.mxu1 %vm350_vm2, %v810_v10 }
 0x973   :  { %1197 = vmatpush.msra.mxu0 %v1170_v57 }
 0x975   :  { %1198 = vmatpush.msra.mxu0 %v1169_v58  ;;  %v3915_v58 = vld [vmem:[%s4309_s14] ss:$0 sm:$0xff] }
 0x977   :  { %v3126_v19 = vpop.eup %3125 }
 0x978   :  { %v1071_v15 = vpop.xlane.xlu2 %1070  ;;  %v921_v21 = vmul.f32 %v3126_v19, %v3120_v59 }
 0x979   :  { %v1082_v16 = vmul.f32 %v3847_v13, %v1071_v15 }
 0x97b   :  { %v1084_v18 = vsub.f32 %v1065_v62, %v1082_v16 }
 0x97d   :  { %v1086_v14 = vmul.f32 %v1084_v18, %v1084_v18 }
 0x97f   :  { %v1088_v20 = vsel %vm310_vm1, %v1086_v14, 0.0 }
 0x980   :  { %1089 = vadd.xlane.f32.xlu0 %v1088_v20  ;;  %v923_v22 = vpop.permute.xlu1 %922 }
 0x981   :  { %943 = vmatpush.msrb.mxu1 %v923_v22 }
 0x982   :  { %2957 = vmatmul.msk.f32.vlgmr.msrb.gmra.mxu1 %vm350_vm2, %v921_v21 }
 0x983   :  { %1055 = vmatpush.msra.mxu1 %v3809_v24 }
 0x988   :  { %v1012_v23 = vpop.permute.xlu1 %1011 }
 0x989   :  { %1032 = vmatpush.msrb.mxu2 %v1012_v23 }
 0x9d9   :  { %v1002_v25 = vpop.xlane.xlu2 %1001 }
 0x9da   :  { %v1003_v26 = vsub.f32 %v997_v4, %v1002_v25 }
 0x9dc   :  { %v1004_v27 = vmul.f32 1.442695, %v1003_v26  ;;  %v1333_v26 = vld [vmem:[#allocation17 + $0x18] sm:$0xff] }
 0x9de   :  { %3127 = vpow2.f32 %v1004_v27  ;;  %v3898_v27 = vld [vmem:[#allocation6 + $0x10] sm:$0xff] }
 0x9e4   :  { %v3128_v28 = vpop.eup %3127 }
 0x9e5   :  { %v1006_v29 = vsel %vm350_vm2, %v3128_v28, 0.0 }
 0x9e6   :  { %1007 = vadd.xlane.f32.xlu2 %v1006_v29 }
 0x9ef   :  { %v834_v31 = vpop.f32.mrf.mxu1 }
 0x9f0   :  { %2953 = vmatmul.msk.f32.vlgmr.msrb.gmra.mxu3 %vm350_vm2, %v834_v31  ;;  %v1331_v31 = vld [vmem:[#allocation17 + $0x8] sm:$0xff] }
 0x9f1   :  { %1156 = vmatpush.msrb.mxu3 %v1133_v30  ;;  %v3900_v30 = vld [vmem:[#allocation6 + $0x8] sm:$0xff] }
 0x9f3   :  { %v1090_v35 = vpop.xlane.xlu0 %1089  ;;  %1157 = vmatpush.msrb.mxu3 %v1132_v32 }
 0x9f4   :  { %v1094_v24 = vmul.f32 %v1090_v35, %v3847_v13  ;;  %v1330_v35 = vld [vmem:[#allocation17] sm:$0xff] }
 0x9f5   :  { %1158 = vmatpush.msrb.mxu3 %v1131_v33  ;;  %v3904_v33 = vld [vmem:[#allocation6] sm:$0xff] }
 0x9f6   :  { %v1096_v37 = vadd.f32 1e-05, %v1094_v24 }
 0x9f7   :  { %1159 = vmatpush.msrb.mxu3 %v1130_v36 }
 0x9f8   :  { %3129 = vrsqrt.f32 %v1096_v37  ;;  %vm1104_vm5 = vweird.f32 %v1096_v37 }
 0x9fe   :  { %v3130_v39 = vpop.eup %3129 }
 0x9ff   :  { %v1099_v40 = vmul.f32 %v3130_v39, %v1096_v37  ;;  %v945_v41 = vpop.f32.mrf.mxu1  ;;  %vm1105_vm4 = vweird.f32 %v3130_v39 }
 0xa00   :  { %2958 = vmatmul.msk.f32.vlgmr.msra.gmra.mxu3 %vm350_vm2, %v945_v41  ;;  %vm1106_vm6 = vmor %vm1104_vm5, %vm1105_vm4 }
 0xa01   :  { %v1100_v43 = vmul.f32 %v3130_v39, %v1099_v40  ;;  %1350 = vmatpush.msra.mxu3 %v1333_v26 }
 0xa03   :  { %v1101_v44 = vmul.f32 0.5, %v1100_v43 }
 0xa05   :  { %v1102_v45 = vsub.f32 1.5, %v1101_v44 }
 0xa07   :  { %v1103_v46 = vmul.f32 %v3130_v39, %v1102_v45 }
 0xa09   :  { %v1107_v34 = vsel %vm1106_vm6, %v3130_v39, %v1103_v46 }
 0xa0a   :  { %v1118_v48 = vmul.f32 %v1107_v34, %v1084_v18 }
 0xa0c   :  { %v1123_v50 = vmul.f32 %v3860_v47, %v1118_v48 }
 0xa0e   :  { %v1128_v51 = vadd.f32 %v3865_v49, %v1123_v50 }
 0xa10   :  { %2963 = vmatmul.msk.f32.vlgmr.msrb.gmra.mxu3 %vm310_vm1, %v1128_v51 }
 0xa59   :  { %v1008_v52 = vpop.xlane.xlu2 %1007 }
 0xa5a   :  { %3131 = vrcp.f32 %v1008_v52 }
 0xa60   :  { %v3132_v53 = vpop.eup %3131 }
 0xa61   :  { %v1010_v54 = vmul.f32 %v3132_v53, %v3128_v28  ;;  %v1332_v28 = vld [vmem:[#allocation17 + $0x10] sm:$0xff] }
 0xa62   :  { %1351 = vmatpush.msra.mxu3 %v1332_v28 }
 0xa63   :  { %2961 = vmatmul.msk.f32.vlgmr.msrb.gmra.mxu2 %vm350_vm2, %v1010_v54 }
 0xa64   :  { %1352 = vmatpush.msra.mxu3 %v1331_v31 }
 0xa66   :  { %1353 = vmatpush.msra.mxu3 %v1330_v35 }
 0xa73   :  { %v857_v59 = vpop.f32.mrf.mxu3 }
 0xa74   :  { %v881_v60 = vadd.f32 %v3843_v1, %v857_v59  ;;  %v3883_v1 = vld [vmem:[%s4308_s13] ss:$0 sm:$0xff] }
 0xa83   :  { %v968_v61 = vpop.f32.mrf.mxu3 }
 0xa84   :  { %v971_v62 = vadd.f32 %v968_v61, %v881_v60 }
 0xa93   :  { %v1161_v0 = vpop.f32.mrf.mxu3 }
 0xa94   :  { %v1162_v2 = vadd.f32 %v3875_v63, %v1161_v0  ;;  %v1295_v0 = vld [vmem:[#allocation15 + $0x10] sm:$0xff] }
 0xa96   :  { %v1167_v3 = vmax.f32 %v1162_v2, 0.0  ;;  %v1294_v2 = vld [vmem:[#allocation15 + $0x8] sm:$0xff] }
 0xa98   :  { %2965 = vmatmul.msk.f32.vlgmr.msra.gmra.mxu0 %vm310_vm1, %v1167_v3  ;;  %v1293_v3 = vld [vmem:[#allocation15] sm:$0xff] }
 0xae6   :  { %v1034_v4 = vpop.f32.mrf.mxu2 }
 0xae7   :  { %2962 = vmatmul.msk.f32.vlgmr.msra.gmra.mxu1 %vm350_vm2, %v1034_v4 }
 0xb15   :  { %v1200_v5 = vpop.f32.mrf.mxu0 }
 0xb16   :  { %v1201_v11 = vadd.f32 %v3883_v1, %v1200_v5 }
 0xb18   :  { %v1206_v6 = vadd.f32 %v1201_v11, %v1128_v51 }
 0xb1a   :  { %v1210_v7 = vsel %vm310_vm1, %v1206_v6, 0.0 }
 0xb1b   :  { %1211 = vadd.xlane.f32.xlu1 %v1210_v7 }
 0xb64   :  { %v1057_v8 = vpop.f32.mrf.mxu1 }
 0xb65   :  { %v1060_v9 = vadd.f32 %v1057_v8, %v971_v62  ;;  %v1296_v62 = vld [vmem:[#allocation15 + $0x18] sm:$0xff]  ;;  %v3938_v8 = vld [vmem:[%s4314_s19] ss:$0 sm:$0xff] }
 0xb66   :  { %1319 = vmatpush.msrb.mxu1 %v1296_v62 }
 0xb67   :  { %v1061_v10 = vadd.f32 %v3825_v42, %v1060_v9 }
 0xb68   :  { %1320 = vmatpush.msrb.mxu1 %v1295_v0 }
 0xb69   :  { %1062 = vst.msk [vmem:[#allocation2 + $0x8] sm:$0xff] %vm310_vm1, %v1061_v10  ;;  %v3944_v10 = vld [vmem:[%s4312_s17] ss:$0 sm:$0xff] }
 0xb6a   :  { %1321 = vmatpush.msrb.mxu1 %v1294_v2 }
 0xb6c   :  { %1322 = vmatpush.msrb.mxu1 %v1293_v3 }
 0xb70   :  { %v1064_v12 = vld [vmem:[#allocation2 + $0x8] sm:$0xff] }
 0xb71   :  { %v1066_v38 = vadd.f32 %v1064_v12, %v3744_v17  ;;  %v3895_v17 = vld [vmem:[#allocation6 + $0x18] sm:$0xff] }
 0xb72   :  { %1282 = vmatpush.msra.mxu2 %v3895_v17 }
 0xb73   :  { %v1072_v15 = vsel %vm310_vm1, %v1066_v38, 0.0 }
 0xb74   :  { %1073 = vadd.xlane.f32.xlu2 %v1072_v15  ;;  %1283 = vmatpush.msra.mxu2 %v3898_v27 }
 0xb76   :  { %1284 = vmatpush.msra.mxu2 %v3900_v30 }
 0xb78   :  { %1285 = vmatpush.msra.mxu2 %v3904_v33 }
 0xb8e   :  { %v1212_v16 = vpop.xlane.xlu1 %1211 }
 0xb8f   :  { %v1216_v14 = vmul.f32 %v1212_v16, %v3847_v13 }
 0xb91   :  { %v1218_v22 = vsub.f32 %v1206_v6, %v1216_v14 }
 0xb93   :  { %v1220_v42 = vmul.f32 %v1218_v22, %v1218_v22 }
 0xb95   :  { %v1222_v25 = vsel %vm310_vm1, %v1220_v42, 0.0 }
 0xbe7   :  { %v1074_v18 = vpop.xlane.xlu2 %1073 }
 0xbe8   :  { %v1083_v19 = vmul.f32 %v3847_v13, %v1074_v18 }
 0xbea   :  { %v1085_v20 = vsub.f32 %v1066_v38, %v1083_v19 }
 0xbec   :  { %v1087_v21 = vmul.f32 %v1085_v20, %v1085_v20 }
 0xbee   :  { %v1091_v23 = vsel %vm310_vm1, %v1087_v21, 0.0 }
 0xbef   :  { %1092 = vadd.xlane.f32.xlu2 %v1091_v23 }
 0xbf7   :  { %1223 = vadd.xlane.f32.xlu2 %v1222_v25 }
 0xc62   :  { %v1093_v29 = vpop.xlane.xlu2 %1092 }
 0xc63   :  { %v1095_v32 = vmul.f32 %v1093_v29, %v3847_v13 }
 0xc65   :  { %v1097_v24 = vadd.f32 1e-05, %v1095_v32 }
 0xc67   :  { %3133 = vrsqrt.f32 %v1097_v24  ;;  %vm1114_vm8 = vweird.f32 %v1097_v24 }
 0xc6a   :  { %v1224_v36 = vpop.xlane.xlu2 %1223 }
 0xc6b   :  { %v1228_v37 = vmul.f32 %v1224_v36, %v3847_v13 }
 0xc6d   :  { %v3134_v39 = vpop.eup %3133  ;;  %v1230_v40 = vadd.f32 1e-05, %v1228_v37  ;;  %v3082_v37 = vld [vmem:[%s4316_s21] ss:$0 sm:$0xff] }
 0xc6e   :  { %v1109_v41 = vmul.f32 %v3134_v39, %v1097_v24  ;;  %vm1115_vm7 = vweird.f32 %v3134_v39 }
 0xc6f   :  { %3135 = vrsqrt.f32 %v1230_v40  ;;  %vm1116_vm9 = vmor %vm1114_vm8, %vm1115_vm7  ;;  %vm1238_vm11 = vweird.f32 %v1230_v40 }
 0xc70   :  { %v1110_v43 = vmul.f32 %v3134_v39, %v1109_v41  ;;  %v1410_v41 = vld [vmem:[#allocation18 + $0x8] sm:$0xff] }
 0xc72   :  { %v1111_v44 = vmul.f32 0.5, %v1110_v43  ;;  %v1409_v43 = vld [vmem:[#allocation18] sm:$0xff] }
 0xc74   :  { %v1112_v45 = vsub.f32 1.5, %v1111_v44 }
 0xc75   :  { %v3136_v46 = vpop.eup %3135 }
 0xc76   :  { %v1113_v34 = vmul.f32 %v3134_v39, %v1112_v45  ;;  %v1233_v48 = vmul.f32 %v3136_v46, %v1230_v40  ;;  %vm1239_vm10 = vweird.f32 %v3136_v46  ;;  %v1411_v40 = vld [vmem:[#allocation18 + $0x10] sm:$0xff] }
 0xc77   :  { %vm1240_vm12 = vmor %vm1238_vm11, %vm1239_vm10 }
 0xc78   :  { %v1117_v50 = vsel %vm1116_vm9, %v3134_v39, %v1113_v34  ;;  %v1234_v51 = vmul.f32 %v3136_v46, %v1233_v48  ;;  %v1412_v39 = vld [vmem:[#allocation18 + $0x18] sm:$0xff] }
 0xc79   :  { %v1119_v52 = vmul.f32 %v1117_v50, %v1085_v20  ;;  %1435 = vmatpush.msrb.mxu0 %v1412_v39 }
 0xc7a   :  { %v1235_v53 = vmul.f32 0.5, %v1234_v51 }
 0xc7b   :  { %v1124_v54 = vmul.f32 %v3860_v47, %v1119_v52  ;;  %v3920_v47 = vld [vmem:[%s4310_s15] ss:$0 sm:$0xff]  ;;  %1436 = vmatpush.msrb.mxu0 %v1411_v40 }
 0xc7c   :  { %v1236_v55 = vsub.f32 1.5, %v1235_v53 }
 0xc7d   :  { %v1129_v56 = vadd.f32 %v3865_v49, %v1124_v54  ;;  %1437 = vmatpush.msrb.mxu0 %v1410_v41 }
 0xc7e   :  { %v1237_v57 = vmul.f32 %v3136_v46, %v1236_v55 }
 0xc7f   :  { %2964 = vmatmul.msk.f32.gmra.mxu3 %vm310_vm1, %v1129_v56  ;;  %1438 = vmatpush.msrb.mxu0 %v1409_v43  ;;  %v4003_v43 = vld [vmem:[%s4363_s11 + $0x1] ss:$0 sm:$0xff]  ;;  %s4368_s11 = smov 112  }
 0xc80   :  { %v1241_v59 = vsel %vm1240_vm12, %v3136_v46, %v1237_v57 }
 0xc81   :  { %v1252_v60 = vmul.f32 %v1241_v59, %v1218_v22 }
 0xc83   :  { %v1257_v61 = vmul.f32 %v3915_v58, %v1252_v60 }
 0xc85   :  { %v3924_v49 = vadd.f32 %v3920_v47, %v1257_v61 }
 0xc87   :  { %1401 = vrot.lane.b32.xlu2 %v3924_v49, %s3504_s24  ;;  %2967 = vmatmul.msk.f32.vlgmr.msra.gmra.mxu2 %vm310_vm1, %v3924_v49 }
 0xc88   :  { %2971 = vmatmul.msk.f32.vlgmr.msra.gmra.mxu3 %vm310_vm1, %v3924_v49 }
 0xce1   :  { %v1402_v35 = vpop.permute.xlu2 %1401 }
 0xd02   :  { %v1164_v4 = vpop.f32.mrf.mxu3 }
 0xd03   :  { %v1165_v5 = vadd.f32 %v3875_v63, %v1164_v4 }
 0xd05   :  { %v1168_v11 = vmax.f32 %v1165_v5, 0.0 }
 0xd07   :  { %2966 = vmatmul.msk.f32.gmra.mxu0 %vm310_vm1, %v1168_v11  ;;  %v2976_v11 = vld [vmem:[%s4362_s23 + $0x28] sm:$0xff] }
 0xd0a   :  { %v1287_v6 = vpop.f32.mrf.mxu2 }
 0xd0b   :  { %2969 = vmatmul.msk.f32.vlgmr.msrb.gmra.mxu1 %vm310_vm1, %v1287_v6  ;;  %v1355_v63 = vpop.f32.mrf.mxu3 }
 0xd0c   :  { %v1356_v15 = vadd.f32 %v3938_v8, %v1355_v63 }
 0xd84   :  { %v1203_v7 = vpop.f32.mrf.mxu0 }
 0xd85   :  { %v1204_v9 = vadd.f32 %v3883_v1, %v1203_v7 }
 0xd87   :  { %v1207_v12 = vadd.f32 %v1204_v9, %v1129_v56 }
 0xd88   :  { %v1324_v38 = vpop.f32.mrf.mxu1 }
 0xd89   :  { %v3948_v16 = vadd.f32 %v3944_v10, %v1324_v38  ;;  %v1213_v18 = vsel %vm310_vm1, %v1207_v12, 0.0 }
 0xd8a   :  { %1214 = vadd.xlane.f32.xlu0 %v1213_v18 }
 0xd8b   :  { %v1361_v19 = vadd.f32 %v1356_v15, %v3948_v16 }
 0xd8d   :  { %v1363_v14 = vsub.f32 0.0, %v1361_v19 }
 0xd8f   :  { %v1365_v1 = vmul.f32 1.442695, %v1363_v14 }
 0xd91   :  { %3137 = vpow2.f32 %v1365_v1 }
 0xd97   :  { %v3138_v20 = vpop.eup %3137 }
 0xd98   :  { %v1369_v21 = vadd.f32 1.0, %v3138_v20 }
 0xd9a   :  { %3139 = vrcp.f32 %v1369_v21  ;;  %v1382_v25 = vand.u32 2147483648, %v1369_v21  ;;  %v1380_v28 = vand.u32 2147483647, %v1369_v21  ;;  %vm1376_vm14 = vweird.f32 %v1369_v21 }
 0xd9c   :  { %v1383_v31 = vor.u32 1.1754944e-38, %v1382_v25  ;;  %vm1381_vm0 = vcmp.eq.f32.partialorder %v1380_v28, 8.507059e+37 }
 0xda0   :  { %v3140_v22 = vpop.eup %3139 }
 0xda1   :  { %v1372_v23 = vmul.f32 %v3140_v22, %v1369_v21  ;;  %vm1377_vm13 = vweird.f32 %v3140_v22 }
 0xda2   :  { %vm1378_vm15 = vmor %vm1376_vm14, %vm1377_vm13 }
 0xda3   :  { %v1373_v42 = vsub.f32 1.0, %v1372_v23 }
 0xda5   :  { %v1374_v26 = vmul.f32 %v3140_v22, %v1373_v42 }
 0xda7   :  { %v1375_v29 = vadd.f32 %v3140_v22, %v1374_v26 }
 0xda9   :  { %v1379_v32 = vsel %vm1378_vm15, %v3140_v22, %v1375_v29 }
 0xdaa   :  { %v1384_v24 = vsel %vm1381_vm0, %v1383_v31, %v1379_v32 }
 0xdab   :  { %v1407_v36 = vmul.f32 %v1402_v35, %v1384_v24  ;;  %v1476_v4 = vsub.f32 1.0, %v1384_v24 }
 0xdad   :  { %1415 = vrot.lane.b32.xlu0 %v1407_v36, %s3493_s1  ;;  %v1478_v5 = vmul.f32 %v1476_v4, %v3924_v49  ;;  %v2975_v49 = vld [vmem:[%s4362_s23 + $0x20] sm:$0xff] }
 0xdb5   :  { %1459 = vrot.lane.b32.xlu0 %v3082_v37, %s3497_s5 }
 0xdbd   :  { %1468 = vrot.lane.b32.xlu0 %v1384_v24, %s3497_s5 }
 0xdfd   :  { %v1215_v44 = vpop.xlane.xlu0 %1214 }
 0xdfe   :  { %v1217_v45 = vmul.f32 %v1215_v44, %v3847_v13 }
 0xe00   :  { %v1219_v46 = vsub.f32 %v1207_v12, %v1217_v45 }
 0xe02   :  { %v1221_v34 = vmul.f32 %v1219_v46, %v1219_v46 }
 0xe04   :  { %v1225_v48 = vsel %vm310_vm1, %v1221_v34, 0.0 }
 0xe05   :  { %1226 = vadd.xlane.f32.xlu2 %v1225_v48 }
 0xe1f   :  { %v1416_v50 = vpop.permute.xlu0 %1415 }
 0xe20   :  { %2973 = vmatmul.msk.f32.vlgmr.msrb.gmra.mxu0 %vm310_vm1, %v1416_v50 }
 0xe27   :  { %v3987_v6 = vpop.permute.xlu0 %1459 }
 0xe2f   :  { %v1469_v38 = vpop.permute.xlu0 %1468 }
 0xe78   :  { %v1227_v51 = vpop.xlane.xlu2 %1226 }
 0xe79   :  { %v1229_v52 = vmul.f32 %v1227_v51, %v3847_v13 }
 0xe7b   :  { %v1231_v53 = vadd.f32 1e-05, %v1229_v52 }
 0xe7d   :  { %3141 = vrsqrt.f32 %v1231_v53  ;;  %vm1248_vm4 = vweird.f32 %v1231_v53 }
 0xe83   :  { %v3142_v54 = vpop.eup %3141 }
 0xe84   :  { %v1243_v55 = vmul.f32 %v3142_v54, %v1231_v53  ;;  %vm1249_vm3 = vweird.f32 %v3142_v54 }
 0xe85   :  { %vm1250_vm5 = vmor %vm1248_vm4, %vm1249_vm3 }
 0xe86   :  { %v1244_v56 = vmul.f32 %v3142_v54, %v1243_v55 }
 0xe88   :  { %v1245_v57 = vmul.f32 0.5, %v1244_v56 }
 0xe8a   :  { %v1246_v59 = vsub.f32 1.5, %v1245_v57 }
 0xe8c   :  { %v1247_v60 = vmul.f32 %v3142_v54, %v1246_v59 }
 0xe8e   :  { %v1251_v61 = vsel %vm1250_vm5, %v3142_v54, %v1247_v60 }
 0xe8f   :  { %v1253_v62 = vmul.f32 %v1251_v61, %v1219_v46 }
 0xe91   :  { %v1258_v0 = vmul.f32 %v3915_v58, %v1253_v62  ;;  %v2978_v58 = vld [vmem:[%s4362_s23 + $0x38] sm:$0xff] }
 0xe92   :  { %1522 = vmatpush.msrb.mxu2 %v2978_v58 }
 0xe93   :  { %v3964_v2 = vadd.f32 %v3920_v47, %v1258_v0  ;;  %v2977_v47 = vld [vmem:[%s4362_s23 + $0x30] sm:$0xff] }
 0xe94   :  { %1523 = vmatpush.msrb.mxu2 %v2977_v47 }
 0xe95   :  { %2968 = vmatmul.msk.f32.gmra.mxu2 %vm310_vm1, %v3964_v2  ;;  %2972 = vmatmul.msk.f32.gmra.mxu3 %vm310_vm1, %v3964_v2 }
 0xe96   :  { %1524 = vmatpush.msrb.mxu2 %v2976_v11 }
 0xe98   :  { %1525 = vmatpush.msrb.mxu2 %v2975_v49 }
 0xe9d   :  { %v1440_v3 = vpop.f32.mrf.mxu0 }
 0xe9e   :  { %1448 = vrot.lane.b32.xlu1 %v1440_v3, %s3497_s5 }
 0xea6   :  { %1482 = vrot.lane.b32.xlu1 %v1478_v5, %s3497_s5 }
 0xeae   :  { %1403 = vrot.lane.b32.xlu1 %v3964_v2, %s3504_s24  ;;  %s4371_s24 = smov 48  }
 0xf10   :  { %v1449_v7 = vpop.permute.xlu1 %1448 }
 0xf11   :  { %v1454_v9 = vadd.f32 %v1449_v7, %v3948_v16 }
 0xf13   :  { %v1462_v63 = vadd.f32 %v3987_v6, %v1454_v9 }
 0xf15   :  { %v1464_v12 = vmax.f32 %v1462_v63, 0.0 }
 0xf17   :  { %v1474_v15 = vmul.f32 %v1469_v38, %v1464_v12 }
 0xf18   :  { %v1483_v18 = vpop.permute.xlu1 %1482  ;;  %v1290_v14 = vpop.f32.mrf.mxu2 }
 0xf19   :  { %v3991_v19 = vadd.f32 %v1483_v18, %v1474_v15  ;;  %2970 = vmatmul.msk.f32.gmra.mxu1 %vm310_vm1, %v1290_v14  ;;  %v1358_v20 = vpop.f32.mrf.mxu3 }
 0xf1a   :  { %v1359_v16 = vadd.f32 %v3938_v8, %v1358_v20 }
 0xf1b   :  { %1502 = vrot.lane.b32.xlu0 %v3991_v19, %s3497_s5 }
 0xf8d   :  { %v1503_v1 = vpop.permute.xlu0 %1502 }
 0xf8e   :  { %2980 = vmatmul.msk.f32.vlgmr.msrb.gmra.mxu2 %vm310_vm1, %v1503_v1 }
 0xf96   :  { %v1327_v21 = vpop.f32.mrf.mxu1 }
 0xf97   :  { %v1328_v22 = vadd.f32 %v3944_v10, %v1327_v21  ;;  %v1404_v10 = vpop.permute.xlu1 %1403 }
 0xf99   :  { %v1362_v23 = vadd.f32 %v1359_v16, %v1328_v22 }
 0xf9b   :  { %v1364_v42 = vsub.f32 0.0, %v1362_v23 }
 0xf9d   :  { %v1367_v25 = vmul.f32 1.442695, %v1364_v42 }
 0xf9f   :  { %3143 = vpow2.f32 %v1367_v25 }
 0xfa5   :  { %v3144_v26 = vpop.eup %3143 }
 0xfa6   :  { %v1370_v28 = vadd.f32 1.0, %v3144_v26 }
 0xfa8   :  { %3145 = vrcp.f32 %v1370_v28  ;;  %v1397_v35 = vand.u32 2147483648, %v1370_v28  ;;  %v1395_v36 = vand.u32 2147483647, %v1370_v28  ;;  %vm1391_vm7 = vweird.f32 %v1370_v28 }
 0xfaa   :  { %v1398_v8 = vor.u32 1.1754944e-38, %v1397_v35  ;;  %vm1396_vm9 = vcmp.eq.f32.partialorder %v1395_v36, 8.507059e+37 }
 0xfae   :  { %v3146_v29 = vpop.eup %3145 }
 0xfaf   :  { %v1387_v31 = vmul.f32 %v3146_v29, %v1370_v28  ;;  %vm1392_vm6 = vweird.f32 %v3146_v29 }
 0xfb0   :  { %vm1393_vm8 = vmor %vm1391_vm7, %vm1392_vm6 }
 0xfb1   :  { %v1388_v32 = vsub.f32 1.0, %v1387_v31 }
 0xfb3   :  { %v1389_v24 = vmul.f32 %v3146_v29, %v1388_v32 }
 0xfb5   :  { %v1390_v37 = vadd.f32 %v3146_v29, %v1389_v24 }
 0xfb7   :  { %v1394_v39 = vsel %vm1393_vm8, %v3146_v29, %v1390_v37 }
 0xfb8   :  { %v1399_v40 = vsel %vm1396_vm9, %v1398_v8, %v1394_v39  ;;  %v1537_v39 = vld [vmem:[#allocation11 + $0x28] sm:$0xff] }
 0xfb9   :  { %v1408_v41 = vmul.f32 %v1404_v10, %v1399_v40  ;;  %v1477_v34 = vsub.f32 1.0, %v1399_v40  ;;  %1690 = vmatpush.msra.mxu2 %v1537_v39  ;;  %v1538_v10 = vld [vmem:[#allocation11 + $0x30] sm:$0xff] }
 0xfbb   :  { %1417 = vrot.lane.b32.xlu0 %v1408_v41, %s3493_s1  ;;  %v1479_v48 = vmul.f32 %v1477_v34, %v3964_v2  ;;  %1801 = vmatpush.msrb.mxu2 %v1538_v10 }
0x1011   :  { %v1527_v44 = vpop.f32.mrf.mxu2 }
0x1012   :  { %v4006_v45 = vadd.f32 %v4003_v43, %v1527_v44 }
0x1014   :  { %1609 = vrot.lane.b32.xlu2 %v4006_v45, %s3492_s0  ;;  %1720 = vrot.lane.b32.xlu0 %v4006_v45, %s3498_s18  ;;  %v4013_v46 = vmul.f32 0.35355338, %v4006_v45 }
0x1016   :  { %1607 = vrot.lane.b32.xlu1 %v4013_v46, %s3494_s8 }
0x101c   :  { %1484 = vrot.lane.b32.xlu2 %v1479_v48, %s3497_s5  ;;  %1543 = vrot.lane.b32.xlu0 %v4006_v45, %s3493_s1 }
0x101e   :  { %1718 = vrot.lane.b32.xlu1 %v4013_v46, %s4368_s11 }
0x1024   :  { %1470 = vrot.lane.b32.xlu0 %v1399_v40, %s3497_s5  ;;  %v1536_v40 = vld [vmem:[#allocation11 + $0x20] sm:$0xff] }
0x102d   :  { %v1418_v50 = vpop.permute.xlu0 %1417 }
0x102e   :  { %2974 = vmatmul.msk.f32.gmra.mxu0 %vm310_vm1, %v1418_v50 }
0x106e   :  { %v1610_v51 = vpop.permute.xlu2 %1609 }
0x106f   :  { %2986 = vmatpush.xpose.msk.msrb.mxu3 %vm350_vm2, %v1610_v51 }
0x1076   :  { %v1485_v58 = vpop.permute.xlu2 %1484 }
0x1086   :  { %v1721_v52 = vpop.permute.xlu0 %1720 }
0x1087   :  { %2991 = vmatpush.xpose.msk.msra.mxu3 %vm350_vm2, %v1721_v52 }
0x1088   :  { %v1608_v53 = vpop.permute.xlu1 %1607 }
0x1089   :  { %2987 = vmatmul.msk.f32.vlgmr.msrb.gmra.mxu3 %vm350_vm2, %v1608_v53 }
0x108e   :  { %v1544_v54 = vpop.permute.xlu0 %1543 }
0x108f   :  { %2983 = vmatpush.xpose.msk.msra.mxu1 %vm350_vm2, %v1544_v54 }
0x1090   :  { %v1719_v55 = vpop.permute.xlu1 %1718 }
0x1091   :  { %2992 = vmatmul.msk.f32.vlgmr.msra.gmra.mxu3 %vm350_vm2, %v1719_v55 }
0x1092   :  { %2984 = vmatmul.msk.f32.vlgmr.msra.gmra.mxu1 %vm350_vm2, %v4013_v46 }
0x1096   :  { %v1471_v4 = vpop.permute.xlu0 %1470 }
0x10ab   :  { %v1443_v56 = vpop.f32.mrf.mxu0 }
0x10ac   :  { %1450 = vrot.lane.b32.xlu1 %v1443_v56, %s3497_s5 }
0x110c   :  { %v1632_v57 = vpop.f32.mrf.mxu3 }
0x110d   :  { %v1635_v59 = vsel %vm350_vm2, %v1632_v57, -inf }
0x110e   :  { %1636 = vmax.xlane.f32.xlu1 %v1635_v59 }
0x110f   :  { %v1567_v18 = vpop.f32.mrf.mxu1 }
0x1110   :  { %v1570_v1 = vsel %vm350_vm2, %v1567_v18, -inf }
0x1114   :  { %v1743_v60 = vpop.f32.mrf.mxu3 }
0x1115   :  { %v1746_v61 = vsel %vm350_vm2, %v1743_v60, -inf }
0x1116   :  { %1747 = vmax.xlane.f32.xlu0 %v1746_v61 }
0x111e   :  { %v1451_v62 = vpop.permute.xlu1 %1450 }
0x111f   :  { %v1455_v0 = vadd.f32 %v1451_v62, %v1328_v22 }
0x1121   :  { %v1463_v2 = vadd.f32 %v3987_v6, %v1455_v0 }
0x1123   :  { %v1465_v3 = vmax.f32 %v1463_v2, 0.0 }
0x1125   :  { %v1475_v5 = vmul.f32 %v1471_v4, %v1465_v3 }
0x1127   :  { %v4036_v47 = vadd.f32 %v1485_v58, %v1475_v5 }
0x1129   :  { %1504 = vrot.lane.b32.xlu2 %v4036_v47, %s3497_s5 }
0x112a   :  { %1646 = vrot.lane.b32.xlu0 %v4006_v45, %s4369_s4 }
0x1132   :  { %1581 = vrot.lane.b32.xlu0 %v4006_v45, %s3497_s5 }
0x113a   :  { %1809 = vrot.lane.b32.xlu0 %v4006_v45, %s4370_s16 }
0x1181   :  { %v1637_v11 = vpop.xlane.xlu1 %1636 }
0x1182   :  { %v1638_v49 = vsub.f32 %v1632_v57, %v1637_v11 }
0x1183   :  { %v1505_v7 = vpop.permute.xlu2 %1504 }
0x1184   :  { %v1639_v6 = vmul.f32 1.442695, %v1638_v49  ;;  %2981 = vmatmul.msk.f32.gmra.mxu2 %vm310_vm1, %v1505_v7 }
0x1186   :  { %3147 = vpow2.f32 %v1639_v6 }
0x1189   :  { %v1748_v9 = vpop.xlane.xlu0 %1747 }
0x118a   :  { %v1749_v63 = vsub.f32 %v1743_v60, %v1748_v9 }
0x118c   :  { %v3148_v12 = vpop.eup %3147  ;;  %v1750_v38 = vmul.f32 1.442695, %v1749_v63 }
0x118d   :  { %v1641_v15 = vsel %vm350_vm2, %v3148_v12, 0.0 }
0x118e   :  { %3149 = vpow2.f32 %v1750_v38  ;;  %1642 = vadd.xlane.f32.xlu2 %v1641_v15 }
0x1194   :  { %v3150_v14 = vpop.eup %3149 }
0x1195   :  { %v1752_v20 = vsel %vm350_vm2, %v3150_v14, 0.0 }
0x1196   :  { %1571 = vmax.xlane.f32.xlu2 %v1570_v1  ;;  %1753 = vadd.xlane.f32.xlu1 %v1752_v20 }
0x119c   :  { %v1647_v21 = vpop.permute.xlu0 %1646 }
0x119d   :  { %1667 = vmatpush.msra.mxu0 %v1647_v21 }
0x11a4   :  { %v1582_v16 = vpop.permute.xlu0 %1581 }
0x11a5   :  { %1602 = vmatpush.msrb.mxu1 %v1582_v16 }
0x11a7   :  { %1713 = vmatpush.msra.mxu1 %v1536_v40 }
0x11ac   :  { %v1810_v48 = vpop.permute.xlu0 %1809 }
0x11af   :  { %1757 = vrot.lane.b32.xlu1 %v4006_v45, %s4371_s24 }
0x11b7   :  { %1807 = vrot.lane.b32.xlu1 %v4013_v46, %s4372_s3 }
0x1201   :  { %v1643_v22 = vpop.xlane.xlu2 %1642 }
0x1202   :  { %3151 = vrcp.f32 %v1643_v22 }
0x1207   :  { %v1530_v37 = vpop.f32.mrf.mxu2 }
0x1208   :  { %v3152_v23 = vpop.eup %3151  ;;  %v4058_v8 = vadd.f32 %v4003_v43, %v1530_v37 }
0x1209   :  { %v1645_v42 = vmul.f32 %v3152_v23, %v3148_v12  ;;  %v1572_v25 = vpop.xlane.xlu2 %1571  ;;  %v1754_v31 = vpop.xlane.xlu1 %1753 }
0x120a   :  { %v1573_v26 = vsub.f32 %v1567_v18, %v1572_v25  ;;  %v1534_v51 = vmul.f32 0.35355338, %v4058_v8 }
0x120b   :  { %2988 = vmatmul.msk.f32.vlgmr.msra.gmra.mxu0 %vm350_vm2, %v1645_v42  ;;  %v4103_v42 = vld [vmem:[#allocation11 + $0x38] sm:$0xff] }
0x120c   :  { %v1574_v28 = vmul.f32 1.442695, %v1573_v26 }
0x120e   :  { %3153 = vpow2.f32 %v1574_v28 }
0x120f   :  { %3155 = vrcp.f32 %v1754_v31 }
0x1214   :  { %v3154_v29 = vpop.eup %3153 }
0x1215   :  { %v1576_v32 = vsel %vm350_vm2, %v3154_v29, 0.0  ;;  %v3156_v35 = vpop.eup %3155 }
0x1216   :  { %1577 = vadd.xlane.f32.xlu2 %v1576_v32  ;;  %v1756_v24 = vmul.f32 %v3156_v35, %v3150_v14 }
0x1221   :  { %v1758_v36 = vpop.permute.xlu1 %1757 }
0x1222   :  { %1778 = vmatpush.msrb.mxu0 %v1758_v36 }
0x1223   :  { %2993 = vmatmul.msk.f32.vlgmr.msrb.gmra.mxu0 %vm350_vm2, %v1756_v24 }
0x1224   :  { %1890 = vmatpush.msra.mxu0 %v4103_v42 }
0x1229   :  { %v1808_v54 = vpop.permute.xlu1 %1807 }
0x122e   :  { %1902 = vrot.lane.b32.xlu2 %v4058_v8, %s3493_s1 }
0x1236   :  { %1940 = vrot.lane.b32.xlu2 %v4058_v8, %s3497_s5 }
0x1288   :  { %v1669_v41 = vpop.f32.mrf.mxu0 }
0x1289   :  { %v1578_v44 = vpop.xlane.xlu2 %1577  ;;  %2989 = vmatmul.msk.f32.vlgmr.msra.gmra.mxu2 %vm350_vm2, %v1669_v41 }
0x128a   :  { %3157 = vrcp.f32 %v1578_v44 }
0x1290   :  { %v3158_v46 = vpop.eup %3157 }
0x1291   :  { %v1580_v43 = vmul.f32 %v3158_v46, %v3154_v29  ;;  %v1903_v34 = vpop.permute.xlu2 %1902 }
0x1292   :  { %2999 = vmatpush.xpose.msk.msra.mxu2 %vm350_vm2, %v1903_v34 }
0x1293   :  { %2985 = vmatmul.msk.f32.vlgmr.msrb.gmra.mxu1 %vm350_vm2, %v1580_v43 }
0x1294   :  { %2995 = vmatpush.xpose.msk.msrb.mxu1 %vm350_vm2, %v1810_v48 }
0x1299   :  { %v1941_v53 = vpop.permute.xlu2 %1940 }
0x12a0   :  { %v1780_v50 = vpop.f32.mrf.mxu0 }
0x12a1   :  { %2994 = vmatmul.msk.f32.vlgmr.msrb.gmra.mxu2 %vm350_vm2, %v1780_v50 }
0x12a2   :  { %2049 = vmatpush.msrb.mxu2 %v1537_v39  ;;  %v4120_v39 = vld [vmem:[%s4364_s29 + $0x1] ss:$0 sm:$0xff] }
0x12a9   :  { %3000 = vmatmul.msk.f32.vlgmr.msra.gmra.mxu2 %vm350_vm2, %v1534_v51 }
0x12aa   :  { %2160 = vmatpush.msra.mxu2 %v1538_v10 }
0x130c   :  { %v4073_v55 = vpop.f32.mrf.mxu2 }
0x1310   :  { %v1604_v52 = vpop.f32.mrf.mxu1 }
0x1311   :  { %2990 = vmatmul.msk.f32.vlgmr.msra.gmra.mxu1 %vm350_vm2, %v1604_v52 }
0x1312   :  { %1961 = vmatpush.msra.mxu1 %v1941_v53 }
0x1319   :  { %2996 = vmatmul.msk.f32.vlgmr.msrb.gmra.mxu1 %vm350_vm2, %v1808_v54 }
0x131a   :  { %2072 = vmatpush.msrb.mxu1 %v1536_v40 }
0x1324   :  { %v4075_v56 = vpop.f32.mrf.mxu2 }
0x132c   :  { %v1926_v57 = vpop.f32.mrf.mxu2 }
0x132d   :  { %v1929_v59 = vsel %vm350_vm2, %v1926_v57, -inf }
0x132e   :  { %1930 = vmax.xlane.f32.xlu0 %v1929_v59 }
0x138e   :  { %v4078_v60 = vpop.f32.mrf.mxu1 }
0x138f   :  { %v1716_v36 = vadd.f32 %v4078_v60, %v4073_v55 }
0x1391   :  { %v1806_v37 = vadd.f32 %v4075_v56, %v1716_v36 }
0x1396   :  { %v1832_v61 = vpop.f32.mrf.mxu1 }
0x1397   :  { %v1835_v62 = vsel %vm350_vm2, %v1832_v61, -inf }
0x1398   :  { %1836 = vmax.xlane.f32.xlu2 %v1835_v62 }
0x13a1   :  { %v1931_v0 = vpop.xlane.xlu0 %1930 }
0x13a2   :  { %v1932_v2 = vsub.f32 %v1926_v57, %v1931_v0 }
0x13a4   :  { %v1933_v3 = vmul.f32 1.442695, %v1932_v2 }
0x13a6   :  { %3159 = vpow2.f32 %v1933_v3 }
0x13ac   :  { %v3160_v4 = vpop.eup %3159 }
0x13ad   :  { %v1935_v5 = vsel %vm350_vm2, %v3160_v4, 0.0 }
0x13ae   :  { %1936 = vadd.xlane.f32.xlu1 %v1935_v5 }
0x13b0   :  { %1966 = vrot.lane.b32.xlu2 %v1534_v51, %s3494_s8 }
0x13c7   :  { %1846 = vrot.lane.b32.xlu1 %v4006_v45, %s4373_s9 }
0x13cf   :  { %2079 = vrot.lane.b32.xlu1 %v4058_v8, %s3498_s18 }
0x13d7   :  { %2168 = vrot.lane.b32.xlu1 %v4058_v8, %s4370_s16 }
0x140b   :  { %v1837_v58 = vpop.xlane.xlu2 %1836 }
0x140c   :  { %v1838_v11 = vsub.f32 %v1832_v61, %v1837_v58 }
0x140e   :  { %v1839_v49 = vmul.f32 1.442695, %v1838_v11 }
0x1410   :  { %3161 = vpow2.f32 %v1839_v49 }
0x1413   :  { %v1967_v21 = vpop.permute.xlu2 %1966 }
0x1416   :  { %v3162_v6 = vpop.eup %3161 }
0x1417   :  { %v1841_v7 = vsel %vm350_vm2, %v3162_v6, 0.0 }
0x1418   :  { %1842 = vadd.xlane.f32.xlu0 %v1841_v7 }
0x1421   :  { %v1937_v9 = vpop.xlane.xlu1 %1936 }
0x1422   :  { %3163 = vrcp.f32 %v1937_v9 }
0x1428   :  { %v3164_v63 = vpop.eup %3163 }
0x1429   :  { %v1939_v12 = vmul.f32 %v3164_v63, %v3160_v4 }
0x142b   :  { %3001 = vmatmul.msk.f32.vlgmr.msra.gmra.mxu1 %vm350_vm2, %v1939_v12 }
0x142c   :  { %1968 = vrot.lane.b32.xlu0 %v4058_v8, %s3492_s0 }
0x1434   :  { %2077 = vrot.lane.b32.xlu0 %v1534_v51, %s4368_s11 }
0x1439   :  { %v1847_v45 = vpop.permute.xlu1 %1846 }
0x143a   :  { %1867 = vmatpush.msrb.mxu3 %v1847_v45 }
0x143c   :  { %2166 = vrot.lane.b32.xlu0 %v1534_v51, %s4372_s3 }
0x1441   :  { %v2080_v38 = vpop.permute.xlu1 %2079 }
0x1449   :  { %v2169_v15 = vpop.permute.xlu1 %2168 }
0x144a   :  { %3011 = vmatpush.xpose.msk.msra.mxu1 %vm350_vm2, %v2169_v15 }
0x148b   :  { %v1843_v18 = vpop.xlane.xlu0 %1842 }
0x148c   :  { %3165 = vrcp.f32 %v1843_v18 }
0x1492   :  { %v3166_v14 = vpop.eup %3165 }
0x1493   :  { %v1845_v1 = vmul.f32 %v3166_v14, %v3162_v6 }
0x1495   :  { %2997 = vmatmul.msk.f32.vlgmr.msrb.gmra.mxu3 %vm350_vm2, %v1845_v1 }
0x149e   :  { %v1969_v20 = vpop.permute.xlu0 %1968 }
0x149f   :  { %3002 = vmatpush.xpose.msk.msra.mxu3 %vm350_vm2, %v1969_v20 }
0x14a2   :  { %3003 = vmatmul.msk.f32.vlgmr.msra.gmra.mxu3 %vm350_vm2, %v1967_v21 }
0x14a3   :  { %3007 = vmatpush.xpose.msk.msrb.mxu3 %vm350_vm2, %v2080_v38 }
0x14a6   :  { %v2078_v16 = vpop.permute.xlu0 %2077 }
0x14a8   :  { %v1963_v22 = vpop.f32.mrf.mxu1 }
0x14a9   :  { %3006 = vmatmul.msk.f32.vlgmr.msrb.gmra.mxu1 %vm350_vm2, %v1963_v22 }
0x14aa   :  { %3008 = vmatmul.msk.f32.vlgmr.msrb.gmra.mxu3 %vm350_vm2, %v2078_v16 }
0x14ae   :  { %v2167_v23 = vpop.permute.xlu0 %2166 }
0x14b1   :  { %3012 = vmatmul.msk.f32.vlgmr.msra.gmra.mxu1 %vm350_vm2, %v2167_v23 }
0x1518   :  { %v1869_v25 = vpop.f32.mrf.mxu3 }
0x1519   :  { %2998 = vmatmul.msk.f32.vlgmr.msra.gmra.mxu0 %vm350_vm2, %v1869_v25 }
0x1525   :  { %v1991_v26 = vpop.f32.mrf.mxu3 }
0x1526   :  { %v4107_v28 = vpop.f32.mrf.mxu1  ;;  %v1994_v29 = vsel %vm350_vm2, %v1991_v26, -inf }
0x1527   :  { %1995 = vmax.xlane.f32.xlu1 %v1994_v29 }
0x152d   :  { %v2102_v31 = vpop.f32.mrf.mxu3 }
0x152e   :  { %v2191_v32 = vpop.f32.mrf.mxu1  ;;  %v2105_v35 = vsel %vm350_vm2, %v2102_v31, -inf }
0x152f   :  { %2106 = vmax.xlane.f32.xlu0 %v2105_v35  ;;  %v2194_v24 = vsel %vm350_vm2, %v2191_v32, -inf }
0x1530   :  { %2195 = vmax.xlane.f32.xlu2 %v2194_v24 }
0x1548   :  { %2005 = vrot.lane.b32.xlu2 %v4058_v8, %s4369_s4 }
0x1596   :  { %v1892_v10 = vpop.f32.mrf.mxu0 }
0x1597   :  { %v1895_v40 = vadd.f32 %v1892_v10, %v1806_v37  ;;  %v3086_v10 = vld [vmem:[%s4366_s30 + $0x1] ss:$0 sm:$0xff] }
0x1599   :  { %v1899_v41 = vadd.f32 %v4120_v39, %v1895_v40 }
0x159a   :  { %v1996_v44 = vpop.xlane.xlu1 %1995 }
0x159b   :  { %1900 = vst.msk [vmem:[#allocation2] sm:$0xff] %vm310_vm1, %v1899_v41  ;;  %v1997_v46 = vsub.f32 %v1991_v26, %v1996_v44 }
0x159d   :  { %v1998_v43 = vmul.f32 1.442695, %v1997_v46 }
0x159f   :  { %3167 = vpow2.f32 %v1998_v43 }
0x15a2   :  { %v2107_v34 = vpop.xlane.xlu0 %2106  ;;  %v2257_v48 = vld [vmem:[#allocation2] sm:$0xff] }
0x15a3   :  { %v2108_v50 = vsub.f32 %v2102_v31, %v2107_v34  ;;  %2261 = vrot.lane.b32.xlu2 %v2257_v48, %s3497_s5  ;;  %v2196_v51 = vpop.xlane.xlu2 %2195 }
0x15a4   :  { %v2197_v52 = vsub.f32 %v2191_v32, %v2196_v51 }
0x15a5   :  { %v3168_v53 = vpop.eup %3167  ;;  %v2109_v54 = vmul.f32 1.442695, %v2108_v50 }
0x15a6   :  { %v2198_v55 = vmul.f32 1.442695, %v2197_v52  ;;  %v2000_v56 = vsel %vm350_vm2, %v3168_v53, 0.0 }
0x15a7   :  { %3169 = vpow2.f32 %v2109_v54  ;;  %2001 = vadd.xlane.f32.xlu1 %v2000_v56 }
0x15a8   :  { %3171 = vpow2.f32 %v2198_v55 }
0x15ab   :  { %v2006_v57 = vpop.permute.xlu2 %2005 }
0x15ac   :  { %2026 = vmatpush.msrb.mxu0 %v2006_v57 }
0x15ad   :  { %v3170_v59 = vpop.eup %3169 }
0x15ae   :  { %v3172_v60 = vpop.eup %3171  ;;  %v2111_v61 = vsel %vm350_vm2, %v3170_v59, 0.0 }
0x15af   :  { %2112 = vadd.xlane.f32.xlu0 %v2111_v61  ;;  %v2200_v62 = vsel %vm350_vm2, %v3172_v60, 0.0 }
0x15b0   :  { %2201 = vadd.xlane.f32.xlu1 %v2200_v62 }
0x15c3   :  { %2116 = vrot.lane.b32.xlu0 %v4058_v8, %s4371_s24 }
0x15c9   :  { %2205 = vrot.lane.b32.xlu1 %v4058_v8, %s4373_s9 }
0x15fd   :  { %v2262_v0 = vpop.permute.xlu2 %2261 }
0x15fe   :  { %v2267_v2 = vadd.f32 %v2262_v0, %v3991_v19 }
0x1600   :  { %2275 = vrot.lane.b32.xlu2 %v2267_v2, %s3497_s5 }
0x161a   :  { %v2002_v3 = vpop.xlane.xlu1 %2001 }
0x161b   :  { %3173 = vrcp.f32 %v2002_v3 }
0x1621   :  { %v3174_v4 = vpop.eup %3173 }
0x1622   :  { %v2004_v5 = vmul.f32 %v3174_v4, %v3168_v53  ;;  %v2113_v58 = vpop.xlane.xlu0 %2112 }
0x1623   :  { %3175 = vrcp.f32 %v2113_v58  ;;  %v2202_v11 = vpop.xlane.xlu1 %2201 }
0x1624   :  { %3004 = vmatmul.msk.f32.vlgmr.msrb.gmra.mxu0 %vm350_vm2, %v2004_v5  ;;  %3177 = vrcp.f32 %v2202_v11 }
0x1629   :  { %v3176_v49 = vpop.eup %3175 }
0x162a   :  { %v2115_v6 = vmul.f32 %v3176_v49, %v3170_v59  ;;  %v3178_v8 = vpop.eup %3177 }
0x162b   :  { %v2204_v19 = vmul.f32 %v3178_v8, %v3172_v60  ;;  %v2350_v8 = vld [vmem:[#allocation12 + $0x30] sm:$0xff] }
0x1635   :  { %v2117_v7 = vpop.permute.xlu0 %2116 }
0x1636   :  { %2137 = vmatpush.msra.mxu0 %v2117_v7  ;;  %v2351_v7 = vld [vmem:[#allocation12 + $0x38] sm:$0xff] }
0x1637   :  { %3009 = vmatmul.msk.f32.vlgmr.msra.gmra.mxu0 %vm350_vm2, %v2115_v6 }
0x1638   :  { %2249 = vmatpush.msrb.mxu0 %v4103_v42 }
0x163b   :  { %v2206_v9 = vpop.permute.xlu1 %2205 }
0x163c   :  { %2226 = vmatpush.msra.mxu3 %v2206_v9  ;;  %v2348_v9 = vld [vmem:[#allocation12 + $0x20] sm:$0xff] }
0x163d   :  { %3013 = vmatmul.msk.f32.vlgmr.msra.gmra.mxu3 %vm350_vm2, %v2204_v19  ;;  %v2349_v19 = vld [vmem:[#allocation12 + $0x28] sm:$0xff] }
0x163e   :  { %2541 = vmatpush.msrb.mxu3 %v3895_v17 }
0x1640   :  { %2542 = vmatpush.msrb.mxu3 %v3898_v27 }
0x1642   :  { %2543 = vmatpush.msrb.mxu3 %v3900_v30 }
0x1644   :  { %2544 = vmatpush.msrb.mxu3 %v3904_v33 }
0x165a   :  { %v2276_v63 = vpop.permute.xlu2 %2275 }
0x165b   :  { %v2281_v12 = vsel %vm310_vm1, %v2276_v63, 0.0  ;;  %v2396_v63 = vld [vmem:[#allocation14 + $0x38] sm:$0xff] }
0x165c   :  { %2282 = vadd.xlane.f32.xlu1 %v2281_v12  ;;  %2420 = vmatpush.msrb.mxu1 %v2396_v63 }
0x16a1   :  { %v2028_v45 = vpop.f32.mrf.mxu0 }
0x16a2   :  { %3005 = vmatmul.msk.f32.vlgmr.msrb.gmra.mxu2 %vm350_vm2, %v2028_v45 }
0x16a3   :  { %2379 = vmatpush.msrb.mxu2 %v2351_v7 }
0x16a5   :  { %2380 = vmatpush.msrb.mxu2 %v2350_v8 }
0x16a7   :  { %2381 = vmatpush.msrb.mxu2 %v2349_v19 }
0x16a9   :  { %2382 = vmatpush.msrb.mxu2 %v2348_v9 }
0x16b4   :  { %v2139_v38 = vpop.f32.mrf.mxu0 }
0x16b5   :  { %3010 = vmatmul.msk.f32.vlgmr.msra.gmra.mxu2 %vm350_vm2, %v2139_v38  ;;  %v2395_v38 = vld [vmem:[#allocation14 + $0x30] sm:$0xff] }
0x16b6   :  { %2421 = vmatpush.msrb.mxu1 %v2395_v38 }
0x16c0   :  { %v2228_v15 = vpop.f32.mrf.mxu3 }
0x16c1   :  { %3014 = vmatmul.msk.f32.vlgmr.msrb.gmra.mxu0 %vm350_vm2, %v2228_v15  ;;  %v2394_v15 = vld [vmem:[#allocation14 + $0x28] sm:$0xff] }
0x16c2   :  { %2422 = vmatpush.msrb.mxu1 %v2394_v15 }
0x16cf   :  { %v2283_v21 = vpop.xlane.xlu1 %2282 }
0x16d0   :  { %v2287_v22 = vmul.f32 %v2283_v21, %v3847_v13  ;;  %v3088_v21 = vld [vmem:[%s4308_s13 + $0x1] ss:$0 sm:$0xff] }
0x16d2   :  { %v2289_v42 = vsub.f32 %v2267_v2, %v2287_v22 }
0x16d4   :  { %v2291_v25 = vmul.f32 %v2289_v42, %v2289_v42 }
0x1725   :  { %v2051_v17 = vpop.f32.mrf.mxu2 }
0x1726   :  { %v2075_v27 = vadd.f32 %v4107_v28, %v2051_v17  ;;  %v2393_v17 = vld [vmem:[#allocation14 + $0x20] sm:$0xff] }
0x1727   :  { %2423 = vmatpush.msrb.mxu1 %v2393_v17 }
0x1738   :  { %v2162_v18 = vpop.f32.mrf.mxu2 }
0x1739   :  { %v2165_v30 = vadd.f32 %v2162_v18, %v2075_v27  ;;  %v3087_v18 = vld [vmem:[%s4367_s6 + $0x1] ss:$0 sm:$0xff] }
0x173e   :  { %v2251_v14 = vpop.f32.mrf.mxu0 }
0x173f   :  { %v2254_v33 = vadd.f32 %v2251_v14, %v2165_v30 }
0x1741   :  { %v2255_v1 = vadd.f32 %v4120_v39, %v2254_v33 }
0x1743   :  { %2256 = vst.msk [vmem:[#allocation2 + $0x8] sm:$0xff] %vm310_vm1, %v2255_v1 }
0x174a   :  { %v2258_v20 = vld [vmem:[#allocation2 + $0x8] sm:$0xff] }
0x174b   :  { %2263 = vrot.lane.b32.xlu0 %v2258_v20, %s3497_s5 }
0x17bd   :  { %v2264_v16 = vpop.permute.xlu0 %2263 }
0x17be   :  { %v2268_v23 = vadd.f32 %v2264_v16, %v4036_v47  ;;  %v3085_v47 = vld [vmem:[%s4365_s20 + $0x1] ss:$0 sm:$0xff] }
0x17c0   :  { %2277 = vrot.lane.b32.xlu0 %v2268_v23, %s3497_s5 }
0x17c8   :  { %2295 = vrot.lane.b32.xlu0 %v2291_v25, %s3497_s5 }
0x1832   :  { %v2278_v26 = vpop.permute.xlu0 %2277 }
0x1833   :  { %v2284_v28 = vsel %vm310_vm1, %v2278_v26, 0.0 }
0x1834   :  { %2285 = vadd.xlane.f32.xlu2 %v2284_v28 }
0x183a   :  { %v2296_v24 = vpop.permute.xlu0 %2295 }
0x183b   :  { %v2301_v36 = vsel %vm310_vm1, %v2296_v24, 0.0 }
0x184c   :  { %2335 = vrot.lane.b32.xlu2 %v3085_v47, %s3497_s5 }
0x18a7   :  { %v2286_v29 = vpop.xlane.xlu2 %2285 }
0x18a8   :  { %v2288_v31 = vmul.f32 %v2286_v29, %v3847_v13 }
0x18aa   :  { %v2290_v32 = vsub.f32 %v2268_v23, %v2288_v31 }
0x18ac   :  { %v2292_v35 = vmul.f32 %v2290_v32, %v2290_v32 }
0x18ae   :  { %2297 = vrot.lane.b32.xlu0 %v2292_v35, %s3497_s5 }
0x18af   :  { %v2336_v0 = vpop.permute.xlu2 %2335 }
0x18d8   :  { %2302 = vadd.xlane.f32.xlu0 %v2301_v36 }
0x1920   :  { %v2298_v37 = vpop.permute.xlu0 %2297 }
0x1921   :  { %v2304_v39 = vsel %vm310_vm1, %v2298_v37, 0.0 }
0x1922   :  { %2305 = vadd.xlane.f32.xlu1 %v2304_v39 }
0x193b   :  { %2342 = vrot.lane.b32.xlu1 %v3086_v10, %s3497_s5 }
0x194b   :  { %v2303_v40 = vpop.xlane.xlu0 %2302 }
0x194c   :  { %v2307_v41 = vmul.f32 %v2303_v40, %v3847_v13 }
0x194e   :  { %v2309_v44 = vadd.f32 1e-05, %v2307_v41 }
0x1950   :  { %3179 = vrsqrt.f32 %v2309_v44  ;;  %vm2317_vm10 = vweird.f32 %v2309_v44 }
0x1956   :  { %v3180_v46 = vpop.eup %3179 }
0x1957   :  { %v2312_v43 = vmul.f32 %v3180_v46, %v2309_v44  ;;  %vm2318_vm2 = vweird.f32 %v3180_v46 }
0x1958   :  { %vm2319_vm11 = vmor %vm2317_vm10, %vm2318_vm2 }
0x1959   :  { %v2313_v34 = vmul.f32 %v3180_v46, %v2312_v43 }
0x195b   :  { %v2314_v52 = vmul.f32 0.5, %v2313_v34 }
0x195d   :  { %v2315_v53 = vsub.f32 1.5, %v2314_v52 }
0x195f   :  { %v2316_v55 = vmul.f32 %v3180_v46, %v2315_v53 }
0x1961   :  { %v2320_v59 = vsel %vm2319_vm11, %v3180_v46, %v2316_v55  ;;  %v3089_v46 = vld [vmem:[%s4309_s14 + $0x1] ss:$0 sm:$0xff] }
0x1962   :  { %v2331_v62 = vmul.f32 %v2320_v59, %v2289_v42 }
0x1964   :  { %v2338_v4 = vmul.f32 %v2336_v0, %v2331_v62  ;;  %v2591_v62 = vld [vmem:[#allocation17 + $0x10] sm:$0xff] }
0x1995   :  { %v2306_v48 = vpop.xlane.xlu1 %2305 }
0x1996   :  { %v2308_v50 = vmul.f32 %v2306_v48, %v3847_v13 }
0x1998   :  { %v2310_v51 = vadd.f32 1e-05, %v2308_v50 }
0x199a   :  { %3181 = vrsqrt.f32 %v2310_v51  ;;  %vm2327_vm13 = vweird.f32 %v2310_v51 }
0x19a0   :  { %v3182_v54 = vpop.eup %3181 }
0x19a1   :  { %v2322_v56 = vmul.f32 %v3182_v54, %v2310_v51  ;;  %vm2328_vm12 = vweird.f32 %v3182_v54  ;;  %v3090_v51 = vld [vmem:[%s4310_s15 + $0x1] ss:$0 sm:$0xff] }
0x19a2   :  { %vm2329_vm14 = vmor %vm2327_vm13, %vm2328_vm12 }
0x19a3   :  { %v2323_v57 = vmul.f32 %v3182_v54, %v2322_v56 }
0x19a5   :  { %v2324_v60 = vmul.f32 0.5, %v2323_v57 }
0x19a7   :  { %v2325_v61 = vsub.f32 1.5, %v2324_v60 }
0x19a9   :  { %v2326_v2 = vmul.f32 %v3182_v54, %v2325_v61  ;;  %v2592_v61 = vld [vmem:[#allocation17 + $0x18] sm:$0xff] }
0x19aa   :  { %2609 = vmatpush.msra.mxu2 %v2592_v61  ;;  %v2671_v61 = vld [vmem:[#allocation18 + $0x18] sm:$0xff] }
0x19ab   :  { %v2330_v3 = vsel %vm2329_vm14, %v3182_v54, %v2326_v2  ;;  %v2590_v2 = vld [vmem:[#allocation17 + $0x8] sm:$0xff]  ;;  %2694 = vmatpush.msra.mxu1 %v2671_v61 }
0x19ac   :  { %v2332_v5 = vmul.f32 %v2330_v3, %v2290_v32  ;;  %2610 = vmatpush.msra.mxu2 %v2591_v62  ;;  %v2670_v62 = vld [vmem:[#allocation18 + $0x10] sm:$0xff] }
0x19ad   :  { %v2343_v58 = vpop.permute.xlu1 %2342  ;;  %2695 = vmatpush.msra.mxu1 %v2670_v62 }
0x19ae   :  { %v2339_v11 = vmul.f32 %v2336_v0, %v2332_v5  ;;  %v2345_v49 = vadd.f32 %v2343_v58, %v2338_v4  ;;  %v2589_v4 = vld [vmem:[#allocation17] sm:$0xff]  ;;  %2611 = vmatpush.msra.mxu2 %v2590_v2 }
0x19b0   :  { %v2346_v6 = vadd.f32 %v2343_v58, %v2339_v11  ;;  %2359 = vrot.lane.b32.xlu0 %v2345_v49, %s3497_s5  ;;  %2612 = vmatpush.msra.mxu2 %v2589_v4  ;;  %v2668_v4 = vld [vmem:[#allocation18] sm:$0xff] }
0x19b2   :  { %2361 = vrot.lane.b32.xlu2 %v2346_v6, %s3497_s5 }
0x1a0c   :  { %v2362_v45 = vpop.permute.xlu2 %2361 }
0x1a22   :  { %v2360_v12 = vpop.permute.xlu0 %2359 }
0x1a23   :  { %3018 = vmatmul.msk.f32.vlgmr.msrb.gmra.mxu2 %vm310_vm1, %v2360_v12 }
0x1a2b   :  { %3019 = vmatmul.msk.f32.gmra.mxu2 %vm310_vm1, %v2362_v45 }
0x1aa6   :  { %v2384_v27 = vpop.f32.mrf.mxu2 }
0x1aa7   :  { %v2385_v30 = vadd.f32 %v3087_v18, %v2384_v27 }
0x1aa9   :  { %v2390_v14 = vmax.f32 %v2385_v30, 0.0 }
0x1aab   :  { %3021 = vmatmul.msk.f32.vlgmr.msrb.gmra.mxu1 %vm310_vm1, %v2390_v14  ;;  %v2555_v14 = vld [vmem:[#allocation15 + $0x18] sm:$0xff] }
0x1aac   :  { %2578 = vmatpush.msra.mxu0 %v2555_v14 }
0x1aae   :  { %v2387_v33 = vpop.f32.mrf.mxu2 }
0x1aaf   :  { %v2388_v1 = vadd.f32 %v3087_v18, %v2387_v33  ;;  %v2554_v33 = vld [vmem:[#allocation15 + $0x10] sm:$0xff] }
0x1ab0   :  { %2579 = vmatpush.msra.mxu0 %v2554_v33 }
0x1ab1   :  { %v2391_v20 = vmax.f32 %v2388_v1, 0.0  ;;  %v2553_v1 = vld [vmem:[#allocation15 + $0x8] sm:$0xff] }
0x1ab2   :  { %2580 = vmatpush.msra.mxu0 %v2553_v1 }
0x1ab3   :  { %3022 = vmatmul.msk.f32.gmra.mxu1 %vm310_vm1, %v2391_v20 }
0x1b28   :  { %v2425_v16 = vpop.f32.mrf.mxu1 }
0x1b29   :  { %v2426_v22 = vadd.f32 %v3088_v21, %v2425_v16 }
0x1b2b   :  { %2433 = vrot.lane.b32.xlu2 %v2426_v22, %s3497_s5 }
0x1b30   :  { %v2428_v23 = vpop.f32.mrf.mxu1 }
0x1b31   :  { %v2429_v42 = vadd.f32 %v3088_v21, %v2428_v23  ;;  %v2552_v21 = vld [vmem:[#allocation15] sm:$0xff]  ;;  %v3091_v23 = vld [vmem:[%s4314_s19] ss:$0 sm:$0xff] }
0x1b32   :  { %2581 = vmatpush.msra.mxu0 %v2552_v21 }
0x1b33   :  { %2435 = vrot.lane.b32.xlu1 %v2429_v42, %s3497_s5  ;;  %v3092_v42 = vld [vmem:[%s4312_s17] ss:$0 sm:$0xff] }
0x1b85   :  { %v2434_v25 = vpop.permute.xlu2 %2433 }
0x1b86   :  { %v2439_v26 = vadd.f32 %v2434_v25, %v2345_v49 }
0x1b88   :  { %2447 = vrot.lane.b32.xlu0 %v2439_v26, %s3497_s5 }
0x1ba5   :  { %v2436_v28 = vpop.permute.xlu1 %2435 }
0x1ba6   :  { %v2440_v29 = vadd.f32 %v2436_v28, %v2346_v6 }
0x1ba8   :  { %2449 = vrot.lane.b32.xlu2 %v2440_v29, %s3497_s5 }
0x1bfa   :  { %v2448_v31 = vpop.permute.xlu0 %2447 }
0x1bfb   :  { %v2453_v32 = vsel %vm310_vm1, %v2448_v31, 0.0 }
0x1bfc   :  { %2454 = vadd.xlane.f32.xlu1 %v2453_v32 }
0x1c02   :  { %v2450_v35 = vpop.permute.xlu2 %2449 }
0x1c03   :  { %v2456_v47 = vsel %vm310_vm1, %v2450_v35, 0.0 }
0x1c04   :  { %2457 = vadd.xlane.f32.xlu0 %v2456_v47 }
0x1c18   :  { %2507 = vrot.lane.b32.xlu0 %v3089_v46, %s3497_s5 }
0x1c6f   :  { %v2455_v24 = vpop.xlane.xlu1 %2454 }
0x1c70   :  { %v2459_v36 = vmul.f32 %v2455_v24, %v3847_v13 }
0x1c72   :  { %v2461_v37 = vsub.f32 %v2439_v26, %v2459_v36 }
0x1c74   :  { %v2463_v39 = vmul.f32 %v2461_v37, %v2461_v37 }
0x1c76   :  { %2467 = vrot.lane.b32.xlu2 %v2463_v39, %s3497_s5 }
0x1c77   :  { %v2458_v10 = vpop.xlane.xlu0 %2457 }
0x1c78   :  { %v2460_v40 = vmul.f32 %v2458_v10, %v3847_v13 }
0x1c7a   :  { %v2462_v41 = vsub.f32 %v2440_v29, %v2460_v40 }
0x1c7c   :  { %v2464_v44 = vmul.f32 %v2462_v41, %v2462_v41 }
0x1c7e   :  { %2469 = vrot.lane.b32.xlu2 %v2464_v44, %s3497_s5 }
0x1c8a   :  { %v2508_v9 = vpop.permute.xlu0 %2507 }
0x1cd0   :  { %v2468_v43 = vpop.permute.xlu2 %2467 }
0x1cd1   :  { %v2473_v34 = vsel %vm310_vm1, %v2468_v43, 0.0 }
0x1cd2   :  { %2474 = vadd.xlane.f32.xlu2 %v2473_v34 }
0x1cd8   :  { %v2470_v48 = vpop.permute.xlu2 %2469 }
0x1cd9   :  { %v2476_v50 = vsel %vm310_vm1, %v2470_v48, 0.0 }
0x1cda   :  { %2477 = vadd.xlane.f32.xlu1 %v2476_v50 }
0x1cf3   :  { %2514 = vrot.lane.b32.xlu1 %v3090_v51, %s3497_s5 }
0x1d45   :  { %v2475_v52 = vpop.xlane.xlu2 %2474 }
0x1d46   :  { %v2479_v53 = vmul.f32 %v2475_v52, %v3847_v13 }
0x1d48   :  { %v2481_v54 = vadd.f32 1e-05, %v2479_v53 }
0x1d4a   :  { %3183 = vrsqrt.f32 %v2481_v54  ;;  %vm2489_vm0 = vweird.f32 %v2481_v54 }
0x1d4d   :  { %v2478_v55 = vpop.xlane.xlu1 %2477 }
0x1d4e   :  { %v2480_v56 = vmul.f32 %v2478_v55, %v3847_v13 }
0x1d50   :  { %v3184_v57 = vpop.eup %3183  ;;  %v2482_v59 = vadd.f32 1e-05, %v2480_v56 }
0x1d51   :  { %v2484_v60 = vmul.f32 %v3184_v57, %v2481_v54  ;;  %vm2490_vm15 = vweird.f32 %v3184_v57 }
0x1d52   :  { %3185 = vrsqrt.f32 %v2482_v59  ;;  %vm2491_vm3 = vmor %vm2489_vm0, %vm2490_vm15  ;;  %vm2499_vm5 = vweird.f32 %v2482_v59 }
0x1d53   :  { %v2485_v0 = vmul.f32 %v3184_v57, %v2484_v60 }
0x1d55   :  { %v2486_v3 = vmul.f32 0.5, %v2485_v0  ;;  %v2669_v0 = vld [vmem:[#allocation18 + $0x8] sm:$0xff] }
0x1d56   :  { %2696 = vmatpush.msra.mxu1 %v2669_v0 }
0x1d57   :  { %v2487_v5 = vsub.f32 1.5, %v2486_v3 }
0x1d58   :  { %v3186_v58 = vpop.eup %3185  ;;  %2697 = vmatpush.msra.mxu1 %v2668_v4 }
0x1d59   :  { %v2494_v11 = vmul.f32 %v3186_v58, %v2482_v59  ;;  %v2488_v49 = vmul.f32 %v3184_v57, %v2487_v5  ;;  %vm2500_vm4 = vweird.f32 %v3186_v58 }
0x1d5a   :  { %vm2501_vm6 = vmor %vm2499_vm5, %vm2500_vm4 }
0x1d5b   :  { %v2495_v13 = vmul.f32 %v3186_v58, %v2494_v11  ;;  %v2492_v7 = vsel %vm2491_vm3, %v3184_v57, %v2488_v49 }
0x1d5c   :  { %v2503_v19 = vmul.f32 %v2492_v7, %v2461_v37 }
0x1d5d   :  { %v2496_v6 = vmul.f32 0.5, %v2495_v13 }
0x1d5e   :  { %v2510_v38 = vmul.f32 %v2508_v9, %v2503_v19 }
0x1d5f   :  { %v2497_v8 = vsub.f32 1.5, %v2496_v6 }
0x1d61   :  { %v2498_v63 = vmul.f32 %v3186_v58, %v2497_v8 }
0x1d63   :  { %v2502_v12 = vsel %vm2501_vm6, %v3186_v58, %v2498_v63 }
0x1d64   :  { %v2504_v45 = vmul.f32 %v2502_v12, %v2462_v41  ;;  %v3093_v12 = vld [vmem:[%s4316_s21] ss:$0 sm:$0xff] }
0x1d65   :  { %v2515_v15 = vpop.permute.xlu1 %2514 }
0x1d66   :  { %v2511_v17 = vmul.f32 %v2508_v9, %v2504_v45  ;;  %v4203_v18 = vadd.f32 %v2515_v15, %v2510_v38 }
0x1d68   :  { %v4205_v27 = vadd.f32 %v2515_v15, %v2511_v17  ;;  %2660 = vrot.lane.b32.xlu1 %v4203_v18, %s3493_s1  ;;  %2521 = vrot.lane.b32.xlu2 %v4203_v18, %s3497_s5 }
0x1d6a   :  { %2523 = vrot.lane.b32.xlu0 %v4205_v27, %s3497_s5 }
0x1d72   :  { %2662 = vrot.lane.b32.xlu0 %v4205_v27, %s3493_s1 }
0x1dc2   :  { %v2522_v30 = vpop.permute.xlu2 %2521 }
0x1dc3   :  { %3025 = vmatmul.msk.f32.vlgmr.msrb.gmra.mxu3 %vm310_vm1, %v2522_v30  ;;  %3029 = vmatmul.msk.f32.vlgmr.msra.gmra.mxu2 %vm310_vm1, %v2522_v30 }
0x1dda   :  { %v2661_v55 = vpop.permute.xlu1 %2660 }
0x1ddc   :  { %v2524_v20 = vpop.permute.xlu0 %2523 }
0x1ddd   :  { %3026 = vmatmul.msk.f32.gmra.mxu3 %vm310_vm1, %v2524_v20  ;;  %3030 = vmatmul.msk.f32.gmra.mxu2 %vm310_vm1, %v2524_v20 }
0x1de4   :  { %v2663_v8 = vpop.permute.xlu0 %2662 }
0x1e46   :  { %v2546_v16 = vpop.f32.mrf.mxu3  ;;  %v2614_v25 = vpop.f32.mrf.mxu2 }
0x1e47   :  { %3027 = vmatmul.msk.f32.vlgmr.msra.gmra.mxu0 %vm310_vm1, %v2546_v16  ;;  %v2615_v28 = vadd.f32 %v3091_v23, %v2614_v25 }
0x1e60   :  { %v2549_v22 = vpop.f32.mrf.mxu3  ;;  %v2617_v37 = vpop.f32.mrf.mxu2 }
0x1e61   :  { %3028 = vmatmul.msk.f32.gmra.mxu0 %vm310_vm1, %v2549_v22  ;;  %v2618_v40 = vadd.f32 %v3091_v23, %v2617_v37 }
0x1ec4   :  { %v2583_v26 = vpop.f32.mrf.mxu0 }
0x1ec5   :  { %v4227_v29 = vadd.f32 %v3092_v42, %v2583_v26  ;;  %v2752_v26 = vld [vmem:[%s4317_s22 + $0x18] sm:$0xff] }
0x1ec6   :  { %2779 = vmatpush.msra.mxu3 %v2752_v26 }
0x1ec7   :  { %v2620_v31 = vadd.f32 %v2615_v28, %v4227_v29  ;;  %v2831_v28 = vld [vmem:[#allocation20 + $0x18] sm:$0xff] }
0x1ec8   :  { %2848 = vmatpush.msrb.mxu0 %v2831_v28 }
0x1ec9   :  { %v2622_v32 = vsub.f32 0.0, %v2620_v31  ;;  %v2751_v31 = vld [vmem:[%s4317_s22 + $0x10] sm:$0xff] }
0x1eca   :  { %2780 = vmatpush.msra.mxu3 %v2751_v31 }
0x1ecb   :  { %v2624_v35 = vmul.f32 1.442695, %v2622_v32  ;;  %v2750_v32 = vld [vmem:[%s4317_s22 + $0x8] sm:$0xff] }
0x1ecc   :  { %2781 = vmatpush.msra.mxu3 %v2750_v32 }
0x1ecd   :  { %3187 = vpow2.f32 %v2624_v35  ;;  %v2749_v35 = vld [vmem:[%s4317_s22] sm:$0xff] }
0x1ece   :  { %2782 = vmatpush.msra.mxu3 %v2749_v35  ;;  %v3096_v35 = vld [vmem:[%s4322_s27] ss:$0 sm:$0xff] }
0x1ed3   :  { %v3188_v47 = vpop.eup %3187 }
0x1ed4   :  { %v2628_v24 = vadd.f32 1.0, %v3188_v47  ;;  %v2828_v47 = vld [vmem:[#allocation20] sm:$0xff] }
0x1ed6   :  { %3189 = vrcp.f32 %v2628_v24  ;;  %v2641_v46 = vand.u32 2147483648, %v2628_v24  ;;  %v2639_v48 = vand.u32 2147483647, %v2628_v24  ;;  %vm2635_vm8 = vweird.f32 %v2628_v24 }
0x1ed8   :  { %v2642_v52 = vor.u32 1.1754944e-38, %v2641_v46  ;;  %vm2640_vm2 = vcmp.eq.f32.partialorder %v2639_v48, 8.507059e+37 }
0x1edc   :  { %v3190_v36 = vpop.eup %3189 }
0x1edd   :  { %v2631_v39 = vmul.f32 %v3190_v36, %v2628_v24  ;;  %vm2636_vm7 = vweird.f32 %v3190_v36 }
0x1ede   :  { %v2586_v10 = vpop.f32.mrf.mxu0  ;;  %vm2637_vm9 = vmor %vm2635_vm8, %vm2636_vm7  ;;  %vm2914_vm8 = vcmask 31744  }
0x1edf   :  { %v4230_v41 = vadd.f32 %v3092_v42, %v2586_v10  ;;  %v2632_v44 = vsub.f32 1.0, %v2631_v39 }
0x1ee1   :  { %v2621_v43 = vadd.f32 %v2618_v40, %v4230_v41  ;;  %v2633_v34 = vmul.f32 %v3190_v36, %v2632_v44 }
0x1ee3   :  { %v2623_v50 = vsub.f32 0.0, %v2621_v43  ;;  %v2634_v51 = vadd.f32 %v3190_v36, %v2633_v34 }
0x1ee5   :  { %v2626_v53 = vmul.f32 1.442695, %v2623_v50  ;;  %v2638_v54 = vsel %vm2637_vm9, %v3190_v36, %v2634_v51  ;;  %v3095_v50 = vld [vmem:[#allocation3] ss:$0 sm:$0xff] }
0x1ee6   :  { %v2643_v56 = vsel %vm2640_vm2, %v2642_v52, %v2638_v54 }
0x1ee7   :  { %3191 = vpow2.f32 %v2626_v53  ;;  %v2666_v57 = vmul.f32 %v2661_v55, %v2643_v56  ;;  %v2735_v15 = vsub.f32 1.0, %v2643_v56 }
0x1ee9   :  { %2674 = vrot.lane.b32.xlu1 %v2666_v57, %s3493_s1 }
0x1eed   :  { %v3192_v59 = vpop.eup %3191 }
0x1eee   :  { %v2629_v60 = vadd.f32 1.0, %v3192_v59 }
0x1ef0   :  { %3193 = vrcp.f32 %v2629_v60  ;;  %v2656_v58 = vand.u32 2147483648, %v2629_v60  ;;  %v2654_v49 = vand.u32 2147483647, %v2629_v60  ;;  %vm2650_vm11 = vweird.f32 %v2629_v60 }
0x1ef1   :  { %2718 = vrot.lane.b32.xlu1 %v3093_v12, %s3497_s5 }
0x1ef2   :  { %v2657_v6 = vor.u32 1.1754944e-38, %v2656_v58  ;;  %vm2655_vm13 = vcmp.eq.f32.partialorder %v2654_v49, 8.507059e+37  ;;  %v2879_v49 = vld [vmem:[%s4321_s26 + $0x10] sm:$0xff] }
0x1ef6   :  { %v3194_v2 = vpop.eup %3193 }
0x1ef7   :  { %v2646_v3 = vmul.f32 %v3194_v2, %v2629_v60  ;;  %vm2651_vm10 = vweird.f32 %v3194_v2 }
0x1ef8   :  { %vm2652_vm12 = vmor %vm2650_vm11, %vm2651_vm10 }
0x1ef9   :  { %v2647_v5 = vsub.f32 1.0, %v2646_v3 }
0x1efb   :  { %v2648_v11 = vmul.f32 %v3194_v2, %v2647_v5 }
0x1efd   :  { %v2649_v13 = vadd.f32 %v3194_v2, %v2648_v11  ;;  %v2880_v11 = vld [vmem:[%s4321_s26 + $0x18] sm:$0xff] }
0x1efe   :  { %2903 = vmatpush.msrb.mxu2 %v2880_v11 }
0x1eff   :  { %v2653_v7 = vsel %vm2652_vm12, %v3194_v2, %v2649_v13 }
0x1f00   :  { %v2658_v19 = vsel %vm2655_vm13, %v2657_v6, %v2653_v7  ;;  %2904 = vmatpush.msrb.mxu2 %v2879_v49 }
0x1f01   :  { %v2667_v9 = vmul.f32 %v2663_v8, %v2658_v19  ;;  %v2736_v17 = vsub.f32 1.0, %v2658_v19 }
0x1f03   :  { %2676 = vrot.lane.b32.xlu0 %v2667_v9, %s3493_s1 }
0x1f0b   :  { %2727 = vrot.lane.b32.xlu0 %v2643_v56, %s3497_s5 }
0x1f13   :  { %2729 = vrot.lane.b32.xlu0 %v2658_v19, %s3497_s5 }
0x1f5b   :  { %v2675_v63 = vpop.permute.xlu1 %2674 }
0x1f5c   :  { %3031 = vmatmul.msk.f32.vlgmr.msra.gmra.mxu1 %vm310_vm1, %v2675_v63 }
0x1f63   :  { %v2719_v33 = vpop.permute.xlu1 %2718 }
0x1f75   :  { %v2677_v45 = vpop.permute.xlu0 %2676 }
0x1f76   :  { %3032 = vmatmul.msk.f32.gmra.mxu1 %vm310_vm1, %v2677_v45 }
0x1f7d   :  { %v2728_v16 = vpop.permute.xlu0 %2727 }
0x1f85   :  { %v2730_v40 = vpop.permute.xlu0 %2729 }
0x1fd9   :  { %v2699_v38 = vpop.f32.mrf.mxu1 }
0x1fda   :  { %2707 = vrot.lane.b32.xlu2 %v2699_v38, %s3497_s5 }
0x1fe2   :  { %2739 = vrot.lane.b32.xlu2 %v2735_v15, %s3497_s5 }
0x1fea   :  { %2741 = vrot.lane.b32.xlu2 %v2736_v17, %s3497_s5 }
0x1ff3   :  { %v2702_v30 = vpop.f32.mrf.mxu1 }
0x1ff4   :  { %2709 = vrot.lane.b32.xlu1 %v2702_v30, %s3497_s5 }
0x2034   :  { %v2708_v14 = vpop.permute.xlu2 %2707 }
0x2035   :  { %v2713_v1 = vadd.f32 %v2708_v14, %v4227_v29  ;;  %v2830_v29 = vld [vmem:[#allocation20 + $0x10] sm:$0xff] }
0x2036   :  { %2849 = vmatpush.msrb.mxu0 %v2830_v29 }
0x2037   :  { %v2721_v20 = vadd.f32 %v2719_v33, %v2713_v1  ;;  %v2877_v1 = vld [vmem:[%s4321_s26] sm:$0xff] }
0x2039   :  { %v2723_v21 = vmax.f32 %v2721_v20, 0.0  ;;  %v3094_v20 = vld [vmem:[%s4320_s25] ss:$0 sm:$0xff] }
0x203b   :  { %v2733_v23 = vmul.f32 %v2728_v16, %v2723_v21 }
0x203c   :  { %v2740_v22 = vpop.permute.xlu2 %2739 }
0x203d   :  { %v2745_v42 = vmul.f32 %v2740_v22, %v4203_v18  ;;  %v2829_v18 = vld [vmem:[#allocation20 + $0x8] sm:$0xff] }
0x203e   :  { %2850 = vmatpush.msrb.mxu0 %v2829_v18 }
0x203f   :  { %v2747_v25 = vadd.f32 %v2745_v42, %v2733_v23 }
0x2040   :  { %2851 = vmatpush.msrb.mxu0 %v2828_v47 }
0x2041   :  { %2759 = vrot.lane.b32.xlu1 %v2747_v25, %s3497_s5 }
0x2044   :  { %v2742_v39 = vpop.permute.xlu2 %2741 }
0x2045   :  { %v2746_v44 = vmul.f32 %v2742_v39, %v4205_v27 }
0x2066   :  { %v2710_v24 = vpop.permute.xlu1 %2709 }
0x2067   :  { %v2714_v36 = vadd.f32 %v2710_v24, %v4230_v41  ;;  %v3505_v41 = vmov 0  }
0x2068   :  { %3068 = vset.pattern.permute.xlu2 %v3505_v41  ;;  %3069 = vset.pattern.permute.xlu1 %v3505_v41 }
0x2069   :  { %v2722_v37 = vadd.f32 %v2719_v33, %v2714_v36  ;;  %3070 = vset.pattern.permute.xlu0 %v3505_v41  ;;  %v2878_v33 = vld [vmem:[%s4321_s26 + $0x8] sm:$0xff] }
0x206a   :  { %2905 = vmatpush.msrb.mxu2 %v2878_v33 }
0x206b   :  { %v2724_v10 = vmax.f32 %v2722_v37, 0.0 }
0x206c   :  { %2906 = vmatpush.msrb.mxu2 %v2877_v1 }
0x206d   :  { %v2734_v46 = vmul.f32 %v2730_v40, %v2724_v10 }
0x206f   :  { %v2748_v43 = vadd.f32 %v2746_v44, %v2734_v46 }
0x2071   :  { %2761 = vrot.lane.b32.xlu0 %v2748_v43, %s3497_s5 }
0x20b3   :  { %v2760_v34 = vpop.permute.xlu1 %2759 }
0x20b4   :  { %3033 = vmatmul.msk.f32.vlgmr.msra.gmra.mxu3 %vm310_vm1, %v2760_v34  ;;  %3035 = vmatmul.msk.f32.vlgmr.msrb.gmra.mxu0 %vm310_vm1, %v2760_v34 }
0x20e3   :  { %v2762_v48 = vpop.permute.xlu0 %2761 }
0x20e4   :  { %3034 = vmatmul.msk.f32.gmra.mxu3 %vm310_vm1, %v2762_v48  ;;  %3036 = vmatmul.msk.f32.gmra.mxu0 %vm310_vm1, %v2762_v48 }
0x2131   :  { %v2853_v21 = vpop.f32.mrf.mxu0 }
0x2132   :  { %v2854_v16 = vadd.f32 %v3094_v20, %v2853_v21 }
0x2134   :  { %v2859_v22 = vmax.f32 %v2854_v16, 0.0 }
0x2137   :  { %v2784_v27 = vpop.f32.mrf.mxu3 }
0x2138   :  { %v2785_v51 = vadd.f32 %v3095_v50, %v2784_v27 }
0x213a   :  { %v2790_v52 = vsub.f32 0.0, %v2785_v51 }
0x213c   :  { %v2792_v53 = vmul.f32 1.442695, %v2790_v52 }
0x213e   :  { %3195 = vpow2.f32 %v2792_v53 }
0x2144   :  { %v3196_v54 = vpop.eup %3195 }
0x2145   :  { %v2796_v55 = vadd.f32 1.0, %v3196_v54 }
0x2147   :  { %3197 = vrcp.f32 %v2796_v55  ;;  %v2809_v60 = vand.u32 2147483648, %v2796_v55  ;;  %v2807_v62 = vand.u32 2147483647, %v2796_v55  ;;  %vm2803_vm15 = vweird.f32 %v2796_v55 }
0x2149   :  { %v2810_v2 = vor.u32 1.1754944e-38, %v2809_v60  ;;  %vm2808_vm3 = vcmp.eq.f32.partialorder %v2807_v62, 8.507059e+37 }
0x214d   :  { %v3198_v56 = vpop.eup %3197 }
0x214e   :  { %v2799_v57 = vmul.f32 %v3198_v56, %v2796_v55  ;;  %vm2804_vm14 = vweird.f32 %v3198_v56 }
0x214f   :  { %vm2805_vm0 = vmor %vm2803_vm15, %vm2804_vm14 }
0x2150   :  { %v2800_v59 = vsub.f32 1.0, %v2799_v57 }
0x2152   :  { %v2801_v61 = vmul.f32 %v3198_v56, %v2800_v59 }
0x2154   :  { %v2802_v0 = vadd.f32 %v3198_v56, %v2801_v61 }
0x2156   :  { %v2806_v3 = vsel %vm2805_vm0, %v3198_v56, %v2802_v0 }
0x2157   :  { %v2811_v4 = vsel %vm2808_vm3, %v2810_v2, %v2806_v3 }
0x2158   :  { %2863 = vperm.xlu2 %3068, %v2811_v4  }
0x2161   :  { %v2856_v26 = vpop.f32.mrf.mxu0 }
0x2162   :  { %v2857_v28 = vadd.f32 %v3094_v20, %v2856_v26 }
0x2164   :  { %v2860_v31 = vmax.f32 %v2857_v28, 0.0 }
0x2167   :  { %v2787_v5 = vpop.f32.mrf.mxu3 }
0x2168   :  { %v2788_v58 = vadd.f32 %v3095_v50, %v2787_v5 }
0x216a   :  { %v2791_v13 = vsub.f32 0.0, %v2788_v58 }
0x216c   :  { %v2794_v6 = vmul.f32 1.442695, %v2791_v13 }
0x216e   :  { %3199 = vpow2.f32 %v2794_v6 }
0x2174   :  { %v3200_v7 = vpop.eup %3199 }
0x2175   :  { %v2797_v8 = vadd.f32 1.0, %v3200_v7 }
0x2177   :  { %3201 = vrcp.f32 %v2797_v8  ;;  %v2824_v12 = vand.u32 2147483648, %v2797_v8  ;;  %v2822_v38 = vand.u32 2147483647, %v2797_v8  ;;  %vm2818_vm5 = vweird.f32 %v2797_v8 }
0x2179   :  { %v2825_v17 = vor.u32 1.1754944e-38, %v2824_v12  ;;  %vm2823_vm7 = vcmp.eq.f32.partialorder %v2822_v38, 8.507059e+37 }
0x217d   :  { %v3202_v19 = vpop.eup %3201 }
0x217e   :  { %v2814_v9 = vmul.f32 %v3202_v19, %v2797_v8  ;;  %vm2819_vm4 = vweird.f32 %v3202_v19 }
0x217f   :  { %vm2820_vm6 = vmor %vm2818_vm5, %vm2819_vm4 }
0x2180   :  { %v2815_v63 = vsub.f32 1.0, %v2814_v9 }
0x2182   :  { %v2816_v45 = vmul.f32 %v3202_v19, %v2815_v63 }
0x2184   :  { %v2817_v15 = vadd.f32 %v3202_v19, %v2816_v45 }
0x2186   :  { %v2821_v30 = vsel %vm2820_vm6, %v3202_v19, %v2817_v15 }
0x2187   :  { %v2826_v14 = vsel %vm2823_vm7, %v2825_v17, %v2821_v30 }
0x2188   :  { %2868 = vperm.xlu1 %3069, %v2826_v14  }
0x21b2   :  { %v2864_v23 = vpop.permute.xlu2 %2863 }
0x21b3   :  { %v2871_v42 = vmul.f32 %v2864_v23, %v2859_v22 }
0x21b5   :  { %v3037_v25 = vclamps-f32 %v2871_v42, 100000.0 }
0x21b7   :  { %3039 = vmatmul.msk.f32.vlgmr.msrb.gmra.mxu2 %vm310_vm1, %v3037_v25 }
0x21fa   :  { %v2869_v29 = vpop.permute.xlu1 %2868 }
0x21fb   :  { %v2872_v32 = vmul.f32 %v2869_v29, %v2860_v31 }
0x21fd   :  { %v3038_v18 = vclamps-f32 %v2872_v32, 100000.0 }
0x21ff   :  { %3040 = vmatmul.msk.f32.gmra.mxu2 %vm310_vm1, %v3038_v18 }
0x223a   :  { %v2908_v47 = vpop.f32.mrf.mxu2 }
0x223b   :  { %v2909_v24 = vadd.f32 %v3096_v35, %v2908_v47 }
0x223d   :  { %2915 = vst.msk [vmem:[%s4323_s28] sm:$0xff] %vm2914_vm8, %v2909_v24 }
0x2282   :  { %v2911_v36 = vpop.f32.mrf.mxu2 }
0x2283   :  { %v2912_v37 = vadd.f32 %v3096_v35, %v2911_v36 }
0x2285   :  { %2916 = vst.msk [vmem:[%s4323_s28 + $0x8] sm:$0xff] %vm2914_vm8, %v2912_v37 }
0x2286   :  { %2921 = vsyncpa [#allocation5], 1 }
0x2287   :  { %2922 = vsyncpa [#allocation7], 1 }
0x2288   :  { %2923 = vsyncpa [#allocation10], 1 }
0x2289   :  { %2924 = vsyncpa [#allocation13], 1 }
0x228a   :  { %2925 = vsyncpa [#allocation16], 1 }
0x228b   :  { %2926 = vsyncpa [#allocation19], 1 }

</bundles_post_ra>
